<compile_context>
chip_gen: v7x
topology: tpu7x:2x2x1
jax: 0.10.0
libtpu: 0.0.40
codegen_flags: <defaults>
</compile_context>

<pallas_src>
import math
import jax
import jax.numpy as jnp
from jax.experimental import pallas as pl
from jax.experimental.pallas import tpu as pltpu

# ----- small, module-consistent shapes ---------------------------------------
B = 2          # batch
C = 3          # image channels
IMG = 32       # image size (stands in for 384)
P = 8          # patch size (stands in for 4)
NPATCH = (IMG // P) * (IMG // P)    # 16 patches
S = 1 + NPATCH                      # tokens incl. cls = 17
S_PAD = ((S + 7) // 8) * 8          # 24: token dim padded to a multiple of 8
CPP = C * P * P                     # patch vector length = 192
D = 64         # embed dim (stands in for 1024)
HEADS = 4
DH = D // HEADS
DEPTH = 2      # number of transformer blocks
MLP = 4 * D
CLASSES = 16   # class_num (stands in for 751)
LINEAR = 32    # linear_num (stands in for 512)
LN_EPS = 1e-6
BN_EPS = 1e-5
SCALE = 1.0 / math.sqrt(DH)

_IDX2 = lambda i: (0, 0)
_IDX3 = lambda i: (0, 0, 0)


def _ln(x, g, b):
    """Row-wise LayerNorm in f32. x: (rows, D); g, b: (1, D)."""
    mu = jnp.mean(x, axis=-1, keepdims=True)
    var = jnp.mean((x - mu) * (x - mu), axis=-1, keepdims=True)
    return (x - mu) * jax.lax.rsqrt(var + LN_EPS) * g + b


# ----- kernel 1: patch embed + cls token + pos embed --------------------------
def _embed_kernel(p_ref, w_ref, b_ref, pos_ref, o_ref):
    # p_ref: (1, S_PAD, CPP) bf16 (row 0 and padded tail rows are zero)
    # pos_ref: (1, S_PAD, D) f32 with cls_token already folded into row 0
    x = jnp.dot(p_ref[0], w_ref[...], preferred_element_type=jnp.float32)  # (S_PAD, D)
    ridx = jax.lax.broadcasted_iota(jnp.int32, (S_PAD, 1), 0)
    patch_rows = jnp.logical_and(ridx >= 1, ridx <= NPATCH).astype(jnp.float32)
    x = x + b_ref[...] * patch_rows + pos_ref[0]
    o_ref[0] = x.astype(o_ref.dtype)


def pallas_patch_embed(patches_p, w, b, pos_cls):
    Bx = patches_p.shape[0]
    return pl.pallas_call(
        _embed_kernel,
        grid=(Bx,),
        in_specs=[
            pl.BlockSpec((1, S_PAD, CPP), lambda i: (i, 0, 0)),
            pl.BlockSpec((CPP, D), _IDX2),
            pl.BlockSpec((1, D), _IDX2),
            pl.BlockSpec((1, S_PAD, D), _IDX3),
        ],
        out_specs=pl.BlockSpec((1, S_PAD, D), lambda i: (i, 0, 0)),
        out_shape=jax.ShapeDtypeStruct((Bx, S_PAD, D), jnp.bfloat16),
        compiler_params=pltpu.CompilerParams(dimension_semantics=("parallel",)),
    )(patches_p, w, b, pos_cls)


# ----- kernel 2: one fused transformer block (per batch element) --------------
def _block_kernel(x_ref, ln1g, ln1b, wq, bq, wk, bk, wv, bv, pw, pb,
                  ln2g, ln2b, w1, b1, w2, b2, o_ref):
    xf = x_ref[0].astype(jnp.float32)                       # (S_PAD, D)

    # --- attention sub-block (pre-norm) ---
    h = _ln(xf, ln1g[...], ln1b[...])
    hb = h.astype(jnp.bfloat16)

    # mask out padded key positions (tokens >= S)
    kmask = jax.lax.broadcasted_iota(jnp.int32, (1, S_PAD), 1) < S

    attn = jnp.zeros((S_PAD, D), jnp.float32)
    for hh in range(HEADS):                                  # static unroll
        qh = jnp.dot(hb, wq[hh], preferred_element_type=jnp.float32) + bq[hh]
        kh = jnp.dot(hb, wk[hh], preferred_element_type=jnp.float32) + bk[hh]
        vh = jnp.dot(hb, wv[hh], preferred_element_type=jnp.float32) + bv[hh]
        s = jax.lax.dot_general(qh.astype(jnp.bfloat16), kh.astype(jnp.bfloat16),
                                (((1,), (1,)), ((), ())),
                                preferred_element_type=jnp.float32) * SCALE
        s = jnp.where(kmask, s, -1e30)
        s = s - jnp.max(s, axis=-1, keepdims=True)
        p = jnp.exp(s)
        p = p * pl.reciprocal(jnp.sum(p, axis=-1, keepdims=True), approx=True)
        ah = jnp.dot(p.astype(jnp.bfloat16), vh.astype(jnp.bfloat16),
                     preferred_element_type=jnp.float32)     # (S_PAD, DH)
        # fold the head-merge into the proj matmul: a @ W_proj == sum_h a_h @ W_proj[h]
        attn = attn + jnp.dot(ah.astype(jnp.bfloat16), pw[hh],
                              preferred_element_type=jnp.float32)
    xf = xf + attn + pb[...]

    # --- MLP sub-block (pre-norm) ---
    h2 = _ln(xf, ln2g[...], ln2b[...]).astype(jnp.bfloat16)
    m = jnp.dot(h2, w1[...], preferred_element_type=jnp.float32) + b1[...]
    # TODO(synk): timm uses exact (erf) GELU; tanh approximation for Mosaic-safe lowering.
    m = jax.nn.gelu(m, approximate=True)
    m = jnp.dot(m.astype(jnp.bfloat16), w2[...], preferred_element_type=jnp.float32) + b2[...]
    xf = xf + m

    o_ref[0] = xf.astype(o_ref.dtype)


def pallas_block(x, blk):
    Bx = x.shape[0]
    return pl.pallas_call(
        _block_kernel,
        grid=(Bx,),
        in_specs=[
            pl.BlockSpec((1, S_PAD, D), lambda i: (i, 0, 0)),
            pl.BlockSpec((1, D), _IDX2), pl.BlockSpec((1, D), _IDX2),
            pl.BlockSpec((HEADS, D, DH), _IDX3), pl.BlockSpec((HEADS, 1, DH), _IDX3),
            pl.BlockSpec((HEADS, D, DH), _IDX3), pl.BlockSpec((HEADS, 1, DH), _IDX3),
            pl.BlockSpec((HEADS, D, DH), _IDX3), pl.BlockSpec((HEADS, 1, DH), _IDX3),
            pl.BlockSpec((HEADS, DH, D), _IDX3), pl.BlockSpec((1, D), _IDX2),
            pl.BlockSpec((1, D), _IDX2), pl.BlockSpec((1, D), _IDX2),
            pl.BlockSpec((D, MLP), _IDX2), pl.BlockSpec((1, MLP), _IDX2),
            pl.BlockSpec((MLP, D), _IDX2), pl.BlockSpec((1, D), _IDX2),
        ],
        out_specs=pl.BlockSpec((1, S_PAD, D), lambda i: (i, 0, 0)),
        out_shape=jax.ShapeDtypeStruct((Bx, S_PAD, D), jnp.bfloat16),
        compiler_params=pltpu.CompilerParams(dimension_semantics=("parallel",)),
    )(x,
      blk["ln1_g"].reshape(1, D), blk["ln1_b"].reshape(1, D),
      blk["wq"], blk["bq"], blk["wk"], blk["bk"], blk["wv"], blk["bv"],
      blk["pw"], blk["pb"].reshape(1, D),
      blk["ln2_g"].reshape(1, D), blk["ln2_b"].reshape(1, D),
      blk["fc1_w"], blk["fc1_b"].reshape(1, MLP),
      blk["fc2_w"], blk["fc2_b"].reshape(1, D))


# ----- kernel 3: final LN + masked mean-pool + ClassBlock (BN folded) ---------
def _tail_kernel(x_ref, ng, nb, fcw, fcb, cw, cb, logit_ref, feat_ref):
    x = x_ref[...].astype(jnp.float32)                       # (B, S_PAD, D)
    mu = jnp.mean(x, axis=-1, keepdims=True)
    var = jnp.mean((x - mu) * (x - mu), axis=-1, keepdims=True)
    y = (x - mu) * jax.lax.rsqrt(var + LN_EPS) * ng[...] + nb[...]

    # mean-pool over the S real tokens only (padded rows excluded)
    tmask = (jax.lax.broadcasted_iota(jnp.int32, (1, S_PAD, 1), 1) < S).astype(jnp.float32)
    pooled = jnp.sum(y * tmask, axis=1) * (1.0 / S)          # (B, D)

    f = jnp.dot(pooled.astype(jnp.bfloat16), fcw[...],
                preferred_element_type=jnp.float32) + fcb[...]
    logits = jnp.dot(f.astype(jnp.bfloat16), cw[...],
                     preferred_element_type=jnp.float32) + cb[...]
    feat_ref[...] = f.astype(feat_ref.dtype)
    logit_ref[...] = logits.astype(logit_ref.dtype)


def pallas_tail(x, ng, nb, fcw, fcb, cw, cb):
    Bx = x.shape[0]
    return pl.pallas_call(
        _tail_kernel,
        grid=(1,),
        in_specs=[
            pl.BlockSpec((Bx, S_PAD, D), _IDX3),
            pl.BlockSpec((1, 1, D), _IDX3), pl.BlockSpec((1, 1, D), _IDX3),
            pl.BlockSpec((D, LINEAR), _IDX2), pl.BlockSpec((1, LINEAR), _IDX2),
            pl.BlockSpec((LINEAR, CLASSES), _IDX2), pl.BlockSpec((1, CLASSES), _IDX2),
        ],
        out_specs=(pl.BlockSpec((Bx, CLASSES), _IDX2),
                   pl.BlockSpec((Bx, LINEAR), _IDX2)),
        out_shape=(jax.ShapeDtypeStruct((Bx, CLASSES), jnp.float32),
                   jax.ShapeDtypeStruct((Bx, LINEAR), jnp.float32)),
        compiler_params=pltpu.CompilerParams(dimension_semantics=("arbitrary",)),
    )(x, ng, nb, fcw, fcb, cw, cb)


# ----- deterministic parameter init -------------------------------------------
def init_params(key):
    keys = iter(jax.random.split(key, 16 + 8 * DEPTH))

    def nrm(shape, std=0.02, dtype=jnp.float32):
        return (std * jax.random.normal(next(keys), shape)).astype(dtype)

    params = {
        # patch_embed: Conv2d(C, D, kernel=P, stride=P) expressed as matmul
        "patch_w": nrm((CPP, D), dtype=jnp.bfloat16),
        "patch_b": jnp.zeros((D,), jnp.float32),
        "cls_token": nrm((1, 1, D)),
        "pos_embed": nrm((1, S, D)),
        "norm_g": jnp.ones((D,), jnp.float32),
        "norm_b": jnp.zeros((D,), jnp.float32),
        "blocks": [],
        # ClassBlock: Linear(D, LINEAR) -> BatchNorm1d(LINEAR) -> Linear(LINEAR, CLASSES)
        "cls_fc_w": nrm((D, LINEAR), dtype=jnp.bfloat16),
        "cls_fc_b": jnp.zeros((LINEAR,), jnp.float32),
        "classifier_w": nrm((LINEAR, CLASSES), std=0.001, dtype=jnp.bfloat16),
        "classifier_b": jnp.zeros((CLASSES,), jnp.float32),
    }
    # BatchNorm1d(eval): gamma ~ N(1, 0.02), beta = 0, running mean/var = 0/1
    bn_gamma = (1.0 + 0.02 * jax.random.normal(next(keys), (LINEAR,))).astype(jnp.float32)
    params["bn_scale"] = bn_gamma / jnp.sqrt(1.0 + BN_EPS)
    params["bn_shift"] = jnp.zeros((LINEAR,), jnp.float32)

    for _ in range(DEPTH):
        # same qkv / proj Linear weights, pre-split per head for the fused kernel
        qkv_w = nrm((D, 3 * D))
        proj_w = nrm((D, D))
        wq = jnp.stack([qkv_w[:, h * DH:(h + 1) * DH] for h in range(HEADS)]).astype(jnp.bfloat16)
        wk = jnp.stack([qkv_w[:, D + h * DH:D + (h + 1) * DH] for h in range(HEADS)]).astype(jnp.bfloat16)
        wv = jnp.stack([qkv_w[:, 2 * D + h * DH:2 * D + (h + 1) * DH] for h in range(HEADS)]).astype(jnp.bfloat16)
        pw = jnp.stack([proj_w[h * DH:(h + 1) * DH, :] for h in range(HEADS)]).astype(jnp.bfloat16)
        params["blocks"].append({
            "ln1_g": jnp.ones((D,), jnp.float32), "ln1_b": jnp.zeros((D,), jnp.float32),
            "wq": wq, "wk": wk, "wv": wv,
            "bq": jnp.zeros((HEADS, 1, DH), jnp.float32),
            "bk": jnp.zeros((HEADS, 1, DH), jnp.float32),
            "bv": jnp.zeros((HEADS, 1, DH), jnp.float32),
            "pw": pw, "pb": jnp.zeros((D,), jnp.float32),
            "ln2_g": jnp.ones((D,), jnp.float32), "ln2_b": jnp.zeros((D,), jnp.float32),
            "fc1_w": nrm((D, MLP), dtype=jnp.bfloat16), "fc1_b": jnp.zeros((MLP,), jnp.float32),
            "fc2_w": nrm((MLP, D), dtype=jnp.bfloat16), "fc2_b": jnp.zeros((D,), jnp.float32),
        })
    return params


# ----- forward pass ------------------------------------------------------------
# TODO(synk): PSPNet parsing branch (pretrained binary_parsing.pth) + the
# bilinear resize / argmax-mask width-concat are not reproducible in-script;
# the backbone consumes the image directly.
def vit_forward(x_img, params):
    Bx = x_img.shape[0]
    nH, nW = IMG // P, IMG // P

    # patchify (layout glue only; the matmul happens in the Pallas embed kernel)
    patches = x_img.reshape(Bx, C, nH, P, nW, P)
    patches = patches.transpose(0, 2, 4, 1, 3, 5).reshape(Bx, NPATCH, CPP)
    patches_p = jnp.zeros((Bx, S_PAD, CPP), jnp.bfloat16)
    patches_p = patches_p.at[:, 1:1 + NPATCH].set(patches.astype(jnp.bfloat16))

    # padded positional table with the cls token folded into row 0
    pos_cls = jnp.zeros((1, S_PAD, D), jnp.float32)
    pos_cls = pos_cls.at[:, :S].set(params["pos_embed"])
    pos_cls = pos_cls.at[:, 0].add(params["cls_token"][:, 0])

    x = pallas_patch_embed(patches_p, params["patch_w"],
                           params["patch_b"].reshape(1, D), pos_cls)  # (B, S_PAD, D) bf16

    for blk in params["blocks"]:
        x = pallas_block(x, blk)

    # fold eval-mode BatchNorm1d into the ClassBlock Linear (exact)
    fcw = (params["cls_fc_w"].astype(jnp.float32) *
           params["bn_scale"][None, :]).astype(jnp.bfloat16)
    fcb = params["cls_fc_b"] * params["bn_scale"] + params["bn_shift"]

    logits, f = pallas_tail(
        x,
        params["norm_g"].reshape(1, 1, D), params["norm_b"].reshape(1, 1, D),
        fcw, fcb.reshape(1, LINEAR),
        params["classifier_w"], params["classifier_b"].reshape(1, CLASSES))
    return [logits, f]


if __name__ == "__main__":
    key = jax.random.PRNGKey(0)
    k_x, k_p = jax.random.split(key)
    x = jax.random.normal(k_x, (B, C, IMG, IMG), dtype=jnp.float32)
    params = init_params(k_p)

    fwd = jax.jit(vit_forward)
    logits, feat = fwd(x, params)
    jax.block_until_ready(logits)
    jax.block_until_ready(feat)

    assert logits.shape == (B, CLASSES), logits.shape
    assert feat.shape == (B, LINEAR), feat.shape
    assert bool(jnp.all(jnp.isfinite(logits))) and bool(jnp.all(jnp.isfinite(feat)))
    print("KERNEL_OK")
</pallas_src>

<mosaic_0001>
module attributes {stable_mosaic.version = 11 : i64} {
  func.func @_embed_kernel(%arg0: i32, %arg1: memref<1x24x192xbf16, #tpu.memory_space<vmem>>, %arg2: memref<192x64xbf16, #tpu.memory_space<vmem>>, %arg3: memref<1x64xf32, #tpu.memory_space<vmem>>, %arg4: memref<1x24x64xf32, #tpu.memory_space<vmem>>, %arg5: memref<1x24x64xbf16, #tpu.memory_space<vmem>>) attributes {dimension_semantics = [#tpu.dimension_semantics<parallel>], iteration_bounds = array<i64: 2>, scalar_prefetch = 0 : i64, scratch_operands = 0 : i64, tpu.core_type = #tpu.core_type<tc>, window_params = [{transform_indices = @transform_0, window_bounds = array<i64: 1, 24, 192>}, {pipeline_mode = #tpu.pipeline_mode<synchronous>, transform_indices = @transform_1, window_bounds = array<i64: 192, 64>}, {pipeline_mode = #tpu.pipeline_mode<synchronous>, transform_indices = @transform_2, window_bounds = array<i64: 1, 64>}, {pipeline_mode = #tpu.pipeline_mode<synchronous>, transform_indices = @transform_3, window_bounds = array<i64: 1, 24, 64>}, {transform_indices = @transform_4, window_bounds = array<i64: 1, 24, 64>}]} {
    %c0 = arith.constant 0 : index
    %c0_0 = arith.constant 0 : index
    %c0_1 = arith.constant 0 : index
    %0 = vector.load %arg1[%c0, %c0_0, %c0_1] : memref<1x24x192xbf16, #tpu.memory_space<vmem>>, vector<1x24x192xbf16>
    %1 = vector.shape_cast %0 : vector<1x24x192xbf16> to vector<24x192xbf16>
    %c0_2 = arith.constant 0 : index
    %c0_3 = arith.constant 0 : index
    %2 = vector.load %arg2[%c0_2, %c0_3] : memref<192x64xbf16, #tpu.memory_space<vmem>>, vector<192x64xbf16>
    %cst = arith.constant dense<0.000000e+00> : vector<24x64xf32>
    %3 = tpu.matmul %1, %2, %cst {dimension_numbers = #tpu.dot_dimension_numbers<[1], [0], [0], [1], [0, 0, 1, 1], [], []>} : vector<24x192xbf16>, vector<192x64xbf16>, vector<24x64xf32> -> vector<24x64xf32>
    %4 = tpu.iota {dimensions = array<i32: 0>} : vector<24x1xi32>
    %c1_i32 = arith.constant 1 : i32
    %5 = vector.broadcast %c1_i32 : i32 to vector<24x1xi32>
    %6 = arith.cmpi sge, %4, %5 : vector<24x1xi32>
    %c16_i32 = arith.constant 16 : i32
    %7 = vector.broadcast %c16_i32 : i32 to vector<24x1xi32>
    %8 = arith.cmpi sle, %4, %7 : vector<24x1xi32>
    %9 = arith.andi %6, %8 : vector<24x1xi1>
    %10 = arith.extui %9 : vector<24x1xi1> to vector<24x1xi32>
    %11 = arith.sitofp %10 : vector<24x1xi32> to vector<24x1xf32>
    %c0_4 = arith.constant 0 : index
    %c0_5 = arith.constant 0 : index
    %12 = vector.load %arg3[%c0_4, %c0_5] : memref<1x64xf32, #tpu.memory_space<vmem>>, vector<1x64xf32>
    %13 = vector.broadcast %12 : vector<1x64xf32> to vector<24x64xf32>
    %14 = vector.broadcast %11 : vector<24x1xf32> to vector<24x64xf32>
    %15 = arith.mulf %13, %14 : vector<24x64xf32>
    %16 = arith.addf %3, %15 : vector<24x64xf32>
    %c0_6 = arith.constant 0 : index
    %c0_7 = arith.constant 0 : index
    %c0_8 = arith.constant 0 : index
    %17 = vector.load %arg4[%c0_6, %c0_7, %c0_8] : memref<1x24x64xf32, #tpu.memory_space<vmem>>, vector<1x24x64xf32>
    %18 = vector.shape_cast %17 : vector<1x24x64xf32> to vector<24x64xf32>
    %19 = arith.addf %16, %18 : vector<24x64xf32>
    %20 = arith.truncf %19 : vector<24x64xf32> to vector<24x64xbf16>
    %c0_9 = arith.constant 0 : index
    %c0_10 = arith.constant 0 : index
    %c0_11 = arith.constant 0 : index
    %21 = vector.load %arg5[%c0_9, %c0_10, %c0_11] : memref<1x24x64xbf16, #tpu.memory_space<vmem>>, vector<1x24x64xbf16>
    %22 = vector.shape_cast %21 : vector<1x24x64xbf16> to vector<24x64xbf16>
    %23 = vector.shape_cast %20 : vector<24x64xbf16> to vector<1x24x64xbf16>
    tpu.vector_store %arg5[%c0_9, %c0_10, %c0_11], %23 {strides = array<i32>} : memref<1x24x64xbf16, #tpu.memory_space<vmem>>, vector<1x24x64xbf16>,
    return
  }
  func.func @transform_0(%arg0: i32) -> (i32, i32, i32) {
    %c0_i32 = arith.constant 0 : i32
    %c0_i32_0 = arith.constant 0 : i32
    %c0_i32_1 = arith.constant 0 : i32
    return %arg0, %c0_i32, %c0_i32_0 : i32, i32, i32
  }
  func.func @transform_1(%arg0: i32) -> (i32, i32) {
    %c0_i32 = arith.constant 0 : i32
    %c0_i32_0 = arith.constant 0 : i32
    %c0_i32_1 = arith.constant 0 : i32
    return %c0_i32, %c0_i32_0 : i32, i32
  }
  func.func @transform_2(%arg0: i32) -> (i32, i32) {
    %c0_i32 = arith.constant 0 : i32
    %c0_i32_0 = arith.constant 0 : i32
    %c0_i32_1 = arith.constant 0 : i32
    return %c0_i32, %c0_i32_0 : i32, i32
  }
  func.func @transform_3(%arg0: i32) -> (i32, i32, i32) {
    %c0_i32 = arith.constant 0 : i32
    %c0_i32_0 = arith.constant 0 : i32
    %c0_i32_1 = arith.constant 0 : i32
    %c0_i32_2 = arith.constant 0 : i32
    return %c0_i32, %c0_i32_0, %c0_i32_1 : i32, i32, i32
  }
  func.func @transform_4(%arg0: i32) -> (i32, i32, i32) {
    %c0_i32 = arith.constant 0 : i32
    %c0_i32_0 = arith.constant 0 : i32
    %c0_i32_1 = arith.constant 0 : i32
    return %arg0, %c0_i32, %c0_i32_0 : i32, i32, i32
  }
}

module attributes {stable_mosaic.version = 11 : i64} {
  func.func @_block_kernel(%arg0: i32, %arg1: memref<1x24x64xbf16, #tpu.memory_space<vmem>>, %arg2: memref<1x64xf32, #tpu.memory_space<vmem>>, %arg3: memref<1x64xf32, #tpu.memory_space<vmem>>, %arg4: memref<4x64x16xbf16, #tpu.memory_space<vmem>>, %arg5: memref<4x1x16xf32, #tpu.memory_space<vmem>>, %arg6: memref<4x64x16xbf16, #tpu.memory_space<vmem>>, %arg7: memref<4x1x16xf32, #tpu.memory_space<vmem>>, %arg8: memref<4x64x16xbf16, #tpu.memory_space<vmem>>, %arg9: memref<4x1x16xf32, #tpu.memory_space<vmem>>, %arg10: memref<4x16x64xbf16, #tpu.memory_space<vmem>>, %arg11: memref<1x64xf32, #tpu.memory_space<vmem>>, %arg12: memref<1x64xf32, #tpu.memory_space<vmem>>, %arg13: memref<1x64xf32, #tpu.memory_space<vmem>>, %arg14: memref<64x256xbf16, #tpu.memory_space<vmem>>, %arg15: memref<1x256xf32, #tpu.memory_space<vmem>>, %arg16: memref<256x64xbf16, #tpu.memory_space<vmem>>, %arg17: memref<1x64xf32, #tpu.memory_space<vmem>>, %arg18: memref<1x24x64xbf16, #tpu.memory_space<vmem>>) attributes {dimension_semantics = [#tpu.dimension_semantics<parallel>], iteration_bounds = array<i64: 2>, scalar_prefetch = 0 : i64, scratch_operands = 0 : i64, tpu.core_type = #tpu.core_type<tc>, window_params = [{transform_indices = @transform_0, window_bounds = array<i64: 1, 24, 64>}, {pipeline_mode = #tpu.pipeline_mode<synchronous>, transform_indices = @transform_1, window_bounds = array<i64: 1, 64>}, {pipeline_mode = #tpu.pipeline_mode<synchronous>, transform_indices = @transform_2, window_bounds = array<i64: 1, 64>}, {pipeline_mode = #tpu.pipeline_mode<synchronous>, transform_indices = @transform_3, window_bounds = array<i64: 4, 64, 16>}, {pipeline_mode = #tpu.pipeline_mode<synchronous>, transform_indices = @transform_4, window_bounds = array<i64: 4, 1, 16>}, {pipeline_mode = #tpu.pipeline_mode<synchronous>, transform_indices = @transform_5, window_bounds = array<i64: 4, 64, 16>}, {pipeline_mode = #tpu.pipeline_mode<synchronous>, transform_indices = @transform_6, window_bounds = array<i64: 4, 1, 16>}, {pipeline_mode = #tpu.pipeline_mode<synchronous>, transform_indices = @transform_7, window_bounds = array<i64: 4, 64, 16>}, {pipeline_mode = #tpu.pipeline_mode<synchronous>, transform_indices = @transform_8, window_bounds = array<i64: 4, 1, 16>}, {pipeline_mode = #tpu.pipeline_mode<synchronous>, transform_indices = @transform_9, window_bounds = array<i64: 4, 16, 64>}, {pipeline_mode = #tpu.pipeline_mode<synchronous>, transform_indices = @transform_10, window_bounds = array<i64: 1, 64>}, {pipeline_mode = #tpu.pipeline_mode<synchronous>, transform_indices = @transform_11, window_bounds = array<i64: 1, 64>}, {pipeline_mode = #tpu.pipeline_mode<synchronous>, transform_indices = @transform_12, window_bounds = array<i64: 1, 64>}, {pipeline_mode = #tpu.pipeline_mode<synchronous>, transform_indices = @transform_13, window_bounds = array<i64: 64, 256>}, {pipeline_mode = #tpu.pipeline_mode<synchronous>, transform_indices = @transform_14, window_bounds = array<i64: 1, 256>}, {pipeline_mode = #tpu.pipeline_mode<synchronous>, transform_indices = @transform_15, window_bounds = array<i64: 256, 64>}, {pipeline_mode = #tpu.pipeline_mode<synchronous>, transform_indices = @transform_16, window_bounds = array<i64: 1, 64>}, {transform_indices = @transform_17, window_bounds = array<i64: 1, 24, 64>}]} {
    %c0 = arith.constant 0 : index
    %c0_0 = arith.constant 0 : index
    %c0_1 = arith.constant 0 : index
    %0 = vector.load %arg1[%c0, %c0_0, %c0_1] : memref<1x24x64xbf16, #tpu.memory_space<vmem>>, vector<1x24x64xbf16>
    %1 = vector.shape_cast %0 : vector<1x24x64xbf16> to vector<24x64xbf16>
    %2 = arith.extf %1 : vector<24x64xbf16> to vector<24x64xf32>
    %c0_2 = arith.constant 0 : index
    %c0_3 = arith.constant 0 : index
    %3 = vector.load %arg2[%c0_2, %c0_3] : memref<1x64xf32, #tpu.memory_space<vmem>>, vector<1x64xf32>
    %c0_4 = arith.constant 0 : index
    %c0_5 = arith.constant 0 : index
    %4 = vector.load %arg3[%c0_4, %c0_5] : memref<1x64xf32, #tpu.memory_space<vmem>>, vector<1x64xf32>
    %cst = arith.constant dense<0.000000e+00> : vector<24xf32>
    %5 = vector.multi_reduction <add>, %2, %cst [1] : vector<24x64xf32> to vector<24xf32>
    %6 = vector.shape_cast %5 : vector<24xf32> to vector<24x1xf32>
    %cst_6 = arith.constant 6.400000e+01 : f32
    %7 = vector.broadcast %cst_6 : f32 to vector<24x1xf32>
    %8 = arith.divf %6, %7 : vector<24x1xf32>
    %9 = vector.broadcast %8 : vector<24x1xf32> to vector<24x64xf32>
    %10 = arith.subf %2, %9 : vector<24x64xf32>
    %11 = vector.broadcast %8 : vector<24x1xf32> to vector<24x64xf32>
    %12 = arith.subf %2, %11 : vector<24x64xf32>
    %13 = arith.mulf %10, %12 : vector<24x64xf32>
    %cst_7 = arith.constant dense<0.000000e+00> : vector<24xf32>
    %14 = vector.multi_reduction <add>, %13, %cst_7 [1] : vector<24x64xf32> to vector<24xf32>
    %15 = vector.shape_cast %14 : vector<24xf32> to vector<24x1xf32>
    %cst_8 = arith.constant 6.400000e+01 : f32
    %16 = vector.broadcast %cst_8 : f32 to vector<24x1xf32>
    %17 = arith.divf %15, %16 : vector<24x1xf32>
    %18 = vector.broadcast %8 : vector<24x1xf32> to vector<24x64xf32>
    %19 = arith.subf %2, %18 : vector<24x64xf32>
    %cst_9 = arith.constant 9.99999997E-7 : f32
    %20 = vector.broadcast %cst_9 : f32 to vector<24x1xf32>
    %21 = arith.addf %17, %20 : vector<24x1xf32>
    %22 = math.rsqrt %21 : vector<24x1xf32>
    %23 = vector.broadcast %22 : vector<24x1xf32> to vector<24x64xf32>
    %24 = arith.mulf %19, %23 : vector<24x64xf32>
    %25 = vector.broadcast %3 : vector<1x64xf32> to vector<24x64xf32>
    %26 = arith.mulf %24, %25 : vector<24x64xf32>
    %27 = vector.broadcast %4 : vector<1x64xf32> to vector<24x64xf32>
    %28 = arith.addf %26, %27 : vector<24x64xf32>
    %29 = arith.truncf %28 : vector<24x64xf32> to vector<24x64xbf16>
    %30 = tpu.iota {dimensions = array<i32: 1>} : vector<1x24xi32>
    %c17_i32 = arith.constant 17 : i32
    %31 = vector.broadcast %c17_i32 : i32 to vector<1x24xi32>
    %32 = arith.cmpi slt, %30, %31 : vector<1x24xi32>
    %cst_10 = arith.constant 0.000000e+00 : f32
    %33 = vector.broadcast %cst_10 : f32 to vector<24x64xf32>
    %c0_11 = arith.constant 0 : index
    %c0_12 = arith.constant 0 : index
    %c0_13 = arith.constant 0 : index
    %34 = vector.load %arg4[%c0_11, %c0_12, %c0_13] : memref<4x64x16xbf16, #tpu.memory_space<vmem>>, vector<1x64x16xbf16>
    %35 = vector.shape_cast %34 : vector<1x64x16xbf16> to vector<64x16xbf16>
    %cst_14 = arith.constant dense<0.000000e+00> : vector<24x16xf32>
    %36 = tpu.matmul %29, %35, %cst_14 {dimension_numbers = #tpu.dot_dimension_numbers<[1], [0], [0], [1], [0, 0, 1, 1], [], []>} : vector<24x64xbf16>, vector<64x16xbf16>, vector<24x16xf32> -> vector<24x16xf32>
    %c0_15 = arith.constant 0 : index
    %c0_16 = arith.constant 0 : index
    %c0_17 = arith.constant 0 : index
    %37 = vector.load %arg5[%c0_15, %c0_16, %c0_17] : memref<4x1x16xf32, #tpu.memory_space<vmem>>, vector<1x1x16xf32>
    %38 = vector.shape_cast %37 : vector<1x1x16xf32> to vector<1x16xf32>
    %39 = vector.broadcast %38 : vector<1x16xf32> to vector<24x16xf32>
    %40 = arith.addf %36, %39 : vector<24x16xf32>
    %c0_18 = arith.constant 0 : index
    %c0_19 = arith.constant 0 : index
    %c0_20 = arith.constant 0 : index
    %41 = vector.load %arg6[%c0_18, %c0_19, %c0_20] : memref<4x64x16xbf16, #tpu.memory_space<vmem>>, vector<1x64x16xbf16>
    %42 = vector.shape_cast %41 : vector<1x64x16xbf16> to vector<64x16xbf16>
    %cst_21 = arith.constant dense<0.000000e+00> : vector<24x16xf32>
    %43 = tpu.matmul %29, %42, %cst_21 {dimension_numbers = #tpu.dot_dimension_numbers<[1], [0], [0], [1], [0, 0, 1, 1], [], []>} : vector<24x64xbf16>, vector<64x16xbf16>, vector<24x16xf32> -> vector<24x16xf32>
    %c0_22 = arith.constant 0 : index
    %c0_23 = arith.constant 0 : index
    %c0_24 = arith.constant 0 : index
    %44 = vector.load %arg7[%c0_22, %c0_23, %c0_24] : memref<4x1x16xf32, #tpu.memory_space<vmem>>, vector<1x1x16xf32>
    %45 = vector.shape_cast %44 : vector<1x1x16xf32> to vector<1x16xf32>
    %46 = vector.broadcast %45 : vector<1x16xf32> to vector<24x16xf32>
    %47 = arith.addf %43, %46 : vector<24x16xf32>
    %c0_25 = arith.constant 0 : index
    %c0_26 = arith.constant 0 : index
    %c0_27 = arith.constant 0 : index
    %48 = vector.load %arg8[%c0_25, %c0_26, %c0_27] : memref<4x64x16xbf16, #tpu.memory_space<vmem>>, vector<1x64x16xbf16>
    %49 = vector.shape_cast %48 : vector<1x64x16xbf16> to vector<64x16xbf16>
    %cst_28 = arith.constant dense<0.000000e+00> : vector<24x16xf32>
    %50 = tpu.matmul %29, %49, %cst_28 {dimension_numbers = #tpu.dot_dimension_numbers<[1], [0], [0], [1], [0, 0, 1, 1], [], []>} : vector<24x64xbf16>, vector<64x16xbf16>, vector<24x16xf32> -> vector<24x16xf32>
    %c0_29 = arith.constant 0 : index
    %c0_30 = arith.constant 0 : index
    %c0_31 = arith.constant 0 : index
    %51 = vector.load %arg9[%c0_29, %c0_30, %c0_31] : memref<4x1x16xf32, #tpu.memory_space<vmem>>, vector<1x1x16xf32>
    %52 = vector.shape_cast %51 : vector<1x1x16xf32> to vector<1x16xf32>
    %53 = vector.broadcast %52 : vector<1x16xf32> to vector<24x16xf32>
    %54 = arith.addf %50, %53 : vector<24x16xf32>
    %55 = arith.truncf %40 : vector<24x16xf32> to vector<24x16xbf16>
    %56 = arith.truncf %47 : vector<24x16xf32> to vector<24x16xbf16>
    %cst_32 = arith.constant dense<0.000000e+00> : vector<24x24xf32>
    %57 = tpu.matmul %55, %56, %cst_32 {dimension_numbers = #tpu.dot_dimension_numbers<[1], [1], [0], [0], [0, 0, 1, 0], [], []>} : vector<24x16xbf16>, vector<24x16xbf16>, vector<24x24xf32> -> vector<24x24xf32>
    %cst_33 = arith.constant 2.500000e-01 : f32
    %58 = vector.broadcast %cst_33 : f32 to vector<24x24xf32>
    %59 = arith.mulf %57, %58 : vector<24x24xf32>
    %cst_34 = arith.constant -1.000000e+30 : f32
    %60 = vector.shape_cast %32 : vector<1x24xi1> to vector<1x24xi1>
    %61 = vector.broadcast %60 : vector<1x24xi1> to vector<24x24xi1>
    %62 = vector.broadcast %cst_34 : f32 to vector<24x24xf32>
    %63 = arith.select %61, %59, %62 : vector<24x24xi1>, vector<24x24xf32>
    %cst_35 = arith.constant dense<0xFF800000> : vector<24xf32>
    %64 = vector.multi_reduction <maximumf>, %63, %cst_35 [1] : vector<24x24xf32> to vector<24xf32>
    %65 = vector.shape_cast %64 : vector<24xf32> to vector<24x1xf32>
    %66 = vector.broadcast %65 : vector<24x1xf32> to vector<24x24xf32>
    %67 = arith.subf %63, %66 : vector<24x24xf32>
    %68 = math.exp %67 : vector<24x24xf32>
    %cst_36 = arith.constant dense<0.000000e+00> : vector<24xf32>
    %69 = vector.multi_reduction <add>, %68, %cst_36 [1] : vector<24x24xf32> to vector<24xf32>
    %70 = vector.shape_cast %69 : vector<24xf32> to vector<24x1xf32>
    %71 = tpu.reciprocal %70 {approx = true} : vector<24x1xf32> -> vector<24x1xf32>
    %72 = vector.broadcast %71 : vector<24x1xf32> to vector<24x24xf32>
    %73 = arith.mulf %68, %72 : vector<24x24xf32>
    %74 = arith.truncf %73 : vector<24x24xf32> to vector<24x24xbf16>
    %75 = arith.truncf %54 : vector<24x16xf32> to vector<24x16xbf16>
    %cst_37 = arith.constant dense<0.000000e+00> : vector<24x16xf32>
    %76 = tpu.matmul %74, %75, %cst_37 {dimension_numbers = #tpu.dot_dimension_numbers<[1], [0], [0], [1], [0, 0, 1, 1], [], []>} : vector<24x24xbf16>, vector<24x16xbf16>, vector<24x16xf32> -> vector<24x16xf32>
    %77 = arith.truncf %76 : vector<24x16xf32> to vector<24x16xbf16>
    %c0_38 = arith.constant 0 : index
    %c0_39 = arith.constant 0 : index
    %c0_40 = arith.constant 0 : index
    %78 = vector.load %arg10[%c0_38, %c0_39, %c0_40] : memref<4x16x64xbf16, #tpu.memory_space<vmem>>, vector<1x16x64xbf16>
    %79 = vector.shape_cast %78 : vector<1x16x64xbf16> to vector<16x64xbf16>
    %cst_41 = arith.constant dense<0.000000e+00> : vector<24x64xf32>
    %80 = tpu.matmul %77, %79, %cst_41 {dimension_numbers = #tpu.dot_dimension_numbers<[1], [0], [0], [1], [0, 0, 1, 1], [], []>} : vector<24x16xbf16>, vector<16x64xbf16>, vector<24x64xf32> -> vector<24x64xf32>
    %81 = arith.addf %33, %80 : vector<24x64xf32>
    %c1 = arith.constant 1 : index
    %c0_42 = arith.constant 0 : index
    %c0_43 = arith.constant 0 : index
    %82 = vector.load %arg4[%c1, %c0_42, %c0_43] : memref<4x64x16xbf16, #tpu.memory_space<vmem>>, vector<1x64x16xbf16>
    %83 = vector.shape_cast %82 : vector<1x64x16xbf16> to vector<64x16xbf16>
    %cst_44 = arith.constant dense<0.000000e+00> : vector<24x16xf32>
    %84 = tpu.matmul %29, %83, %cst_44 {dimension_numbers = #tpu.dot_dimension_numbers<[1], [0], [0], [1], [0, 0, 1, 1], [], []>} : vector<24x64xbf16>, vector<64x16xbf16>, vector<24x16xf32> -> vector<24x16xf32>
    %c1_45 = arith.constant 1 : index
    %c0_46 = arith.constant 0 : index
    %c0_47 = arith.constant 0 : index
    %85 = vector.load %arg5[%c1_45, %c0_46, %c0_47] : memref<4x1x16xf32, #tpu.memory_space<vmem>>, vector<1x1x16xf32>
    %86 = vector.shape_cast %85 : vector<1x1x16xf32> to vector<1x16xf32>
    %87 = vector.broadcast %86 : vector<1x16xf32> to vector<24x16xf32>
    %88 = arith.addf %84, %87 : vector<24x16xf32>
    %c1_48 = arith.constant 1 : index
    %c0_49 = arith.constant 0 : index
    %c0_50 = arith.constant 0 : index
    %89 = vector.load %arg6[%c1_48, %c0_49, %c0_50] : memref<4x64x16xbf16, #tpu.memory_space<vmem>>, vector<1x64x16xbf16>
    %90 = vector.shape_cast %89 : vector<1x64x16xbf16> to vector<64x16xbf16>
    %cst_51 = arith.constant dense<0.000000e+00> : vector<24x16xf32>
    %91 = tpu.matmul %29, %90, %cst_51 {dimension_numbers = #tpu.dot_dimension_numbers<[1], [0], [0], [1], [0, 0, 1, 1], [], []>} : vector<24x64xbf16>, vector<64x16xbf16>, vector<24x16xf32> -> vector<24x16xf32>
    %c1_52 = arith.constant 1 : index
    %c0_53 = arith.constant 0 : index
    %c0_54 = arith.constant 0 : index
    %92 = vector.load %arg7[%c1_52, %c0_53, %c0_54] : memref<4x1x16xf32, #tpu.memory_space<vmem>>, vector<1x1x16xf32>
    %93 = vector.shape_cast %92 : vector<1x1x16xf32> to vector<1x16xf32>
    %94 = vector.broadcast %93 : vector<1x16xf32> to vector<24x16xf32>
    %95 = arith.addf %91, %94 : vector<24x16xf32>
    %c1_55 = arith.constant 1 : index
    %c0_56 = arith.constant 0 : index
    %c0_57 = arith.constant 0 : index
    %96 = vector.load %arg8[%c1_55, %c0_56, %c0_57] : memref<4x64x16xbf16, #tpu.memory_space<vmem>>, vector<1x64x16xbf16>
    %97 = vector.shape_cast %96 : vector<1x64x16xbf16> to vector<64x16xbf16>
    %cst_58 = arith.constant dense<0.000000e+00> : vector<24x16xf32>
    %98 = tpu.matmul %29, %97, %cst_58 {dimension_numbers = #tpu.dot_dimension_numbers<[1], [0], [0], [1], [0, 0, 1, 1], [], []>} : vector<24x64xbf16>, vector<64x16xbf16>, vector<24x16xf32> -> vector<24x16xf32>
    %c1_59 = arith.constant 1 : index
    %c0_60 = arith.constant 0 : index
    %c0_61 = arith.constant 0 : index
    %99 = vector.load %arg9[%c1_59, %c0_60, %c0_61] : memref<4x1x16xf32, #tpu.memory_space<vmem>>, vector<1x1x16xf32>
    %100 = vector.shape_cast %99 : vector<1x1x16xf32> to vector<1x16xf32>
    %101 = vector.broadcast %100 : vector<1x16xf32> to vector<24x16xf32>
    %102 = arith.addf %98, %101 : vector<24x16xf32>
    %103 = arith.truncf %88 : vector<24x16xf32> to vector<24x16xbf16>
    %104 = arith.truncf %95 : vector<24x16xf32> to vector<24x16xbf16>
    %cst_62 = arith.constant dense<0.000000e+00> : vector<24x24xf32>
    %105 = tpu.matmul %103, %104, %cst_62 {dimension_numbers = #tpu.dot_dimension_numbers<[1], [1], [0], [0], [0, 0, 1, 0], [], []>} : vector<24x16xbf16>, vector<24x16xbf16>, vector<24x24xf32> -> vector<24x24xf32>
    %cst_63 = arith.constant 2.500000e-01 : f32
    %106 = vector.broadcast %cst_63 : f32 to vector<24x24xf32>
    %107 = arith.mulf %105, %106 : vector<24x24xf32>
    %cst_64 = arith.constant -1.000000e+30 : f32
    %108 = vector.shape_cast %32 : vector<1x24xi1> to vector<1x24xi1>
    %109 = vector.broadcast %108 : vector<1x24xi1> to vector<24x24xi1>
    %110 = vector.broadcast %cst_64 : f32 to vector<24x24xf32>
    %111 = arith.select %109, %107, %110 : vector<24x24xi1>, vector<24x24xf32>
    %cst_65 = arith.constant dense<0xFF800000> : vector<24xf32>
    %112 = vector.multi_reduction <maximumf>, %111, %cst_65 [1] : vector<24x24xf32> to vector<24xf32>
    %113 = vector.shape_cast %112 : vector<24xf32> to vector<24x1xf32>
    %114 = vector.broadcast %113 : vector<24x1xf32> to vector<24x24xf32>
    %115 = arith.subf %111, %114 : vector<24x24xf32>
    %116 = math.exp %115 : vector<24x24xf32>
    %cst_66 = arith.constant dense<0.000000e+00> : vector<24xf32>
    %117 = vector.multi_reduction <add>, %116, %cst_66 [1] : vector<24x24xf32> to vector<24xf32>
    %118 = vector.shape_cast %117 : vector<24xf32> to vector<24x1xf32>
    %119 = tpu.reciprocal %118 {approx = true} : vector<24x1xf32> -> vector<24x1xf32>
    %120 = vector.broadcast %119 : vector<24x1xf32> to vector<24x24xf32>
    %121 = arith.mulf %116, %120 : vector<24x24xf32>
    %122 = arith.truncf %121 : vector<24x24xf32> to vector<24x24xbf16>
    %123 = arith.truncf %102 : vector<24x16xf32> to vector<24x16xbf16>
    %cst_67 = arith.constant dense<0.000000e+00> : vector<24x16xf32>
    %124 = tpu.matmul %122, %123, %cst_67 {dimension_numbers = #tpu.dot_dimension_numbers<[1], [0], [0], [1], [0, 0, 1, 1], [], []>} : vector<24x24xbf16>, vector<24x16xbf16>, vector<24x16xf32> -> vector<24x16xf32>
    %125 = arith.truncf %124 : vector<24x16xf32> to vector<24x16xbf16>
    %c1_68 = arith.constant 1 : index
    %c0_69 = arith.constant 0 : index
    %c0_70 = arith.constant 0 : index
    %126 = vector.load %arg10[%c1_68, %c0_69, %c0_70] : memref<4x16x64xbf16, #tpu.memory_space<vmem>>, vector<1x16x64xbf16>
    %127 = vector.shape_cast %126 : vector<1x16x64xbf16> to vector<16x64xbf16>
    %cst_71 = arith.constant dense<0.000000e+00> : vector<24x64xf32>
    %128 = tpu.matmul %125, %127, %cst_71 {dimension_numbers = #tpu.dot_dimension_numbers<[1], [0], [0], [1], [0, 0, 1, 1], [], []>} : vector<24x16xbf16>, vector<16x64xbf16>, vector<24x64xf32> -> vector<24x64xf32>
    %129 = arith.addf %81, %128 : vector<24x64xf32>
    %c2 = arith.constant 2 : index
    %c0_72 = arith.constant 0 : index
    %c0_73 = arith.constant 0 : index
    %130 = vector.load %arg4[%c2, %c0_72, %c0_73] : memref<4x64x16xbf16, #tpu.memory_space<vmem>>, vector<1x64x16xbf16>
    %131 = vector.shape_cast %130 : vector<1x64x16xbf16> to vector<64x16xbf16>
    %cst_74 = arith.constant dense<0.000000e+00> : vector<24x16xf32>
    %132 = tpu.matmul %29, %131, %cst_74 {dimension_numbers = #tpu.dot_dimension_numbers<[1], [0], [0], [1], [0, 0, 1, 1], [], []>} : vector<24x64xbf16>, vector<64x16xbf16>, vector<24x16xf32> -> vector<24x16xf32>
    %c2_75 = arith.constant 2 : index
    %c0_76 = arith.constant 0 : index
    %c0_77 = arith.constant 0 : index
    %133 = vector.load %arg5[%c2_75, %c0_76, %c0_77] : memref<4x1x16xf32, #tpu.memory_space<vmem>>, vector<1x1x16xf32>
    %134 = vector.shape_cast %133 : vector<1x1x16xf32> to vector<1x16xf32>
    %135 = vector.broadcast %134 : vector<1x16xf32> to vector<24x16xf32>
    %136 = arith.addf %132, %135 : vector<24x16xf32>
    %c2_78 = arith.constant 2 : index
    %c0_79 = arith.constant 0 : index
    %c0_80 = arith.constant 0 : index
    %137 = vector.load %arg6[%c2_78, %c0_79, %c0_80] : memref<4x64x16xbf16, #tpu.memory_space<vmem>>, vector<1x64x16xbf16>
    %138 = vector.shape_cast %137 : vector<1x64x16xbf16> to vector<64x16xbf16>
    %cst_81 = arith.constant dense<0.000000e+00> : vector<24x16xf32>
    %139 = tpu.matmul %29, %138, %cst_81 {dimension_numbers = #tpu.dot_dimension_numbers<[1], [0], [0], [1], [0, 0, 1, 1], [], []>} : vector<24x64xbf16>, vector<64x16xbf16>, vector<24x16xf32> -> vector<24x16xf32>
    %c2_82 = arith.constant 2 : index
    %c0_83 = arith.constant 0 : index
    %c0_84 = arith.constant 0 : index
    %140 = vector.load %arg7[%c2_82, %c0_83, %c0_84] : memref<4x1x16xf32, #tpu.memory_space<vmem>>, vector<1x1x16xf32>
    %141 = vector.shape_cast %140 : vector<1x1x16xf32> to vector<1x16xf32>
    %142 = vector.broadcast %141 : vector<1x16xf32> to vector<24x16xf32>
    %143 = arith.addf %139, %142 : vector<24x16xf32>
    %c2_85 = arith.constant 2 : index
    %c0_86 = arith.constant 0 : index
    %c0_87 = arith.constant 0 : index
    %144 = vector.load %arg8[%c2_85, %c0_86, %c0_87] : memref<4x64x16xbf16, #tpu.memory_space<vmem>>, vector<1x64x16xbf16>
    %145 = vector.shape_cast %144 : vector<1x64x16xbf16> to vector<64x16xbf16>
    %cst_88 = arith.constant dense<0.000000e+00> : vector<24x16xf32>
    %146 = tpu.matmul %29, %145, %cst_88 {dimension_numbers = #tpu.dot_dimension_numbers<[1], [0], [0], [1], [0, 0, 1, 1], [], []>} : vector<24x64xbf16>, vector<64x16xbf16>, vector<24x16xf32> -> vector<24x16xf32>
    %c2_89 = arith.constant 2 : index
    %c0_90 = arith.constant 0 : index
    %c0_91 = arith.constant 0 : index
    %147 = vector.load %arg9[%c2_89, %c0_90, %c0_91] : memref<4x1x16xf32, #tpu.memory_space<vmem>>, vector<1x1x16xf32>
    %148 = vector.shape_cast %147 : vector<1x1x16xf32> to vector<1x16xf32>
    %149 = vector.broadcast %148 : vector<1x16xf32> to vector<24x16xf32>
    %150 = arith.addf %146, %149 : vector<24x16xf32>
    %151 = arith.truncf %136 : vector<24x16xf32> to vector<24x16xbf16>
    %152 = arith.truncf %143 : vector<24x16xf32> to vector<24x16xbf16>
    %cst_92 = arith.constant dense<0.000000e+00> : vector<24x24xf32>
    %153 = tpu.matmul %151, %152, %cst_92 {dimension_numbers = #tpu.dot_dimension_numbers<[1], [1], [0], [0], [0, 0, 1, 0], [], []>} : vector<24x16xbf16>, vector<24x16xbf16>, vector<24x24xf32> -> vector<24x24xf32>
    %cst_93 = arith.constant 2.500000e-01 : f32
    %154 = vector.broadcast %cst_93 : f32 to vector<24x24xf32>
    %155 = arith.mulf %153, %154 : vector<24x24xf32>
    %cst_94 = arith.constant -1.000000e+30 : f32
    %156 = vector.shape_cast %32 : vector<1x24xi1> to vector<1x24xi1>
    %157 = vector.broadcast %156 : vector<1x24xi1> to vector<24x24xi1>
    %158 = vector.broadcast %cst_94 : f32 to vector<24x24xf32>
    %159 = arith.select %157, %155, %158 : vector<24x24xi1>, vector<24x24xf32>
    %cst_95 = arith.constant dense<0xFF800000> : vector<24xf32>
    %160 = vector.multi_reduction <maximumf>, %159, %cst_95 [1] : vector<24x24xf32> to vector<24xf32>
    %161 = vector.shape_cast %160 : vector<24xf32> to vector<24x1xf32>
    %162 = vector.broadcast %161 : vector<24x1xf32> to vector<24x24xf32>
    %163 = arith.subf %159, %162 : vector<24x24xf32>
    %164 = math.exp %163 : vector<24x24xf32>
    %cst_96 = arith.constant dense<0.000000e+00> : vector<24xf32>
    %165 = vector.multi_reduction <add>, %164, %cst_96 [1] : vector<24x24xf32> to vector<24xf32>
    %166 = vector.shape_cast %165 : vector<24xf32> to vector<24x1xf32>
    %167 = tpu.reciprocal %166 {approx = true} : vector<24x1xf32> -> vector<24x1xf32>
    %168 = vector.broadcast %167 : vector<24x1xf32> to vector<24x24xf32>
    %169 = arith.mulf %164, %168 : vector<24x24xf32>
    %170 = arith.truncf %169 : vector<24x24xf32> to vector<24x24xbf16>
    %171 = arith.truncf %150 : vector<24x16xf32> to vector<24x16xbf16>
    %cst_97 = arith.constant dense<0.000000e+00> : vector<24x16xf32>
    %172 = tpu.matmul %170, %171, %cst_97 {dimension_numbers = #tpu.dot_dimension_numbers<[1], [0], [0], [1], [0, 0, 1, 1], [], []>} : vector<24x24xbf16>, vector<24x16xbf16>, vector<24x16xf32> -> vector<24x16xf32>
    %173 = arith.truncf %172 : vector<24x16xf32> to vector<24x16xbf16>
    %c2_98 = arith.constant 2 : index
    %c0_99 = arith.constant 0 : index
    %c0_100 = arith.constant 0 : index
    %174 = vector.load %arg10[%c2_98, %c0_99, %c0_100] : memref<4x16x64xbf16, #tpu.memory_space<vmem>>, vector<1x16x64xbf16>
    %175 = vector.shape_cast %174 : vector<1x16x64xbf16> to vector<16x64xbf16>
    %cst_101 = arith.constant dense<0.000000e+00> : vector<24x64xf32>
    %176 = tpu.matmul %173, %175, %cst_101 {dimension_numbers = #tpu.dot_dimension_numbers<[1], [0], [0], [1], [0, 0, 1, 1], [], []>} : vector<24x16xbf16>, vector<16x64xbf16>, vector<24x64xf32> -> vector<24x64xf32>
    %177 = arith.addf %129, %176 : vector<24x64xf32>
    %c3 = arith.constant 3 : index
    %c0_102 = arith.constant 0 : index
    %c0_103 = arith.constant 0 : index
    %178 = vector.load %arg4[%c3, %c0_102, %c0_103] : memref<4x64x16xbf16, #tpu.memory_space<vmem>>, vector<1x64x16xbf16>
    %179 = vector.shape_cast %178 : vector<1x64x16xbf16> to vector<64x16xbf16>
    %cst_104 = arith.constant dense<0.000000e+00> : vector<24x16xf32>
    %180 = tpu.matmul %29, %179, %cst_104 {dimension_numbers = #tpu.dot_dimension_numbers<[1], [0], [0], [1], [0, 0, 1, 1], [], []>} : vector<24x64xbf16>, vector<64x16xbf16>, vector<24x16xf32> -> vector<24x16xf32>
    %c3_105 = arith.constant 3 : index
    %c0_106 = arith.constant 0 : index
    %c0_107 = arith.constant 0 : index
    %181 = vector.load %arg5[%c3_105, %c0_106, %c0_107] : memref<4x1x16xf32, #tpu.memory_space<vmem>>, vector<1x1x16xf32>
    %182 = vector.shape_cast %181 : vector<1x1x16xf32> to vector<1x16xf32>
    %183 = vector.broadcast %182 : vector<1x16xf32> to vector<24x16xf32>
    %184 = arith.addf %180, %183 : vector<24x16xf32>
    %c3_108 = arith.constant 3 : index
    %c0_109 = arith.constant 0 : index
    %c0_110 = arith.constant 0 : index
    %185 = vector.load %arg6[%c3_108, %c0_109, %c0_110] : memref<4x64x16xbf16, #tpu.memory_space<vmem>>, vector<1x64x16xbf16>
    %186 = vector.shape_cast %185 : vector<1x64x16xbf16> to vector<64x16xbf16>
    %cst_111 = arith.constant dense<0.000000e+00> : vector<24x16xf32>
    %187 = tpu.matmul %29, %186, %cst_111 {dimension_numbers = #tpu.dot_dimension_numbers<[1], [0], [0], [1], [0, 0, 1, 1], [], []>} : vector<24x64xbf16>, vector<64x16xbf16>, vector<24x16xf32> -> vector<24x16xf32>
    %c3_112 = arith.constant 3 : index
    %c0_113 = arith.constant 0 : index
    %c0_114 = arith.constant 0 : index
    %188 = vector.load %arg7[%c3_112, %c0_113, %c0_114] : memref<4x1x16xf32, #tpu.memory_space<vmem>>, vector<1x1x16xf32>
    %189 = vector.shape_cast %188 : vector<1x1x16xf32> to vector<1x16xf32>
    %190 = vector.broadcast %189 : vector<1x16xf32> to vector<24x16xf32>
    %191 = arith.addf %187, %190 : vector<24x16xf32>
    %c3_115 = arith.constant 3 : index
    %c0_116 = arith.constant 0 : index
    %c0_117 = arith.constant 0 : index
    %192 = vector.load %arg8[%c3_115, %c0_116, %c0_117] : memref<4x64x16xbf16, #tpu.memory_space<vmem>>, vector<1x64x16xbf16>
    %193 = vector.shape_cast %192 : vector<1x64x16xbf16> to vector<64x16xbf16>
    %cst_118 = arith.constant dense<0.000000e+00> : vector<24x16xf32>
    %194 = tpu.matmul %29, %193, %cst_118 {dimension_numbers = #tpu.dot_dimension_numbers<[1], [0], [0], [1], [0, 0, 1, 1], [], []>} : vector<24x64xbf16>, vector<64x16xbf16>, vector<24x16xf32> -> vector<24x16xf32>
    %c3_119 = arith.constant 3 : index
    %c0_120 = arith.constant 0 : index
    %c0_121 = arith.constant 0 : index
    %195 = vector.load %arg9[%c3_119, %c0_120, %c0_121] : memref<4x1x16xf32, #tpu.memory_space<vmem>>, vector<1x1x16xf32>
    %196 = vector.shape_cast %195 : vector<1x1x16xf32> to vector<1x16xf32>
    %197 = vector.broadcast %196 : vector<1x16xf32> to vector<24x16xf32>
    %198 = arith.addf %194, %197 : vector<24x16xf32>
    %199 = arith.truncf %184 : vector<24x16xf32> to vector<24x16xbf16>
    %200 = arith.truncf %191 : vector<24x16xf32> to vector<24x16xbf16>
    %cst_122 = arith.constant dense<0.000000e+00> : vector<24x24xf32>
    %201 = tpu.matmul %199, %200, %cst_122 {dimension_numbers = #tpu.dot_dimension_numbers<[1], [1], [0], [0], [0, 0, 1, 0], [], []>} : vector<24x16xbf16>, vector<24x16xbf16>, vector<24x24xf32> -> vector<24x24xf32>
    %cst_123 = arith.constant 2.500000e-01 : f32
    %202 = vector.broadcast %cst_123 : f32 to vector<24x24xf32>
    %203 = arith.mulf %201, %202 : vector<24x24xf32>
    %cst_124 = arith.constant -1.000000e+30 : f32
    %204 = vector.shape_cast %32 : vector<1x24xi1> to vector<1x24xi1>
    %205 = vector.broadcast %204 : vector<1x24xi1> to vector<24x24xi1>
    %206 = vector.broadcast %cst_124 : f32 to vector<24x24xf32>
    %207 = arith.select %205, %203, %206 : vector<24x24xi1>, vector<24x24xf32>
    %cst_125 = arith.constant dense<0xFF800000> : vector<24xf32>
    %208 = vector.multi_reduction <maximumf>, %207, %cst_125 [1] : vector<24x24xf32> to vector<24xf32>
    %209 = vector.shape_cast %208 : vector<24xf32> to vector<24x1xf32>
    %210 = vector.broadcast %209 : vector<24x1xf32> to vector<24x24xf32>
    %211 = arith.subf %207, %210 : vector<24x24xf32>
    %212 = math.exp %211 : vector<24x24xf32>
    %cst_126 = arith.constant dense<0.000000e+00> : vector<24xf32>
    %213 = vector.multi_reduction <add>, %212, %cst_126 [1] : vector<24x24xf32> to vector<24xf32>
    %214 = vector.shape_cast %213 : vector<24xf32> to vector<24x1xf32>
    %215 = tpu.reciprocal %214 {approx = true} : vector<24x1xf32> -> vector<24x1xf32>
    %216 = vector.broadcast %215 : vector<24x1xf32> to vector<24x24xf32>
    %217 = arith.mulf %212, %216 : vector<24x24xf32>
    %218 = arith.truncf %217 : vector<24x24xf32> to vector<24x24xbf16>
    %219 = arith.truncf %198 : vector<24x16xf32> to vector<24x16xbf16>
    %cst_127 = arith.constant dense<0.000000e+00> : vector<24x16xf32>
    %220 = tpu.matmul %218, %219, %cst_127 {dimension_numbers = #tpu.dot_dimension_numbers<[1], [0], [0], [1], [0, 0, 1, 1], [], []>} : vector<24x24xbf16>, vector<24x16xbf16>, vector<24x16xf32> -> vector<24x16xf32>
    %221 = arith.truncf %220 : vector<24x16xf32> to vector<24x16xbf16>
    %c3_128 = arith.constant 3 : index
    %c0_129 = arith.constant 0 : index
    %c0_130 = arith.constant 0 : index
    %222 = vector.load %arg10[%c3_128, %c0_129, %c0_130] : memref<4x16x64xbf16, #tpu.memory_space<vmem>>, vector<1x16x64xbf16>
    %223 = vector.shape_cast %222 : vector<1x16x64xbf16> to vector<16x64xbf16>
    %cst_131 = arith.constant dense<0.000000e+00> : vector<24x64xf32>
    %224 = tpu.matmul %221, %223, %cst_131 {dimension_numbers = #tpu.dot_dimension_numbers<[1], [0], [0], [1], [0, 0, 1, 1], [], []>} : vector<24x16xbf16>, vector<16x64xbf16>, vector<24x64xf32> -> vector<24x64xf32>
    %225 = arith.addf %177, %224 : vector<24x64xf32>
    %226 = arith.addf %2, %225 : vector<24x64xf32>
    %c0_132 = arith.constant 0 : index
    %c0_133 = arith.constant 0 : index
    %227 = vector.load %arg11[%c0_132, %c0_133] : memref<1x64xf32, #tpu.memory_space<vmem>>, vector<1x64xf32>
    %228 = vector.broadcast %227 : vector<1x64xf32> to vector<24x64xf32>
    %229 = arith.addf %226, %228 : vector<24x64xf32>
    %c0_134 = arith.constant 0 : index
    %c0_135 = arith.constant 0 : index
    %230 = vector.load %arg12[%c0_134, %c0_135] : memref<1x64xf32, #tpu.memory_space<vmem>>, vector<1x64xf32>
    %c0_136 = arith.constant 0 : index
    %c0_137 = arith.constant 0 : index
    %231 = vector.load %arg13[%c0_136, %c0_137] : memref<1x64xf32, #tpu.memory_space<vmem>>, vector<1x64xf32>
    %cst_138 = arith.constant dense<0.000000e+00> : vector<24xf32>
    %232 = vector.multi_reduction <add>, %229, %cst_138 [1] : vector<24x64xf32> to vector<24xf32>
    %233 = vector.shape_cast %232 : vector<24xf32> to vector<24x1xf32>
    %cst_139 = arith.constant 6.400000e+01 : f32
    %234 = vector.broadcast %cst_139 : f32 to vector<24x1xf32>
    %235 = arith.divf %233, %234 : vector<24x1xf32>
    %236 = vector.broadcast %235 : vector<24x1xf32> to vector<24x64xf32>
    %237 = arith.subf %229, %236 : vector<24x64xf32>
    %238 = vector.broadcast %235 : vector<24x1xf32> to vector<24x64xf32>
    %239 = arith.subf %229, %238 : vector<24x64xf32>
    %240 = arith.mulf %237, %239 : vector<24x64xf32>
    %cst_140 = arith.constant dense<0.000000e+00> : vector<24xf32>
    %241 = vector.multi_reduction <add>, %240, %cst_140 [1] : vector<24x64xf32> to vector<24xf32>
    %242 = vector.shape_cast %241 : vector<24xf32> to vector<24x1xf32>
    %cst_141 = arith.constant 6.400000e+01 : f32
    %243 = vector.broadcast %cst_141 : f32 to vector<24x1xf32>
    %244 = arith.divf %242, %243 : vector<24x1xf32>
    %245 = vector.broadcast %235 : vector<24x1xf32> to vector<24x64xf32>
    %246 = arith.subf %229, %245 : vector<24x64xf32>
    %cst_142 = arith.constant 9.99999997E-7 : f32
    %247 = vector.broadcast %cst_142 : f32 to vector<24x1xf32>
    %248 = arith.addf %244, %247 : vector<24x1xf32>
    %249 = math.rsqrt %248 : vector<24x1xf32>
    %250 = vector.broadcast %249 : vector<24x1xf32> to vector<24x64xf32>
    %251 = arith.mulf %246, %250 : vector<24x64xf32>
    %252 = vector.broadcast %230 : vector<1x64xf32> to vector<24x64xf32>
    %253 = arith.mulf %251, %252 : vector<24x64xf32>
    %254 = vector.broadcast %231 : vector<1x64xf32> to vector<24x64xf32>
    %255 = arith.addf %253, %254 : vector<24x64xf32>
    %256 = arith.truncf %255 : vector<24x64xf32> to vector<24x64xbf16>
    %c0_143 = arith.constant 0 : index
    %c0_144 = arith.constant 0 : index
    %257 = vector.load %arg14[%c0_143, %c0_144] : memref<64x256xbf16, #tpu.memory_space<vmem>>, vector<64x256xbf16>
    %cst_145 = arith.constant dense<0.000000e+00> : vector<24x256xf32>
    %258 = tpu.matmul %256, %257, %cst_145 {dimension_numbers = #tpu.dot_dimension_numbers<[1], [0], [0], [1], [0, 0, 1, 1], [], []>} : vector<24x64xbf16>, vector<64x256xbf16>, vector<24x256xf32> -> vector<24x256xf32>
    %c0_146 = arith.constant 0 : index
    %c0_147 = arith.constant 0 : index
    %259 = vector.load %arg15[%c0_146, %c0_147] : memref<1x256xf32, #tpu.memory_space<vmem>>, vector<1x256xf32>
    %260 = vector.broadcast %259 : vector<1x256xf32> to vector<24x256xf32>
    %261 = arith.addf %258, %260 : vector<24x256xf32>
    %262 = arith.mulf %261, %261 : vector<24x256xf32>
    %263 = arith.mulf %261, %262 : vector<24x256xf32>
    %cst_148 = arith.constant 4.471500e-02 : f32
    %264 = vector.broadcast %cst_148 : f32 to vector<24x256xf32>
    %265 = arith.mulf %264, %263 : vector<24x256xf32>
    %266 = arith.addf %261, %265 : vector<24x256xf32>
    %cst_149 = arith.constant 0.797884583 : f32
    %267 = vector.broadcast %cst_149 : f32 to vector<24x256xf32>
    %268 = arith.mulf %267, %266 : vector<24x256xf32>
    %269 = math.tanh %268 : vector<24x256xf32>
    %cst_150 = arith.constant 1.000000e+00 : f32
    %270 = vector.broadcast %cst_150 : f32 to vector<24x256xf32>
    %271 = arith.addf %270, %269 : vector<24x256xf32>
    %cst_151 = arith.constant 5.000000e-01 : f32
    %272 = vector.broadcast %cst_151 : f32 to vector<24x256xf32>
    %273 = arith.mulf %272, %271 : vector<24x256xf32>
    %274 = arith.mulf %261, %273 : vector<24x256xf32>
    %275 = arith.truncf %274 : vector<24x256xf32> to vector<24x256xbf16>
    %c0_152 = arith.constant 0 : index
    %c0_153 = arith.constant 0 : index
    %276 = vector.load %arg16[%c0_152, %c0_153] : memref<256x64xbf16, #tpu.memory_space<vmem>>, vector<256x64xbf16>
    %cst_154 = arith.constant dense<0.000000e+00> : vector<24x64xf32>
    %277 = tpu.matmul %275, %276, %cst_154 {dimension_numbers = #tpu.dot_dimension_numbers<[1], [0], [0], [1], [0, 0, 1, 1], [], []>} : vector<24x256xbf16>, vector<256x64xbf16>, vector<24x64xf32> -> vector<24x64xf32>
    %c0_155 = arith.constant 0 : index
    %c0_156 = arith.constant 0 : index
    %278 = vector.load %arg17[%c0_155, %c0_156] : memref<1x64xf32, #tpu.memory_space<vmem>>, vector<1x64xf32>
    %279 = vector.broadcast %278 : vector<1x64xf32> to vector<24x64xf32>
    %280 = arith.addf %277, %279 : vector<24x64xf32>
    %281 = arith.addf %229, %280 : vector<24x64xf32>
    %282 = arith.truncf %281 : vector<24x64xf32> to vector<24x64xbf16>
    %c0_157 = arith.constant 0 : index
    %c0_158 = arith.constant 0 : index
    %c0_159 = arith.constant 0 : index
    %283 = vector.load %arg18[%c0_157, %c0_158, %c0_159] : memref<1x24x64xbf16, #tpu.memory_space<vmem>>, vector<1x24x64xbf16>
    %284 = vector.shape_cast %283 : vector<1x24x64xbf16> to vector<24x64xbf16>
    %285 = vector.shape_cast %282 : vector<24x64xbf16> to vector<1x24x64xbf16>
    tpu.vector_store %arg18[%c0_157, %c0_158, %c0_159], %285 {strides = array<i32>} : memref<1x24x64xbf16, #tpu.memory_space<vmem>>, vector<1x24x64xbf16>,
    return
  }
  func.func @transform_0(%arg0: i32) -> (i32, i32, i32) {
    %c0_i32 = arith.constant 0 : i32
    %c0_i32_0 = arith.constant 0 : i32
    %c0_i32_1 = arith.constant 0 : i32
    return %arg0, %c0_i32, %c0_i32_0 : i32, i32, i32
  }
  func.func @transform_1(%arg0: i32) -> (i32, i32) {
    %c0_i32 = arith.constant 0 : i32
    %c0_i32_0 = arith.constant 0 : i32
    %c0_i32_1 = arith.constant 0 : i32
    return %c0_i32, %c0_i32_0 : i32, i32
  }
  func.func @transform_2(%arg0: i32) -> (i32, i32) {
    %c0_i32 = arith.constant 0 : i32
    %c0_i32_0 = arith.constant 0 : i32
    %c0_i32_1 = arith.constant 0 : i32
    return %c0_i32, %c0_i32_0 : i32, i32
  }
  func.func @transform_3(%arg0: i32) -> (i32, i32, i32) {
    %c0_i32 = arith.constant 0 : i32
    %c0_i32_0 = arith.constant 0 : i32
    %c0_i32_1 = arith.constant 0 : i32
    %c0_i32_2 = arith.constant 0 : i32
    return %c0_i32, %c0_i32_0, %c0_i32_1 : i32, i32, i32
  }
  func.func @transform_4(%arg0: i32) -> (i32, i32, i32) {
    %c0_i32 = arith.constant 0 : i32
    %c0_i32_0 = arith.constant 0 : i32
    %c0_i32_1 = arith.constant 0 : i32
    %c0_i32_2 = arith.constant 0 : i32
    return %c0_i32, %c0_i32_0, %c0_i32_1 : i32, i32, i32
  }
  func.func @transform_5(%arg0: i32) -> (i32, i32, i32) {
    %c0_i32 = arith.constant 0 : i32
    %c0_i32_0 = arith.constant 0 : i32
    %c0_i32_1 = arith.constant 0 : i32
    %c0_i32_2 = arith.constant 0 : i32
    return %c0_i32, %c0_i32_0, %c0_i32_1 : i32, i32, i32
  }
  func.func @transform_6(%arg0: i32) -> (i32, i32, i32) {
    %c0_i32 = arith.constant 0 : i32
    %c0_i32_0 = arith.constant 0 : i32
    %c0_i32_1 = arith.constant 0 : i32
    %c0_i32_2 = arith.constant 0 : i32
    return %c0_i32, %c0_i32_0, %c0_i32_1 : i32, i32, i32
  }
  func.func @transform_7(%arg0: i32) -> (i32, i32, i32) {
    %c0_i32 = arith.constant 0 : i32
    %c0_i32_0 = arith.constant 0 : i32
    %c0_i32_1 = arith.constant 0 : i32
    %c0_i32_2 = arith.constant 0 : i32
    return %c0_i32, %c0_i32_0, %c0_i32_1 : i32, i32, i32
  }
  func.func @transform_8(%arg0: i32) -> (i32, i32, i32) {
    %c0_i32 = arith.constant 0 : i32
    %c0_i32_0 = arith.constant 0 : i32
    %c0_i32_1 = arith.constant 0 : i32
    %c0_i32_2 = arith.constant 0 : i32
    return %c0_i32, %c0_i32_0, %c0_i32_1 : i32, i32, i32
  }
  func.func @transform_9(%arg0: i32) -> (i32, i32, i32) {
    %c0_i32 = arith.constant 0 : i32
    %c0_i32_0 = arith.constant 0 : i32
    %c0_i32_1 = arith.constant 0 : i32
    %c0_i32_2 = arith.constant 0 : i32
    return %c0_i32, %c0_i32_0, %c0_i32_1 : i32, i32, i32
  }
  func.func @transform_10(%arg0: i32) -> (i32, i32) {
    %c0_i32 = arith.constant 0 : i32
    %c0_i32_0 = arith.constant 0 : i32
    %c0_i32_1 = arith.constant 0 : i32
    return %c0_i32, %c0_i32_0 : i32, i32
  }
  func.func @transform_11(%arg0: i32) -> (i32, i32) {
    %c0_i32 = arith.constant 0 : i32
    %c0_i32_0 = arith.constant 0 : i32
    %c0_i32_1 = arith.constant 0 : i32
    return %c0_i32, %c0_i32_0 : i32, i32
  }
  func.func @transform_12(%arg0: i32) -> (i32, i32) {
    %c0_i32 = arith.constant 0 : i32
    %c0_i32_0 = arith.constant 0 : i32
    %c0_i32_1 = arith.constant 0 : i32
    return %c0_i32, %c0_i32_0 : i32, i32
  }
  func.func @transform_13(%arg0: i32) -> (i32, i32) {
    %c0_i32 = arith.constant 0 : i32
    %c0_i32_0 = arith.constant 0 : i32
    %c0_i32_1 = arith.constant 0 : i32
    return %c0_i32, %c0_i32_0 : i32, i32
  }
  func.func @transform_14(%arg0: i32) -> (i32, i32) {
    %c0_i32 = arith.constant 0 : i32
    %c0_i32_0 = arith.constant 0 : i32
    %c0_i32_1 = arith.constant 0 : i32
    return %c0_i32, %c0_i32_0 : i32, i32
  }
  func.func @transform_15(%arg0: i32) -> (i32, i32) {
    %c0_i32 = arith.constant 0 : i32
    %c0_i32_0 = arith.constant 0 : i32
    %c0_i32_1 = arith.constant 0 : i32
    return %c0_i32, %c0_i32_0 : i32, i32
  }
  func.func @transform_16(%arg0: i32) -> (i32, i32) {
    %c0_i32 = arith.constant 0 : i32
    %c0_i32_0 = arith.constant 0 : i32
    %c0_i32_1 = arith.constant 0 : i32
    return %c0_i32, %c0_i32_0 : i32, i32
  }
  func.func @transform_17(%arg0: i32) -> (i32, i32, i32) {
    %c0_i32 = arith.constant 0 : i32
    %c0_i32_0 = arith.constant 0 : i32
    %c0_i32_1 = arith.constant 0 : i32
    return %arg0, %c0_i32, %c0_i32_0 : i32, i32, i32
  }
}

module attributes {stable_mosaic.version = 11 : i64} {
  func.func @_tail_kernel(%arg0: i32, %arg1: memref<2x24x64xbf16, #tpu.memory_space<vmem>>, %arg2: memref<1x1x64xf32, #tpu.memory_space<vmem>>, %arg3: memref<1x1x64xf32, #tpu.memory_space<vmem>>, %arg4: memref<64x32xbf16, #tpu.memory_space<vmem>>, %arg5: memref<1x32xf32, #tpu.memory_space<vmem>>, %arg6: memref<32x16xbf16, #tpu.memory_space<vmem>>, %arg7: memref<1x16xf32, #tpu.memory_space<vmem>>, %arg8: memref<2x16xf32, #tpu.memory_space<vmem>>, %arg9: memref<2x32xf32, #tpu.memory_space<vmem>>) attributes {dimension_semantics = [#tpu.dimension_semantics<arbitrary>], iteration_bounds = array<i64: 1>, scalar_prefetch = 0 : i64, scratch_operands = 0 : i64, tpu.core_type = #tpu.core_type<tc>, window_params = [{pipeline_mode = #tpu.pipeline_mode<synchronous>, transform_indices = @transform_0, window_bounds = array<i64: 2, 24, 64>}, {pipeline_mode = #tpu.pipeline_mode<synchronous>, transform_indices = @transform_1, window_bounds = array<i64: 1, 1, 64>}, {pipeline_mode = #tpu.pipeline_mode<synchronous>, transform_indices = @transform_2, window_bounds = array<i64: 1, 1, 64>}, {pipeline_mode = #tpu.pipeline_mode<synchronous>, transform_indices = @transform_3, window_bounds = array<i64: 64, 32>}, {pipeline_mode = #tpu.pipeline_mode<synchronous>, transform_indices = @transform_4, window_bounds = array<i64: 1, 32>}, {pipeline_mode = #tpu.pipeline_mode<synchronous>, transform_indices = @transform_5, window_bounds = array<i64: 32, 16>}, {pipeline_mode = #tpu.pipeline_mode<synchronous>, transform_indices = @transform_6, window_bounds = array<i64: 1, 16>}, {pipeline_mode = #tpu.pipeline_mode<synchronous>, transform_indices = @transform_7, window_bounds = array<i64: 2, 16>}, {pipeline_mode = #tpu.pipeline_mode<synchronous>, transform_indices = @transform_8, window_bounds = array<i64: 2, 32>}]} {
    %c0 = arith.constant 0 : index
    %c0_0 = arith.constant 0 : index
    %c0_1 = arith.constant 0 : index
    %0 = vector.load %arg1[%c0, %c0_0, %c0_1] : memref<2x24x64xbf16, #tpu.memory_space<vmem>>, vector<2x24x64xbf16>
    %1 = arith.extf %0 : vector<2x24x64xbf16> to vector<2x24x64xf32>
    %cst = arith.constant dense<0.000000e+00> : vector<2x24xf32>
    %2 = vector.multi_reduction <add>, %1, %cst [2] : vector<2x24x64xf32> to vector<2x24xf32>
    %3 = vector.shape_cast %2 : vector<2x24xf32> to vector<2x24x1xf32>
    %cst_2 = arith.constant 6.400000e+01 : f32
    %4 = vector.broadcast %cst_2 : f32 to vector<2x24x1xf32>
    %5 = arith.divf %3, %4 : vector<2x24x1xf32>
    %6 = vector.broadcast %5 : vector<2x24x1xf32> to vector<2x24x64xf32>
    %7 = arith.subf %1, %6 : vector<2x24x64xf32>
    %8 = vector.broadcast %5 : vector<2x24x1xf32> to vector<2x24x64xf32>
    %9 = arith.subf %1, %8 : vector<2x24x64xf32>
    %10 = arith.mulf %7, %9 : vector<2x24x64xf32>
    %cst_3 = arith.constant dense<0.000000e+00> : vector<2x24xf32>
    %11 = vector.multi_reduction <add>, %10, %cst_3 [2] : vector<2x24x64xf32> to vector<2x24xf32>
    %12 = vector.shape_cast %11 : vector<2x24xf32> to vector<2x24x1xf32>
    %cst_4 = arith.constant 6.400000e+01 : f32
    %13 = vector.broadcast %cst_4 : f32 to vector<2x24x1xf32>
    %14 = arith.divf %12, %13 : vector<2x24x1xf32>
    %15 = vector.broadcast %5 : vector<2x24x1xf32> to vector<2x24x64xf32>
    %16 = arith.subf %1, %15 : vector<2x24x64xf32>
    %cst_5 = arith.constant 9.99999997E-7 : f32
    %17 = vector.broadcast %cst_5 : f32 to vector<2x24x1xf32>
    %18 = arith.addf %14, %17 : vector<2x24x1xf32>
    %19 = math.rsqrt %18 : vector<2x24x1xf32>
    %20 = vector.broadcast %19 : vector<2x24x1xf32> to vector<2x24x64xf32>
    %21 = arith.mulf %16, %20 : vector<2x24x64xf32>
    %c0_6 = arith.constant 0 : index
    %c0_7 = arith.constant 0 : index
    %c0_8 = arith.constant 0 : index
    %22 = vector.load %arg2[%c0_6, %c0_7, %c0_8] : memref<1x1x64xf32, #tpu.memory_space<vmem>>, vector<1x1x64xf32>
    %23 = vector.broadcast %22 : vector<1x1x64xf32> to vector<2x24x64xf32>
    %24 = arith.mulf %21, %23 : vector<2x24x64xf32>
    %c0_9 = arith.constant 0 : index
    %c0_10 = arith.constant 0 : index
    %c0_11 = arith.constant 0 : index
    %25 = vector.load %arg3[%c0_9, %c0_10, %c0_11] : memref<1x1x64xf32, #tpu.memory_space<vmem>>, vector<1x1x64xf32>
    %26 = vector.broadcast %25 : vector<1x1x64xf32> to vector<2x24x64xf32>
    %27 = arith.addf %24, %26 : vector<2x24x64xf32>
    %28 = tpu.iota {dimensions = array<i32: 1>} : vector<1x24x1xi32>
    %c17_i32 = arith.constant 17 : i32
    %29 = vector.broadcast %c17_i32 : i32 to vector<1x24x1xi32>
    %30 = arith.cmpi slt, %28, %29 : vector<1x24x1xi32>
    %31 = arith.extui %30 : vector<1x24x1xi1> to vector<1x24x1xi32>
    %32 = arith.sitofp %31 : vector<1x24x1xi32> to vector<1x24x1xf32>
    %33 = vector.broadcast %32 : vector<1x24x1xf32> to vector<2x24x64xf32>
    %34 = arith.mulf %27, %33 : vector<2x24x64xf32>
    %cst_12 = arith.constant dense<0.000000e+00> : vector<2x64xf32>
    %35 = vector.multi_reduction <add>, %34, %cst_12 [1] : vector<2x24x64xf32> to vector<2x64xf32>
    %cst_13 = arith.constant 0.0588235296 : f32
    %36 = vector.broadcast %cst_13 : f32 to vector<2x64xf32>
    %37 = arith.mulf %35, %36 : vector<2x64xf32>
    %38 = arith.truncf %37 : vector<2x64xf32> to vector<2x64xbf16>
    %c0_14 = arith.constant 0 : index
    %c0_15 = arith.constant 0 : index
    %39 = vector.load %arg4[%c0_14, %c0_15] : memref<64x32xbf16, #tpu.memory_space<vmem>>, vector<64x32xbf16>
    %cst_16 = arith.constant dense<0.000000e+00> : vector<2x32xf32>
    %40 = tpu.matmul %38, %39, %cst_16 {dimension_numbers = #tpu.dot_dimension_numbers<[1], [0], [0], [1], [0, 0, 1, 1], [], []>} : vector<2x64xbf16>, vector<64x32xbf16>, vector<2x32xf32> -> vector<2x32xf32>
    %c0_17 = arith.constant 0 : index
    %c0_18 = arith.constant 0 : index
    %41 = vector.load %arg5[%c0_17, %c0_18] : memref<1x32xf32, #tpu.memory_space<vmem>>, vector<1x32xf32>
    %42 = vector.broadcast %41 : vector<1x32xf32> to vector<2x32xf32>
    %43 = arith.addf %40, %42 : vector<2x32xf32>
    %44 = arith.truncf %43 : vector<2x32xf32> to vector<2x32xbf16>
    %c0_19 = arith.constant 0 : index
    %c0_20 = arith.constant 0 : index
    %45 = vector.load %arg6[%c0_19, %c0_20] : memref<32x16xbf16, #tpu.memory_space<vmem>>, vector<32x16xbf16>
    %cst_21 = arith.constant dense<0.000000e+00> : vector<2x16xf32>
    %46 = tpu.matmul %44, %45, %cst_21 {dimension_numbers = #tpu.dot_dimension_numbers<[1], [0], [0], [1], [0, 0, 1, 1], [], []>} : vector<2x32xbf16>, vector<32x16xbf16>, vector<2x16xf32> -> vector<2x16xf32>
    %c0_22 = arith.constant 0 : index
    %c0_23 = arith.constant 0 : index
    %47 = vector.load %arg7[%c0_22, %c0_23] : memref<1x16xf32, #tpu.memory_space<vmem>>, vector<1x16xf32>
    %48 = vector.broadcast %47 : vector<1x16xf32> to vector<2x16xf32>
    %49 = arith.addf %46, %48 : vector<2x16xf32>
    %c0_24 = arith.constant 0 : index
    %c0_25 = arith.constant 0 : index
    %50 = vector.load %arg9[%c0_24, %c0_25] : memref<2x32xf32, #tpu.memory_space<vmem>>, vector<2x32xf32>
    tpu.vector_store %arg9[%c0_24, %c0_25], %43 {strides = array<i32>} : memref<2x32xf32, #tpu.memory_space<vmem>>, vector<2x32xf32>,
    %c0_26 = arith.constant 0 : index
    %c0_27 = arith.constant 0 : index
    %51 = vector.load %arg8[%c0_26, %c0_27] : memref<2x16xf32, #tpu.memory_space<vmem>>, vector<2x16xf32>
    tpu.vector_store %arg8[%c0_26, %c0_27], %49 {strides = array<i32>} : memref<2x16xf32, #tpu.memory_space<vmem>>, vector<2x16xf32>,
    return
  }
  func.func @transform_0(%arg0: i32) -> (i32, i32, i32) {
    %c0_i32 = arith.constant 0 : i32
    %c0_i32_0 = arith.constant 0 : i32
    %c0_i32_1 = arith.constant 0 : i32
    %c0_i32_2 = arith.constant 0 : i32
    return %c0_i32, %c0_i32_0, %c0_i32_1 : i32, i32, i32
  }
  func.func @transform_1(%arg0: i32) -> (i32, i32, i32) {
    %c0_i32 = arith.constant 0 : i32
    %c0_i32_0 = arith.constant 0 : i32
    %c0_i32_1 = arith.constant 0 : i32
    %c0_i32_2 = arith.constant 0 : i32
    return %c0_i32, %c0_i32_0, %c0_i32_1 : i32, i32, i32
  }
  func.func @transform_2(%arg0: i32) -> (i32, i32, i32) {
    %c0_i32 = arith.constant 0 : i32
    %c0_i32_0 = arith.constant 0 : i32
    %c0_i32_1 = arith.constant 0 : i32
    %c0_i32_2 = arith.constant 0 : i32
    return %c0_i32, %c0_i32_0, %c0_i32_1 : i32, i32, i32
  }
  func.func @transform_3(%arg0: i32) -> (i32, i32) {
    %c0_i32 = arith.constant 0 : i32
    %c0_i32_0 = arith.constant 0 : i32
    %c0_i32_1 = arith.constant 0 : i32
    return %c0_i32, %c0_i32_0 : i32, i32
  }
  func.func @transform_4(%arg0: i32) -> (i32, i32) {
    %c0_i32 = arith.constant 0 : i32
    %c0_i32_0 = arith.constant 0 : i32
    %c0_i32_1 = arith.constant 0 : i32
    return %c0_i32, %c0_i32_0 : i32, i32
  }
  func.func @transform_5(%arg0: i32) -> (i32, i32) {
    %c0_i32 = arith.constant 0 : i32
    %c0_i32_0 = arith.constant 0 : i32
    %c0_i32_1 = arith.constant 0 : i32
    return %c0_i32, %c0_i32_0 : i32, i32
  }
  func.func @transform_6(%arg0: i32) -> (i32, i32) {
    %c0_i32 = arith.constant 0 : i32
    %c0_i32_0 = arith.constant 0 : i32
    %c0_i32_1 = arith.constant 0 : i32
    return %c0_i32, %c0_i32_0 : i32, i32
  }
  func.func @transform_7(%arg0: i32) -> (i32, i32) {
    %c0_i32 = arith.constant 0 : i32
    %c0_i32_0 = arith.constant 0 : i32
    %c0_i32_1 = arith.constant 0 : i32
    return %c0_i32, %c0_i32_0 : i32, i32
  }
  func.func @transform_8(%arg0: i32) -> (i32, i32) {
    %c0_i32 = arith.constant 0 : i32
    %c0_i32_0 = arith.constant 0 : i32
    %c0_i32_1 = arith.constant 0 : i32
    return %c0_i32, %c0_i32_0 : i32, i32
  }
}

</mosaic_0001>

<bundles_post_ra>
// kernel: vit_forward.4
= control target key start
LH: loop header
LB: loop body
LE: loop exit
PB: predicated region body
PF: predicated region fallthrough
CT: control target
= control target key end

     0   :  { %s599_s15 = smov 0   ;;  %s697_s0 = inlined_call_operand.vmem [shape: bf16[2,24,192], index: 0, kind: input, shape index: {}]   ;;  %s698_s1 = inlined_call_operand.vmem [shape: bf16[192,64], index: 1, kind: input, shape index: {}]   ;;  %s699_s2 = inlined_call_operand.vmem [shape: f32[1,64], index: 2, kind: input, shape index: {}]   ;;  %s700_s3 = inlined_call_operand.vmem [shape: f32[1,24,64], index: 3, kind: input, shape index: {}]   ;;  %s701_s4 = inlined_call_operand.vmem [shape: bf16[2,24,64], index: 4, kind: output, shape index: {}]  }
   0x1 LB: > { %s475_s16 = sadd.s32 4294967295, %s570_s15   ;;  %p479_p0 = scmp.ge.s32.totalorder %s570_s15, 1  ;;  %s570_s15 = sphi %s599_s15, %s14_s15  }
   0x2   : > { %p162_p1 = scmp.lt.s32.totalorder %s570_s15, 3 }
   0x4   : > { %p163_p2 = pnand %p479_p0, %p162_p1 }
   0x5   : > { %v547_v0 = vld [vmem:[%s698_s1] sm:$0xff] (!%p163_p2)   ;;  %v572_v1 = vmov (!%p163_p2), 0   ;;  %p188_p3 = scmp.lt.s32.totalorder (!%p163_p2), %s475_s16, 1  ;;  %v548_v2 = vld [vmem:[%s698_s1 + $0x8] sm:$0xff] (!%p163_p2)   ;;  %v549_v3 = vld [vmem:[%s698_s1 + $0x10] sm:$0xff] (!%p163_p2)   ;;  %vm342_vm0 = vcmask (!%p163_p2), 523264   ;;  %v226_v18 = vlaneseq (!%p163_p2) }
   0x6   : > { %166 = sbr.rel (%p163_p2) target bundleno = 275 (0x113), region = 36  ;;  %349 = vmatprep.subr.bf16.mxu0 (!%p163_p2), %v572_v1  ;;  %511 = vmatprep.subr.bf16.mxu1 (!%p163_p2), %v572_v1  ;;  %v550_v4 = vld [vmem:[%s698_s1 + $0x18] sm:$0xff] (!%p163_p2)   ;;  %v551_v7 = vld [vmem:[%s698_s1 + $0x20] sm:$0xff] (!%p163_p2)   ;;  %v552_v9 = vld [vmem:[%s698_s1 + $0x28] sm:$0xff] (!%p163_p2)   ;;  %v573_v21 = vmov (!%p163_p2), 0.0   ;;  %vm416_vm3 = vcmask (!%p163_p2), 519168  }
   0x7   : > { %350 = vmatpush1.bf16.msra.mxu0 (!%p163_p2), %v547_v0  ;;  %523 = vmatpush1.bf16.msra.mxu1 (!%p163_p2), %v547_v0  ;;  %v553_v10 = vld [vmem:[%s698_s1 + $0x30] sm:$0xff] (!%p163_p2)   ;;  %v554_v11 = vld [vmem:[%s698_s1 + $0x38] sm:$0xff] (!%p163_p2)   ;;  %v555_v12 = vld [vmem:[%s698_s1 + $0x40] sm:$0xff] (!%p163_p2)   ;;  %v227_v19 = vshrl.u32 (!%p163_p2), %v226_v18, 7 }
   0x8   : > { %351 = vmatprep.subr.bf16.mxu0 (!%p163_p2), %v572_v1  ;;  %512 = vmatprep.subr.bf16.mxu1 (!%p163_p2), %v572_v1  ;;  %v556_v13 = vld [vmem:[%s698_s1 + $0x48] sm:$0xff] (!%p163_p2)   ;;  %v557_v14 = vld [vmem:[%s698_s1 + $0x50] sm:$0xff] (!%p163_p2)   ;;  %v558_v15 = vld [vmem:[%s698_s1 + $0x58] sm:$0xff] (!%p163_p2)  }
   0x9   : > { %v229_v20 = vadd.s32 (!%p163_p2), 16, %v227_v19  ;;  %vm230_vm1 = vcmp.ge.s32.totalorder (!%p163_p2), %v227_v19, 1  ;;  %v484_v23 = vld [vmem:[%s699_s2] ss:$0 sm:$0xff] (!%p163_p2)  ;;  %v399_v30 = vld [vmem:[%s700_s3 + $0x10] sm:$0xff] (!%p163_p2)  ;;  %v398_v36 = vld [vmem:[%s700_s3 + $0x8] sm:$0xff] (!%p163_p2) }
   0xa   : > { %v482_v22 = vsel (!%p163_p2), %vm230_vm1, 1.0, %v573_v21  ;;  %v397_v28 = vld [vmem:[%s700_s3] sm:$0xff] (!%p163_p2) }
   0xb   : > { %352 = vmatpush1.bf16.msra.mxu0 (!%p163_p2), %v548_v2  ;;  %524 = vmatpush1.bf16.msra.mxu1 (!%p163_p2), %v548_v2  ;;  %vm235_vm2 = vcmp.le.s32.totalorder (!%p163_p2), %v229_v20, 16  ;;  %v252_v25 = vmul.f32 (!%p163_p2), %v484_v23, %v482_v22 }
   0xc   : > { %353 = vmatprep.subr.bf16.mxu0 (!%p163_p2), %v572_v1  ;;  %513 = vmatprep.subr.bf16.mxu1 (!%p163_p2), %v572_v1  ;;  %v483_v24 = vsel (!%p163_p2), %vm235_vm2, 1.0, %v573_v21 }
   0xd   : > { %s703_s16 = smov (!%p188_p3, %s475_s16), 1  ;;  %v254_v26 = vmul.f32 %v484_v23, %v483_v24 }
   0xe   : > { %s535_s23 = smul.u32 24, %s703_s16 }
   0xf   : > { %354 = vmatpush1.bf16.msra.mxu0 %v549_v3  ;;  %525 = vmatpush1.bf16.msra.mxu1 %v549_v3 }
  0x10   : > { %s631_s28 = scalar_lea.vmem %s697_s0, %s535_s23  ;;  %355 = vmatprep.subr.bf16.mxu0 %v572_v1  ;;  %514 = vmatprep.subr.bf16.mxu1 %v572_v1  ;;  %s536_s23 = smul.u32 12, %s703_s16 }
  0x11   : > { %v561_v5 = vld [vmem:[%s631_s28 + $0x4] ss:$8 sps:$4 sm:$0xff]   ;;  %v201_v6 = vld [vmem:[%s631_s28 + $0x10] sm:$0xff]  ;;  %v559_v16 = vld [vmem:[%s631_s28] ss:$8 sps:$4 sm:$0xff]  }
  0x12   : > { %v488_v8 = vcombine.high %v201_v6, %v201_v6  ;;  %501 = vmatprep.mubr.msk.bf16.mxu0 %vm342_vm0, %v561_v5  ;;  %v487_v17 = vcombine.low %v201_v6, %v201_v6  ;;  %s197_s5 = scalar_lea.vmem %s701_s4, %s536_s23 }
  0x13   : > { %356 = vmatpush1.bf16.msra.mxu0 %v550_v4  ;;  %526 = vmatpush1.bf16.msra.mxu1 %v550_v4 }
  0x14   : > { %357 = vmatprep.subr.bf16.mxu0 %v572_v1  ;;  %515 = vmatprep.subr.bf16.mxu1 %v572_v1 }
  0x15   : > { %502 = vmatprep.mubr.msk.bf16.mxu1 %vm342_vm0, %v488_v8 }
  0x17   : > { %358 = vmatpush1.bf16.msra.mxu0 %v551_v7  ;;  %527 = vmatpush1.bf16.msra.mxu1 %v551_v7 }
  0x18   : > { %359 = vmatprep.subr.bf16.mxu0 %v572_v1  ;;  %516 = vmatprep.subr.bf16.mxu1 %v572_v1 }
  0x1b   : > { %360 = vmatpush1.bf16.msra.mxu0 %v552_v9  ;;  %528 = vmatpush1.bf16.msra.mxu1 %v552_v9 }
  0x1c   : > { %361 = vmatprep.subr.bf16.mxu0 %v572_v1  ;;  %517 = vmatprep.subr.bf16.mxu1 %v572_v1 }
  0x1f   : > { %362 = vmatpush1.bf16.msra.mxu0 %v553_v10  ;;  %529 = vmatpush1.bf16.msra.mxu1 %v553_v10 }
  0x20   : > { %363 = vmatprep.subr.bf16.mxu0 %v572_v1  ;;  %518 = vmatprep.subr.bf16.mxu1 %v572_v1 }
  0x23   : > { %364 = vmatpush1.bf16.msra.mxu0 %v554_v11  ;;  %530 = vmatpush1.bf16.msra.mxu1 %v554_v11 }
  0x24   : > { %365 = vmatprep.subr.bf16.mxu0 %v572_v1  ;;  %519 = vmatprep.subr.bf16.mxu1 %v572_v1 }
  0x27   : > { %366 = vmatpush1.bf16.msra.mxu0 %v555_v12  ;;  %531 = vmatpush1.bf16.msra.mxu1 %v555_v12 }
  0x28   : > { %367 = vmatprep.subr.bf16.mxu0 %v572_v1  ;;  %520 = vmatprep.subr.bf16.mxu1 %v572_v1 }
  0x2b   : > { %368 = vmatpush1.bf16.msra.mxu0 %v556_v13  ;;  %532 = vmatpush1.bf16.msra.mxu1 %v556_v13 }
  0x2c   : > { %369 = vmatprep.subr.bf16.mxu0 %v572_v1  ;;  %521 = vmatprep.subr.bf16.mxu1 %v572_v1 }
  0x2f   : > { %370 = vmatpush1.bf16.msra.mxu0 %v557_v14  ;;  %533 = vmatpush1.bf16.msra.mxu1 %v557_v14 }
  0x30   : > { %371 = vmatprep.subr.bf16.mxu0 %v572_v1  ;;  %522 = vmatprep.subr.bf16.mxu1 %v572_v1 }
  0x33   : > { %372 = vmatpush1.bf16.msra.mxu0 %v558_v15  ;;  %534 = vmatpush1.bf16.msra.mxu1 %v558_v15 }
  0x36   : > { %382 = vmatmul.mubr.bf16.vlgmr.msra.gmra.mrb[0].mxu0 %v559_v16  ;;  %390 = vmatmul.mubr.bf16.vlgmr.msra.gmra.mrb[0].mxu1 %v487_v17 }
 0x109   : > { %v383_v27 = vpop.f32.mrb[0].mxu0  ;;  %v391_v29 = vpop.f32.mrb[0].mxu1 }
 0x10a   : > { %v384_v31 = vadd.f32 %v383_v27, %v252_v25  ;;  %v392_v32 = vadd.f32 %v391_v29, %v254_v26  ;;  %v385_v33 = vpop.f32.mrb[1].mxu0  ;;  %v393_v34 = vpop.f32.mrb[1].mxu1 }
 0x10b   : > { %v386_v35 = vpop.f32.mrb[2].mxu0  ;;  %v394_v37 = vpop.f32.mrb[2].mxu1 }
 0x10c   : > { %v400_v38 = vadd.f32 %v397_v28, %v384_v31  ;;  %v402_v39 = vadd.f32 %v399_v30, %v392_v32  ;;  %v387_v40 = vadd.f32 %v484_v23, %v386_v35  ;;  %v388_v41 = vpop.f32.mrb[3].mxu0  ;;  %v395_v42 = vpop.f32.mrb[3].mxu1 }
 0x10e   : > { %v508_v43 = vpack.c.bf16 %v400_v38, %v400_v38  ;;  %v510_v44 = vpack.c.bf16 %v402_v39, %v402_v39  ;;  %v401_v45 = vadd.f32 %v398_v36, %v387_v40 }
 0x110   : > { %417 = vst.msk [vmem:[%s197_s5] sm:$0xf] %vm416_vm3, %v508_v43  ;;  %419 = vst.msk [vmem:[%s197_s5 + $0x8] sm:$0xf] %vm416_vm3, %v510_v44  ;;  %v509_v46 = vpack.c.bf16 %v401_v45, %v401_v45 }
 0x112   : > { %418 = vst.msk [vmem:[%s197_s5 + $0x4] sm:$0xf] %vm416_vm3, %v509_v46 }
 0x113 PF: > { %s14_s15 = sadd.s32 1, %s570_s15  }
 0x114   : > { %p11_p4 = scmp.ge.s32.totalorder %s14_s15, 4  }
 0x116   :  { %13 = sbr.rel (!%p11_p4) target bundleno = 1 (0x1), region = 66 }

// kernel: vit_forward.7
= control target key start
LH: loop header
LB: loop body
LE: loop exit
PB: predicated region body
PF: predicated region fallthrough
CT: control target
= control target key end

     0   :  { %14 = vsyncpa [#allocation3], 0  ;;  %vm43_vm0 = vcmask 523264   ;;  %s678_s0 = inlined_call_operand.vmem [shape: bf16[2,24,64], index: 0, kind: input, shape index: {}]   ;;  %s679_s1 = inlined_call_operand.vmem [shape: f32[1,1,64], index: 1, kind: input, shape index: {}]   ;;  %s680_s2 = inlined_call_operand.vmem [shape: f32[1,1,64], index: 2, kind: input, shape index: {}]   ;;  %s681_s3 = inlined_call_operand.vmem [shape: bf16[64,32], index: 3, kind: input, shape index: {}]   ;;  %s682_s4 = inlined_call_operand.vmem [shape: f32[1,32], index: 4, kind: input, shape index: {}]   ;;  %s683_s5 = inlined_call_operand.vmem [shape: bf16[32,16], index: 5, kind: input, shape index: {}]   ;;  %s684_s6 = inlined_call_operand.vmem [shape: f32[1,16], index: 6, kind: input, shape index: {}]   ;;  %s685_s7 = inlined_call_operand.hbm [shape: f32[2,16], index: 7, kind: output, shape index: {0}]   ;;  %s686_s8 = inlined_call_operand.hbm [shape: f32[2,32], index: 8, kind: output, shape index: {1}]  }
   0x1   :  { %v397_v0 = vld [vmem:[%s678_s0] sm:$0xff]   ;;  %v408_v1 = vld [vmem:[%s678_s0 + $0x8] sm:$0xff]   ;;  %v409_v2 = vld [vmem:[%s678_s0 + $0x10] sm:$0xff]  }
   0x2   :  { %v398_v3 = vunpack.c.l.bf16 %v397_v0  ;;  %v402_v4 = vunpack.c.l.bf16 %v408_v1  ;;  %v399_v5 = vunpack.c.h.bf16 %v397_v0  ;;  %v403_v6 = vunpack.c.h.bf16 %v408_v1 }
   0x3   :  { %v406_v11 = vunpack.c.l.bf16 %v409_v2  ;;  %v407_v12 = vunpack.c.h.bf16 %v409_v2 }
   0x4   :  { %v44_v7 = vsel %vm43_vm0, %v398_v3, 0.0  ;;  %v50_v8 = vsel %vm43_vm0, %v402_v4, 0.0  ;;  %v47_v9 = vsel %vm43_vm0, %v399_v5, 0.0  ;;  %v53_v10 = vsel %vm43_vm0, %v403_v6, 0.0 }
   0x5   :  { %45 = vadd.xlane.f32.xlu0 %v44_v7  ;;  %51 = vadd.xlane.f32.xlu1 %v50_v8 }
   0x6   :  { %15 = vsyncpa [#allocation5], 0  ;;  %v56_v13 = vsel %vm43_vm0, %v406_v11, 0.0  ;;  %v59_v14 = vsel %vm43_vm0, %v407_v12, 0.0  ;;  %v508_v45 = vmov 0.0   ;;  %v442_v46 = vld [vmem:[%s681_s3] sm:$0xff]   ;;  %v149_v62 = vlaneseq }
   0x7   :  { %418 = vmatprep.subr.bf16.mxu0 %v508_v45  ;;  %430 = vmatprep.subr.bf16.mxu1 %v508_v45  ;;  %vm509_vm1 = vmmov 0   ;;  %v443_v47 = vld [vmem:[%s681_s3 + $0x8] sm:$0xff]   ;;  %v444_v48 = vld [vmem:[%s681_s3 + $0x10] sm:$0xff]   ;;  %v445_v49 = vld [vmem:[%s681_s3 + $0x18] sm:$0xff]   ;;  %vm213_vm3 = vcmask 1041409   ;;  %vm351_vm4 = vcmask 254976  }
   0x8   :  { %426 = vmatprep.mubr.msk.bf16.mxu0 %vm509_vm1, %v508_v45  ;;  %434 = vmatprep.mubr.msk.bf16.mxu1 %vm509_vm1, %v508_v45  ;;  %v446_v50 = vld [vmem:[%s683_s5] sm:$0xff]   ;;  %vm307_vm5 = vcmask 261120   ;;  %s510_s25 = smov [#allocation4]  }
   0x9   :  { %48 = vadd.xlane.f32.xlu0 %v47_v9  ;;  %54 = vadd.xlane.f32.xlu1 %v53_v10  ;;  %v383_v7 = vld [vmem:[%s679_s1] ss:$0 sm:$0xff]  ;;  %s371_s26 = sshll.u32 %s510_s25, 4  ;;  %s372_s26 = int_to_ptr.vmem [resolvable:$true] %s371_s26 }
   0xa   :  { %419 = vmatpush3.bf16.msra.mxu0 %v442_v46  ;;  %431 = vmatpush3.bf16.msra.mxu1 %v446_v50  ;;  %s460_s27 = scalar_lea.vmem %s372_s26, 32  ;;  %p465_p1 = scmp.lt.s32.totalorder %s372_s26, %s372_s26 }
   0xb   :  { %420 = vmatprep.subr.bf16.mxu0 %v508_v45  ;;  %432 = vmatprep.subr.bf16.mxu1 %v508_v45  ;;  %p461_p0 = scmp.ne.s32.totalorder %s372_s26, %s460_s27  ;;  %p466_p2 = scmp.lt.s32.totalorder %s460_s27, %s460_s27 }
   0xd   :  { %57 = vadd.xlane.f32.xlu0 %v56_v13  ;;  %60 = vadd.xlane.f32.xlu1 %v59_v14  ;;  %v384_v13 = vld [vmem:[%s680_s2] ss:$0 sm:$0xff]  ;;  %p467_p3 = por %p466_p2, %p465_p1 }
   0xe   :  { %421 = vmatpush3.bf16.msra.mxu0 %v443_v47 }
   0xf   :  { %422 = vmatprep.subr.bf16.mxu0 %v508_v45  ;;  %p468_p4 = pnand %p467_p3, %p461_p0 }
  0x12   :  { %423 = vmatpush3.bf16.msra.mxu0 %v444_v48 }
  0x13   :  { %424 = vmatprep.subr.bf16.mxu0 %v508_v45 }
  0x16   :  { %425 = vmatpush3.bf16.msra.mxu0 %v445_v49 }
  0x92   :  { %v46_v15 = vpop.xlane.xlu0 %45  ;;  %v52_v16 = vpop.xlane.xlu1 %51 }
  0x93   :  { %v63_v17 = vmul.f32 0.015625, %v46_v15  ;;  %v65_v18 = vmul.f32 0.015625, %v52_v16 }
  0x95   :  { %v572_v19 = vsub.f32 %v398_v3, %v63_v17  ;;  %v574_v20 = vsub.f32 %v402_v4, %v65_v18  ;;  %v150_v4 = vshrl.u32 %v149_v62, 7 }
  0x96   :  { %v49_v21 = vpop.xlane.xlu0 %48  ;;  %v55_v22 = vpop.xlane.xlu1 %54 }
  0x97   :  { %v64_v23 = vmul.f32 0.015625, %v49_v21  ;;  %v66_v24 = vmul.f32 0.015625, %v55_v22  ;;  %v75_v25 = vmul.f32 %v572_v19, %v572_v19  ;;  %v77_v26 = vmul.f32 %v574_v20, %v574_v20 }
  0x98   :  { %v152_v10 = vadd.s32 16, %v150_v4  ;;  %v386_v4 = vld [vmem:[%s682_s4] ss:$0 sm:$0xff] }
  0x99   :  { %v580_v27 = vsub.f32 %v399_v5, %v64_v23  ;;  %v582_v28 = vsub.f32 %v403_v6, %v66_v24  ;;  %v81_v29 = vsel %vm43_vm0, %v75_v25, 0.0  ;;  %v87_v32 = vsel %vm43_vm0, %v77_v26, 0.0 }
  0x9a   :  { %82 = vadd.xlane.f32.xlu0 %v81_v29  ;;  %v58_v30 = vpop.xlane.xlu0 %57  ;;  %v61_v31 = vpop.xlane.xlu1 %60  ;;  %vm155_vm2 = vcmp.lt.s32.totalorder %v152_v10, 17 }
  0x9b   :  { %v67_v33 = vmul.f32 0.015625, %v58_v30  ;;  %v68_v34 = vmul.f32 0.015625, %v61_v31  ;;  %v76_v35 = vmul.f32 %v580_v27, %v580_v27  ;;  %v78_v36 = vmul.f32 %v582_v28, %v582_v28 }
  0x9c   :  { %v385_v24 = vsel %vm155_vm2, 1.0, %v508_v45 }
  0x9d   :  { %v590_v37 = vsub.f32 %v406_v11, %v67_v33  ;;  %v592_v38 = vsub.f32 %v407_v12, %v68_v34  ;;  %v84_v39 = vsel %vm43_vm0, %v76_v35, 0.0  ;;  %v90_v40 = vsel %vm43_vm0, %v78_v36, 0.0 }
  0x9e   :  { %88 = vadd.xlane.f32.xlu0 %v87_v32  ;;  %85 = vadd.xlane.f32.xlu1 %v84_v39 }
  0x9f   :  { %v79_v41 = vmul.f32 %v590_v37, %v590_v37  ;;  %v80_v42 = vmul.f32 %v592_v38, %v592_v38 }
  0xa1   :  { %v93_v43 = vsel %vm43_vm0, %v79_v41, 0.0  ;;  %v96_v44 = vsel %vm43_vm0, %v80_v42, 0.0 }
  0xa2   :  { %91 = vadd.xlane.f32.xlu1 %v90_v40  ;;  %94 = vadd.xlane.f32.xlu0 %v93_v43 }
  0xa6   :  { %97 = vadd.xlane.f32.xlu1 %v96_v44 }
 0x127   :  { %v83_v51 = vpop.xlane.xlu0 %82 }
 0x128   :  { %v99_v52 = vmul.f32 0.015625, %v83_v51 }
 0x12a   :  { %v105_v53 = vadd.f32 1e-06, %v99_v52 }
 0x12b   :  { %v86_v54 = vpop.xlane.xlu1 %85  ;;  %v89_v55 = vpop.xlane.xlu0 %88 }
 0x12c   :  { %448 = vrsqrt.f32 %v105_v53  ;;  %v100_v56 = vmul.f32 0.015625, %v86_v54  ;;  %v101_v57 = vmul.f32 0.015625, %v89_v55 }
 0x12e   :  { %v106_v58 = vadd.f32 1e-06, %v100_v56  ;;  %v107_v59 = vadd.f32 1e-06, %v101_v57 }
 0x12f   :  { %v92_v60 = vpop.xlane.xlu1 %91  ;;  %v95_v61 = vpop.xlane.xlu0 %94 }
 0x130   :  { %450 = vrsqrt.f32 %v106_v58  ;;  %v102_v63 = vmul.f32 0.015625, %v92_v60  ;;  %v103_v0 = vmul.f32 0.015625, %v95_v61 }
 0x131   :  { %452 = vrsqrt.f32 %v107_v59 }
 0x132   :  { %v108_v1 = vadd.f32 1e-06, %v102_v63  ;;  %v109_v2 = vadd.f32 1e-06, %v103_v0 }
 0x133   :  { %v98_v3 = vpop.xlane.xlu1 %97 }
 0x134   :  { %454 = vrsqrt.f32 %v108_v1  ;;  %v104_v5 = vmul.f32 0.015625, %v98_v3  ;;  %v447_v3 = vld [vmem:[%s683_s5 + $0x8] sm:$0xff]  }
 0x135   :  { %456 = vrsqrt.f32 %v109_v2  ;;  %433 = vmatpush3.bf16.msra.mxu1 %v447_v3 }
 0x136   :  { %v449_v6 = vpop.eup %448  ;;  %v110_v8 = vadd.f32 1e-06, %v104_v5 }
 0x137   :  { %v117_v9 = vmul.f32 %v449_v6, %v572_v19 }
 0x138   :  { %458 = vrsqrt.f32 %v110_v8 }
 0x139   :  { %v130_v11 = vmul.f32 %v383_v7, %v117_v9 }
 0x13a   :  { %v451_v12 = vpop.eup %450 }
 0x13b   :  { %v453_v14 = vpop.eup %452  ;;  %v118_v15 = vmul.f32 %v451_v12, %v580_v27  ;;  %v143_v17 = vadd.f32 %v384_v13, %v130_v11 }
 0x13c   :  { %v119_v16 = vmul.f32 %v453_v14, %v574_v20 }
 0x13d   :  { %v131_v18 = vmul.f32 %v383_v7, %v118_v15  ;;  %v168_v30 = vsel %vm43_vm0, %v143_v17, 0.0 }
 0x13e   :  { %v455_v21 = vpop.eup %454  ;;  %v132_v22 = vmul.f32 %v383_v7, %v119_v16 }
 0x13f   :  { %v457_v23 = vpop.eup %456  ;;  %v144_v19 = vadd.f32 %v384_v13, %v131_v18  ;;  %v120_v25 = vmul.f32 %v455_v21, %v582_v28 }
 0x140   :  { %v145_v26 = vadd.f32 %v384_v13, %v132_v22  ;;  %v121_v29 = vmul.f32 %v457_v23, %v590_v37 }
 0x141   :  { %v169_v27 = vsel %vm43_vm0, %v144_v19, 0.0  ;;  %v133_v31 = vmul.f32 %v383_v7, %v120_v25 }
 0x142   :  { %v459_v32 = vpop.eup %458  ;;  %v170_v20 = vadd.f32 %v169_v27, %v168_v30  ;;  %v164_v33 = vmul.f32 %v385_v24, %v145_v26  ;;  %v134_v34 = vmul.f32 %v383_v7, %v121_v29 }
 0x143   :  { %v146_v35 = vadd.f32 %v384_v13, %v133_v31  ;;  %v122_v36 = vmul.f32 %v459_v32, %v592_v38 }
 0x144   :  { %v171_v39 = vsel %vm43_vm0, %v164_v33, 0.0  ;;  %v147_v40 = vadd.f32 %v384_v13, %v134_v34 }
 0x145   :  { %v135_v41 = vmul.f32 %v383_v7, %v122_v36  ;;  %v172_v28 = vadd.f32 %v171_v39, %v170_v20  ;;  %v179_v42 = vsel %vm43_vm0, %v146_v35, 0.0 }
 0x146   :  { %v180_v37 = vsel %vm43_vm0, %v147_v40, 0.0 }
 0x147   :  { %v148_v43 = vadd.f32 %v384_v13, %v135_v41  ;;  %v173_v44 = vrot.slane %v172_v28, 4  ;;  %v181_v47 = vadd.f32 %v180_v37, %v179_v42 }
 0x149   :  { %v167_v45 = vmul.f32 %v385_v24, %v148_v43  ;;  %v174_v46 = vadd.f32 %v173_v44, %v172_v28 }
 0x14b   :  { %v182_v48 = vsel %vm43_vm0, %v167_v45, 0.0  ;;  %v175_v49 = vrot.slane %v174_v46, 2 }
 0x14c   :  { %v183_v50 = vadd.f32 %v182_v48, %v181_v47 }
 0x14d   :  { %v176_v51 = vadd.f32 %v175_v49, %v174_v46 }
 0x14e   :  { %v184_v38 = vrot.slane %v183_v50, 4 }
 0x14f   :  { %v177_v52 = vrot.slane %v176_v51, 1 }
 0x150   :  { %v185_v53 = vadd.f32 %v184_v38, %v183_v50 }
 0x151   :  { %v178_v54 = vadd.f32 %v177_v52, %v176_v51 }
 0x152   :  { %v186_v55 = vrot.slane %v185_v53, 2 }
 0x153   :  { %v190_v58 = vmul.f32 0.05882353, %v178_v54 }
 0x154   :  { %v187_v56 = vadd.f32 %v186_v55, %v185_v53 }
 0x155   :  { %v192_v61 = vpack.c.bf16 %v190_v58, %v190_v58 }
 0x156   :  { %v188_v57 = vrot.slane %v187_v56, 1 }
 0x157   :  { %v211_v63 = vunpack.c.l.b16 %v192_v61 }
 0x158   :  { %v189_v59 = vadd.f32 %v188_v57, %v187_v56 }
 0x15a   :  { %v191_v60 = vmul.f32 0.05882353, %v189_v59 }
 0x15c   :  { %v193_v62 = vpack.c.bf16 %v191_v60, %v191_v60 }
 0x15e   :  { %v212_v0 = vunpack.c.l.b16 %v193_v62 }
 0x160   :  { %v214_v1 = vsel %vm213_vm3, %v212_v0, %v211_v63 }
 0x161   :  { %v215_v2 = vpack.c.b16 %v214_v1, %v214_v1 }
 0x163   :  { %427 = vmatmul.mubr.msk.bf16.vlgmr.msra.gmra.mrb[0].mxu0 %vm43_vm0, %v215_v2 }
 0x236   :  { %v277_v5 = vpop.f32.mrb[0].mxu0 }
 0x237   :  { %v278_v6 = vadd.f32 %v386_v4, %v277_v5  ;;  %v428_v7 = vpop.f32.mrb[1].mxu0 }
 0x238   :  { %v280_v8 = vpop.f32.mrb[2].mxu0 }
 0x239   :  { %v283_v9 = vpack.c.bf16 %v278_v6, %v278_v6  ;;  %v429_v10 = vpop.f32.mrb[3].mxu0  ;;  %352 = vst.msk [vmem:[#allocation4] sm:$0x3] %vm351_vm4, %v278_v6 }
 0x23b   :  { %435 = vmatmul.mubr.msk.bf16.vlgmr.msra.gmra.mrb[0].mxu1 %vm307_vm5, %v283_v9 }
 0x23c   :  { %471 = shalt.err (!%p468_p4)
}
 0x23d   :  { %s472_s28 = scalar_lea.hbm %s686_s8, 32 }
 0x23e   :  { %p473_p5 = scmp.ne.s32.totalorder %s686_s8, %s472_s28  ;;  %p476_p6 = scmp.lt.u32.totalorder %s472_s28, %s686_s8 }
 0x240   :  { %p478_p7 = pnand %p476_p6, %p473_p5 }
 0x242   :  { %481 = shalt.err (!%p478_p7)
}
 0x243   :  { %374 = dma.vmem_to_hbm [thread:$0]  %s372_s26, 32, %s686_s8, [#allocation5]   ;;  %v392_v11 = vld [vmem:[%s684_s6] ss:$0 sm:$0xff]  ;;  %vm353_vm6 = vcmask 123904  }
 0x244   :  { %s511_s14 = smov [#allocation2]  }
 0x245   :  { %s361_s15 = sshll.u32 %s511_s14, 4  ;;  %s362_s15 = int_to_ptr.vmem [resolvable:$true] %s361_s15 }
 0x246   :  { %s482_s16 = scalar_lea.vmem %s362_s15, 32  ;;  %p487_p9 = scmp.lt.s32.totalorder %s362_s15, %s362_s15 }
 0x247   :  { %p483_p8 = scmp.ne.s32.totalorder %s362_s15, %s482_s16  ;;  %p488_p10 = scmp.lt.s32.totalorder %s482_s16, %s482_s16 }
 0x249   :  { %p489_p11 = por %p488_p10, %p487_p9 }
 0x24b   :  { %p490_p12 = pnand %p489_p11, %p483_p8 }
 0x30e   :  { %v345_v12 = vpop.f32.mrb[0].mxu1 }
 0x30f   :  { %v346_v13 = vadd.f32 %v392_v11, %v345_v12  ;;  %v436_v14 = vpop.f32.mrb[1].mxu1 }
 0x310   :  { %v348_v15 = vpop.f32.mrb[2].mxu1 }
 0x311   :  { %v437_v16 = vpop.f32.mrb[3].mxu1  ;;  %354 = vst.msk [vmem:[#allocation2] sm:$0x3] %vm353_vm6, %v346_v13 }
 0x312   :  { %493 = shalt.err (!%p490_p12)
}
 0x313   :  { %s494_s6 = scalar_lea.hbm %s685_s7, 32 }
 0x314   :  { %p495_p13 = scmp.ne.s32.totalorder %s685_s7, %s494_s6  ;;  %p498_p0 = scmp.lt.u32.totalorder %s494_s6, %s685_s7 }
 0x316   :  { %p500_p1 = pnand %p498_p0, %p495_p13 }
 0x318   :  { %503 = shalt.err (!%p500_p1)
}
 0x319   :  { %364 = dma.vmem_to_hbm [thread:$0]  %s362_s15, 32, %s685_s7, [#allocation3]  }
 0x31a   :  { %504 = dma.done.wait [#allocation3], 32  }
 0x31b   :  { %505 = vsyncadd [#allocation3], 4294967264 }
 0x31c   :  { %506 = dma.done.wait [#allocation5], 32  }
 0x31d   :  { %507 = vsyncadd [#allocation5], 4294967264 }
 0x31e   :  { %381 = vsyncpa [#allocation3], 1 }
 0x31f   :  { %382 = vsyncpa [#allocation5], 1 }

// kernel: vit_forward.5
= control target key start
LH: loop header
LB: loop body
LE: loop exit
PB: predicated region body
PF: predicated region fallthrough
CT: control target
= control target key end

     0   :  { %s4022_s24 = smov 0   ;;  %s4574_s0 = inlined_call_operand.vmem [shape: bf16[2,24,64], index: 0, kind: input, shape index: {}]   ;;  %s4575_s1 = inlined_call_operand.vmem [shape: f32[1,64], index: 1, kind: input, shape index: {}]   ;;  %s4576_s2 = inlined_call_operand.vmem [shape: f32[1,64], index: 2, kind: input, shape index: {}]   ;;  %s4577_s3 = inlined_call_operand.vmem [shape: bf16[4,64,16], index: 3, kind: input, shape index: {}]   ;;  %s4578_s4 = inlined_call_operand.vmem [shape: f32[4,1,16], index: 4, kind: input, shape index: {}]   ;;  %s4579_s5 = inlined_call_operand.vmem [shape: bf16[4,64,16], index: 5, kind: input, shape index: {}]   ;;  %s4580_s6 = inlined_call_operand.vmem [shape: f32[4,1,16], index: 6, kind: input, shape index: {}]   ;;  %s4581_s7 = inlined_call_operand.vmem [shape: bf16[4,64,16], index: 7, kind: input, shape index: {}]   ;;  %s4582_s8 = inlined_call_operand.vmem [shape: f32[4,1,16], index: 8, kind: input, shape index: {}]   ;;  %s4583_s9 = inlined_call_operand.vmem [shape: bf16[4,16,64], index: 9, kind: input, shape index: {}]   ;;  %s4584_s10 = inlined_call_operand.vmem [shape: f32[1,64], index: 10, kind: input, shape index: {}]   ;;  %s4585_s11 = inlined_call_operand.vmem [shape: f32[1,64], index: 11, kind: input, shape index: {}]   ;;  %s4586_s12 = inlined_call_operand.vmem [shape: f32[1,64], index: 12, kind: input, shape index: {}]   ;;  %s4587_s13 = inlined_call_operand.vmem [shape: bf16[64,256], index: 13, kind: input, shape index: {}]   ;;  %s4588_s14 = inlined_call_operand.vmem [shape: f32[1,256], index: 14, kind: input, shape index: {}]   ;;  %s4589_s15 = inlined_call_operand.vmem [shape: bf16[256,64], index: 15, kind: input, shape index: {}]   ;;  %s4590_s16 = inlined_call_operand.vmem [shape: f32[1,64], index: 16, kind: input, shape index: {}]   ;;  %s4591_s17 = inlined_call_operand.vmem [shape: bf16[2,24,64], index: 17, kind: output, shape index: {}]  }
   0x1   :  { %4592 = sst [smem:[#allocation2_spill]] %s4574_s0 }
   0x2   :  { %4593 = sst [smem:[#allocation3_spill]] %s4575_s1 }
   0x3 LB: > { %s3123_s25 = sadd.s32 4294967295, %s3929_s24   ;;  %p3127_p0 = scmp.ge.s32.totalorder %s3929_s24, 1  ;;  %s3929_s24 = sphi %s4022_s24, %s27_s24  }
   0x4   : > { %p487_p1 = scmp.lt.s32.totalorder %s3929_s24, 3 }
   0x6   : > { %p488_p2 = pnand %p3127_p0, %p487_p1 }
   0x7   : > { %p539_p3 = scmp.lt.s32.totalorder (!%p488_p2), %s3123_s25, 1  ;;  %s4594_s29 = sld [smem:[#allocation2_spill]] (!%p488_p2)  ;;  %vm558_vm0 = vcmask (!%p488_p2), 523264   ;;  %v3771_v23 = vld [vmem:[%s4577_s3] sm:$0xff] (!%p488_p2)   ;;  %v3773_v25 = vld [vmem:[%s4577_s3 + $0x8] sm:$0xff] (!%p488_p2)   ;;  %v3775_v27 = vld [vmem:[%s4577_s3 + $0x10] sm:$0xff] (!%p488_p2)  }
   0x8   : > { %491 = sbr.rel (%p488_p2) target bundleno = 5127 (0x1407), region = 88  ;;  %v3772_v24 = vld [vmem:[%s4579_s5] sm:$0xff] (!%p488_p2)   ;;  %3517 = vmatprep.subr.bf16.mxu0 (!%p488_p2), %v3771_v23  ;;  %v3774_v26 = vld [vmem:[%s4579_s5 + $0x8] sm:$0xff] (!%p488_p2)   ;;  %v3776_v28 = vld [vmem:[%s4579_s5 + $0x10] sm:$0xff] (!%p488_p2)   ;;  %s4595_s27 = sld [smem:[#allocation3_spill]] (!%p488_p2)  ;;  %vm893_vm1 = vcmask (!%p488_p2), 130048  }
   0x9   : > { %3518 = vmatpush3.bf16.msra.mxu0 (!%p488_p2), %v3771_v23  ;;  %3529 = vmatprep.subr.bf16.mxu1 (!%p488_p2), %v3772_v24  ;;  %v3777_v29 = vld [vmem:[%s4577_s3 + $0x18] sm:$0xff] (!%p488_p2)   ;;  %v3779_v31 = vld [vmem:[%s4581_s7] sm:$0xff] (!%p488_p2)   ;;  %v3780_v57 = vld [vmem:[%s4581_s7 + $0x8] sm:$0xff] (!%p488_p2)   ;;  %vm1006_vm2 = vcmask (!%p488_p2), 1043456   ;;  %vm962_vm4 = vcmask (!%p488_p2), 195584   ;;  %vm3064_vm5 = vcmask (!%p488_p2), 519168  }
   0xa   : > { %3530 = vmatpush3.bf16.msra.mxu1 (!%p488_p2), %v3772_v24  ;;  %3519 = vmatprep.subr.bf16.mxu0 (!%p488_p2), %v3773_v25  ;;  %v3778_v30 = vld [vmem:[%s4579_s5 + $0x18] sm:$0xff] (!%p488_p2)   ;;  %v3131_v49 = vld [vmem:[%s4576_s2] ss:$0 sm:$0xff] (!%p488_p2)  ;;  %v3781_v58 = vld [vmem:[%s4581_s7 + $0x10] sm:$0xff] (!%p488_p2)  }
   0xb   : > { %3531 = vmatprep.subr.bf16.mxu1 (!%p488_p2), %v3774_v26  ;;  %v3782_v59 = vld [vmem:[%s4581_s7 + $0x18] sm:$0xff] (!%p488_p2)   ;;  %v3139_v62 = vld [vmem:[%s4580_s6] ss:$0 sm:$0xff] (!%p488_p2) }
   0xc   : > { %v3132_v63 = vld [vmem:[%s4578_s4] ss:$0 sm:$0xff] (!%p488_p2) }
   0xd   : > { %3520 = vmatpush3.bf16.msra.mxu0 (!%p488_p2), %v3773_v25 }
   0xe   : > { %3532 = vmatpush3.bf16.msra.mxu1 (!%p488_p2), %v3774_v26  ;;  %3521 = vmatprep.subr.bf16.mxu0 (!%p488_p2), %v3775_v27  ;;  %v3130_v43 = vld [vmem:[%s4595_s27] ss:$0 sm:$0xff] (!%p488_p2) }
   0xf   : > { %s4597_s25 = smov (!%p539_p3, %s3123_s25), 1  ;;  %3533 = vmatprep.subr.bf16.mxu1 %v3776_v28 }
  0x10   : > { %s3761_s26 = smul.u32 12, %s4597_s25 }
  0x11   : > { %3522 = vmatpush3.bf16.msra.mxu0 %v3775_v27 }
  0x12   : > { %s543_s0 = scalar_lea.vmem %s4594_s29, %s3761_s26  ;;  %3534 = vmatpush3.bf16.msra.mxu1 %v3776_v28  ;;  %3523 = vmatprep.subr.bf16.mxu0 %v3777_v29  ;;  %s548_s18 = scalar_lea.vmem %s4591_s17, %s3761_s26 }
  0x13   : > { %v3370_v0 = vld [vmem:[%s543_s0] sm:$0xff]   ;;  %v552_v1 = vld [vmem:[%s543_s0 + $0x8] sm:$0xf]  ;;  %3535 = vmatprep.subr.bf16.mxu1 %v3778_v30 }
  0x14   : > { %v4038_v2 = vunpack.c.l.bf16 %v3370_v0  ;;  %v4040_v3 = vunpack.c.l.bf16 %v552_v1  ;;  %v4042_v4 = vunpack.c.h.bf16 %v3370_v0 }
  0x15   : > { %3524 = vmatpush3.bf16.msra.mxu0 %v3777_v29 }
  0x16   : > { %v559_v5 = vsel %vm558_vm0, %v4038_v2, 0.0  ;;  %v565_v6 = vsel %vm558_vm0, %v4040_v3, 0.0  ;;  %v562_v7 = vsel %vm558_vm0, %v4042_v4, 0.0  ;;  %3536 = vmatpush3.bf16.msra.mxu1 %v3778_v30  ;;  %3541 = vmatprep.subr.bf16.mxu0 %v3779_v31 }
  0x17   : > { %560 = vadd.xlane.f32.xlu0 %v559_v5  ;;  %566 = vadd.xlane.f32.xlu1 %v565_v6 }
  0x1b   : > { %563 = vadd.xlane.f32.xlu0 %v562_v7 }
  0xa4   : > { %v561_v8 = vpop.xlane.xlu0 %560  ;;  %v567_v9 = vpop.xlane.xlu1 %566 }
  0xa5   : > { %v569_v10 = vmul.f32 0.015625, %v561_v8  ;;  %v571_v11 = vmul.f32 0.015625, %v567_v9 }
  0xa7   : > { %v572_v12 = vsub.f32 %v4038_v2, %v569_v10  ;;  %v574_v13 = vsub.f32 %v4040_v3, %v571_v11 }
  0xa8   : > { %v564_v14 = vpop.xlane.xlu0 %563 }
  0xa9   : > { %v570_v15 = vmul.f32 0.015625, %v564_v14  ;;  %v575_v16 = vmul.f32 %v572_v12, %v572_v12  ;;  %v577_v17 = vmul.f32 %v574_v13, %v574_v13 }
  0xab   : > { %v573_v18 = vsub.f32 %v4042_v4, %v570_v15  ;;  %v578_v19 = vsel %vm558_vm0, %v575_v16, 0.0  ;;  %v584_v20 = vsel %vm558_vm0, %v577_v17, 0.0 }
  0xac   : > { %579 = vadd.xlane.f32.xlu1 %v578_v19 }
  0xad   : > { %v576_v21 = vmul.f32 %v573_v18, %v573_v18 }
  0xaf   : > { %v581_v22 = vsel %vm558_vm0, %v576_v21, 0.0  ;;  %v3146_v21 = vld [vmem:[%s4582_s8] ss:$0 sm:$0xff] }
  0xb0   : > { %585 = vadd.xlane.f32.xlu1 %v584_v20  ;;  %582 = vadd.xlane.f32.xlu0 %v581_v22 }
 0x139   : > { %v580_v32 = vpop.xlane.xlu1 %579 }
 0x13a   : > { %v587_v33 = vmul.f32 0.015625, %v580_v32 }
 0x13c   : > { %v590_v34 = vadd.f32 1e-06, %v587_v33  ;;  %v3785_v33 = vld [vmem:[%s4577_s3 + $0x30] sm:$0xff]  }
 0x13d   : > { %v586_v35 = vpop.xlane.xlu1 %585  ;;  %v583_v36 = vpop.xlane.xlu0 %582 }
 0x13e   : > { %3851 = vrsqrt.f32 %v590_v34  ;;  %v589_v37 = vmul.f32 0.015625, %v586_v35  ;;  %v588_v38 = vmul.f32 0.015625, %v583_v36  ;;  %v3786_v35 = vld [vmem:[%s4577_s3 + $0x38] sm:$0xff]   ;;  %v3787_v36 = vld [vmem:[%s4581_s7 + $0x20] sm:$0xff]  }
 0x140   : > { %v592_v39 = vadd.f32 1e-06, %v589_v37  ;;  %v591_v40 = vadd.f32 1e-06, %v588_v38  ;;  %v3788_v37 = vld [vmem:[%s4581_s7 + $0x28] sm:$0xff]   ;;  %v3789_v38 = vld [vmem:[%s4581_s7 + $0x30] sm:$0xff]  }
 0x142   : > { %3853 = vrsqrt.f32 %v592_v39  ;;  %v3790_v39 = vld [vmem:[%s4581_s7 + $0x38] sm:$0xff]  }
 0x143   : > { %3855 = vrsqrt.f32 %v591_v40  ;;  %v619_v40 = vlaneseq }
 0x148   : > { %v3852_v41 = vpop.eup %3851 }
 0x149   : > { %v596_v42 = vmul.f32 %v3852_v41, %v572_v12  ;;  %v4164_v41 = vand.u32 127, %v619_v40 }
 0x14b   : > { %v605_v47 = vmul.f32 %v3130_v43, %v596_v42  ;;  %vm621_vm3 = vcmp.lt.s32.totalorder %v4164_v41, 17 }
 0x14c   : > { %v3854_v44 = vpop.eup %3853 }
 0x14d   : > { %v3856_v45 = vpop.eup %3855  ;;  %v598_v46 = vmul.f32 %v3854_v44, %v574_v13  ;;  %v614_v53 = vadd.f32 %v3131_v49, %v605_v47 }
 0x14e   : > { %v597_v48 = vmul.f32 %v3856_v45, %v573_v18  ;;  %v3783_v18 = vld [vmem:[%s4577_s3 + $0x20] sm:$0xff]  }
 0x14f   : > { %v607_v50 = vmul.f32 %v3130_v43, %v598_v46 }
 0x150   : > { %v606_v51 = vmul.f32 %v3130_v43, %v597_v48 }
 0x151   : > { %v616_v52 = vadd.f32 %v3131_v49, %v607_v50 }
 0x152   : > { %v615_v54 = vadd.f32 %v3131_v49, %v606_v51 }
 0x153   : > { %v4089_v55 = vpack.c.bf16 %v616_v52, %v616_v52 }
 0x154   : > { %v4091_v56 = vpack.c.bf16 %v615_v54, %v614_v53 }
 0x156   : > { %3525 = vmatprep.mubr.msk.bf16.mxu0 %vm558_vm0, %v4091_v56  ;;  %3537 = vmatprep.mubr.msk.bf16.mxu1 %vm558_vm0, %v4091_v56 }
 0x157   : > { %3526 = vmatmul.mubr.msk.bf16.vlgmr.msra.gmra.mrb[0].mxu0 %vm558_vm0, %v4089_v55  ;;  %3538 = vmatmul.mubr.msk.bf16.vlgmr.msra.gmra.mrb[0].mxu1 %vm558_vm0, %v4089_v55 }
 0x158   : > { %3542 = vmatpush3.bf16.msra.mxu0 %v3779_v31  ;;  %3549 = vmatprep.mubr.msk.bf16.mxu0 %vm558_vm0, %v4091_v56  ;;  %v3784_v31 = vld [vmem:[%s4577_s3 + $0x28] sm:$0xff]  }
 0x159   : > { %3543 = vmatprep.subr.bf16.mxu0 %v3780_v57 }
 0x15c   : > { %3544 = vmatpush3.bf16.msra.mxu0 %v3780_v57  ;;  %v3166_v57 = vld [vmem:[%s4578_s4 + $0x1] ss:$0 sm:$0xff] }
 0x15d   : > { %3545 = vmatprep.subr.bf16.mxu0 %v3781_v58 }
 0x160   : > { %3546 = vmatpush3.bf16.msra.mxu0 %v3781_v58 }
 0x161   : > { %3547 = vmatprep.subr.bf16.mxu0 %v3782_v59 }
 0x164   : > { %3548 = vmatpush3.bf16.msra.mxu0 %v3782_v59 }
 0x167   : > { %3550 = vmatmul.mubr.msk.bf16.vlgmr.msra.gmra.mrb[4].mxu0 %vm558_vm0, %v4089_v55 }
 0x22a   : > { %v3527_v60 = vpop.f32.mrb[0].mxu0  ;;  %v3539_v61 = vpop.f32.mrb[0].mxu1 }
 0x22b   : > { %v701_v0 = vpop.f32.mrb[1].mxu0  ;;  %v788_v1 = vpop.f32.mrb[1].mxu1  ;;  %v797_v7 = vadd.f32 %v3539_v61, %v3139_v62  ;;  %v710_v23 = vadd.f32 %v3527_v60, %v3132_v63 }
 0x22c   : > { %v3528_v5 = vpop.f32.mrb[2].mxu0  ;;  %v3540_v6 = vpop.f32.mrb[2].mxu1  ;;  %v702_v10 = vadd.f32 %v3132_v63, %v701_v0  ;;  %v789_v11 = vadd.f32 %v3139_v62, %v788_v1 }
 0x22d   : > { %v704_v8 = vpop.f32.mrb[3].mxu0  ;;  %v791_v9 = vpop.f32.mrb[3].mxu1  ;;  %v892_v16 = vpack.c.bf16 %v797_v7, %v797_v7  ;;  %v890_v29 = vpack.c.bf16 %v710_v23, %v710_v23  ;;  %v4189_v6 = vld [vmem:[%s4582_s8 + $0x1] ss:$0 sm:$0xff] }
 0x22e   : > { %v705_v12 = vadd.f32 %v3132_v63, %v704_v8  ;;  %v792_v13 = vadd.f32 %v3139_v62, %v791_v9 }
 0x22f   : > { %v904_v19 = vsel %vm893_vm1, %v892_v16, 0 }
 0x230   : > { %v889_v14 = vpack.c.bf16 %v705_v12, %v702_v10  ;;  %v891_v15 = vpack.c.bf16 %v792_v13, %v789_v11 }
 0x232   : > { %3749 = vmatprep.subr.msk.bf16.mxu1 %vm893_vm1, %v891_v15  ;;  %3557 = vmatprep.mubr.msk.bf16.mxu1 %vm893_vm1, %v889_v14  ;;  %v901_v17 = vsel %vm893_vm1, %v891_v15, 0 }
 0x233   : > { %3554 = vmatpush3.bf16.xpose.msra.mxu1 %v901_v17 }
 0x234   : > { %3750 = vmatprep.subr.msk.bf16.mxu1 %vm893_vm1, %v892_v16 }
 0x23a   : > { %v3551_v20 = vpop.f32.mrb[4].mxu0 }
 0x23b   : > { %v875_v22 = vpop.f32.mrb[5].mxu0  ;;  %3556 = vmatpush3.bf16.xpose.msra.mxu1 %v904_v19  ;;  %v884_v26 = vadd.f32 %v3551_v20, %v3146_v21 }
 0x23c   : > { %v3552_v24 = vpop.f32.mrb[6].mxu0  ;;  %3569 = vmatprep.subr.bf16.mxu1 %v3783_v18  ;;  %v876_v27 = vadd.f32 %v3146_v21, %v875_v22 }
 0x23d   : > { %v878_v25 = vpop.f32.mrb[7].mxu0  ;;  %v999_v32 = vpack.c.bf16 %v884_v26, %v884_v26 }
 0x23e   : > { %v879_v28 = vadd.f32 %v3146_v21, %v878_v25 }
 0x23f   : > { %v1008_v34 = vsel %vm1006_vm2, %v999_v32, 0 }
 0x240   : > { %v998_v30 = vpack.c.bf16 %v879_v28, %v876_v27  ;;  %v3791_v28 = vld [vmem:[%s4579_s5 + $0x20] sm:$0xff]  }
 0x242   : > { %3561 = vmatprep.subr.bf16.mxu0 %v998_v30  ;;  %3558 = vmatmul.mubr.msk.bf16.vlgmr.msra.gmra.mrb[4].mxu1 %vm893_vm1, %v890_v29 }
 0x243   : > { %3562 = vmatpush3.bf16.msra.mxu0 %v998_v30  ;;  %3570 = vmatpush3.bf16.msra.mxu1 %v3783_v18 }
 0x244   : > { %3751 = vmatprep.subr.msk.bf16.mxu0 %vm1006_vm2, %v999_v32  ;;  %3577 = vmatprep.mubr.msk.bf16.mxu1 %vm558_vm0, %v4091_v56 }
 0x245   : > { %3571 = vmatprep.subr.bf16.mxu1 %v3784_v31 }
 0x247   : > { %3564 = vmatpush3.bf16.msra.mxu0 %v1008_v34  ;;  %3572 = vmatpush3.bf16.msra.mxu1 %v3784_v31 }
 0x248   : > { %3573 = vmatprep.subr.bf16.mxu1 %v3785_v33  ;;  %3581 = vmatprep.subr.bf16.mxu0 %v3791_v28 }
 0x24b   : > { %3574 = vmatpush3.bf16.msra.mxu1 %v3785_v33 }
 0x24c   : > { %3575 = vmatprep.subr.bf16.mxu1 %v3786_v35 }
 0x24f   : > { %3576 = vmatpush3.bf16.msra.mxu1 %v3786_v35 }
 0x250   : > { %3593 = vmatprep.subr.bf16.mxu1 %v3787_v36 }
 0x252   : > { %3578 = vmatmul.mubr.msk.bf16.vlgmr.msra.gmra.mrb[8].mxu1 %vm558_vm0, %v4089_v55 }
 0x253   : > { %3594 = vmatpush3.bf16.msra.mxu1 %v3787_v36  ;;  %3601 = vmatprep.mubr.msk.bf16.mxu1 %vm558_vm0, %v4091_v56 }
 0x254   : > { %3595 = vmatprep.subr.bf16.mxu1 %v3788_v37 }
 0x257   : > { %3596 = vmatpush3.bf16.msra.mxu1 %v3788_v37 }
 0x258   : > { %3597 = vmatprep.subr.bf16.mxu1 %v3789_v38 }
 0x25b   : > { %3598 = vmatpush3.bf16.msra.mxu1 %v3789_v38 }
 0x25c   : > { %3599 = vmatprep.subr.bf16.mxu1 %v3790_v39 }
 0x25f   : > { %3600 = vmatpush3.bf16.msra.mxu1 %v3790_v39 }
 0x262   : > { %3602 = vmatmul.mubr.msk.bf16.vlgmr.msra.gmra.mrb[12].mxu1 %vm558_vm0, %v4089_v55 }
 0x315   : > { %v3559_v42 = vpop.f32.mrb[4].mxu1 }
 0x316   : > { %v940_v43 = vpop.f32.mrb[5].mxu1  ;;  %v956_v44 = vmul.f32 0.25, %v3559_v42  ;;  %v3792_v42 = vld [vmem:[%s4579_s5 + $0x28] sm:$0xff]  }
 0x317   : > { %v954_v45 = vmul.f32 0.25, %v940_v43  ;;  %v3560_v46 = vpop.f32.mrb[6].mxu1  ;;  %v3793_v43 = vld [vmem:[%s4579_s5 + $0x30] sm:$0xff]  }
 0x318   : > { %v943_v47 = vpop.f32.mrb[7].mxu1  ;;  %v961_v52 = vsel %vm621_vm3, %v956_v44, -1e+30  ;;  %v3794_v44 = vld [vmem:[%s4579_s5 + $0x38] sm:$0xff]   ;;  %v3796_v46 = vld [vmem:[%s4579_s5 + $0x40] sm:$0xff]  }
 0x319   : > { %v955_v48 = vmul.f32 0.25, %v943_v47  ;;  %v959_v49 = vsel %vm621_vm3, %v954_v45, -1e+30  ;;  %v969_v54 = vsel %vm962_vm4, %v961_v52, -inf  ;;  %v3795_v45 = vld [vmem:[%s4583_s9] sm:$0xff]  }
 0x31a   : > { %v963_v50 = vsel %vm962_vm4, %v959_v49, -inf  ;;  %3627 = vmatprep.subr.bf16.mxu1 %v3795_v45 }
 0x31b   : > { %964 = vmax.xlane.f32.xlu0 %v963_v50  ;;  %v960_v51 = vsel %vm621_vm3, %v955_v48, -1e+30  ;;  %3628 = vmatpush3.bf16.msra.mxu1 %v3795_v45 }
 0x31c   : > { %v966_v53 = vsel %vm962_vm4, %v960_v51, -inf  ;;  %3645 = vmatprep.subr.bf16.mxu1 %v3796_v46 }
 0x31d   : > { %967 = vmax.xlane.f32.xlu1 %v966_v53  ;;  %v3797_v53 = vld [vmem:[%s4579_s5 + $0x48] sm:$0xff]  }
 0x31f   : > { %970 = vmax.xlane.f32.xlu0 %v969_v54  ;;  %v3798_v54 = vld [vmem:[%s4579_s5 + $0x50] sm:$0xff]  }
 0x325   : > { %v3579_v58 = vpop.f32.mrb[8].mxu1 }
 0x326   : > { %v4179_v59 = vadd.f32 %v3579_v58, %v3166_v57  ;;  %v1137_v60 = vpop.f32.mrb[9].mxu1 }
 0x327   : > { %v3580_v61 = vpop.f32.mrb[10].mxu1  ;;  %v4181_v63 = vadd.f32 %v3166_v57, %v1137_v60  ;;  %v3182_v60 = vld [vmem:[%s4580_s6 + $0x1] ss:$0 sm:$0xff] }
 0x328   : > { %v1140_v62 = vpop.f32.mrb[11].mxu1 }
 0x329   : > { %v1141_v0 = vadd.f32 %v3166_v57, %v1140_v62  ;;  %v3799_v57 = vld [vmem:[%s4579_s5 + $0x58] sm:$0xff]  }
 0x32b   : > { %v1329_v1 = vpack.c.bf16 %v1141_v0, %v4181_v63 }
 0x335   : > { %v4184_v5 = vpop.f32.mrb[12].mxu1 }
 0x336   : > { %v1315_v7 = vpop.f32.mrb[13].mxu1 }
 0x337   : > { %v3604_v8 = vpop.f32.mrb[14].mxu1  ;;  %v1316_v10 = vadd.f32 %v4189_v6, %v1315_v7 }
 0x338   : > { %v1318_v9 = vpop.f32.mrb[15].mxu1 }
 0x339   : > { %v1319_v11 = vadd.f32 %v4189_v6, %v1318_v9 }
 0x33b   : > { %v4193_v12 = vpack.c.bf16 %v1319_v11, %v1316_v10 }
 0x3a8   : > { %v965_v13 = vpop.xlane.xlu0 %964 }
 0x3a9   : > { %v972_v14 = vsub.f32 %v959_v49, %v965_v13  ;;  %v1324_v13 = vadd.f32 %v4184_v5, %v4189_v6 }
 0x3aa   : > { %v968_v15 = vpop.xlane.xlu1 %967 }
 0x3ab   : > { %v975_v16 = vmul.f32 1.442695, %v972_v14  ;;  %v973_v17 = vsub.f32 %v960_v51, %v968_v15  ;;  %v1330_v14 = vpack.c.bf16 %v4179_v59, %v4179_v59  ;;  %v1435_v15 = vpack.c.bf16 %v1324_v13, %v1324_v13  ;;  %v3242_v59 = vld [vmem:[%s4580_s6 + $0x2] ss:$0 sm:$0xff] }
 0x3ac   : > { %v971_v18 = vpop.xlane.xlu0 %970 }
 0x3ad   : > { %3857 = vpow2.f32 %v975_v16  ;;  %v977_v19 = vmul.f32 1.442695, %v973_v17  ;;  %v974_v20 = vsub.f32 %v961_v52, %v971_v18  ;;  %v1443_v16 = vsel %vm1006_vm2, %v1435_v15, 0 }
 0x3af   : > { %3859 = vpow2.f32 %v977_v19  ;;  %v979_v21 = vmul.f32 1.442695, %v974_v20 }
 0x3b1   : > { %3861 = vpow2.f32 %v979_v21 }
 0x3b7   : > { %v3858_v22 = vpop.eup %3857 }
 0x3b8   : > { %v981_v23 = vsel %vm962_vm4, %v3858_v22, 0.0 }
 0x3b9   : > { %v3860_v24 = vpop.eup %3859  ;;  %982 = vadd.xlane.f32.xlu1 %v981_v23 }
 0x3ba   : > { %v984_v25 = vsel %vm962_vm4, %v3860_v24, 0.0 }
 0x3bb   : > { %v3862_v26 = vpop.eup %3861  ;;  %985 = vadd.xlane.f32.xlu0 %v984_v25 }
 0x3bc   : > { %v987_v27 = vsel %vm962_vm4, %v3862_v26, 0.0 }
 0x3bd   : > { %988 = vadd.xlane.f32.xlu1 %v987_v27 }
 0x446   : > { %v983_v29 = vpop.xlane.xlu1 %982 }
 0x447   : > { %3863 = vrcp.f32 %v983_v29 }
 0x448   : > { %v986_v30 = vpop.xlane.xlu0 %985 }
 0x449   : > { %3865 = vrcp.f32 %v986_v30 }
 0x44a   : > { %v989_v31 = vpop.xlane.xlu1 %988 }
 0x44b   : > { %3867 = vrcp.f32 %v989_v31 }
 0x451   : > { %v3864_v32 = vpop.eup %3863 }
 0x452   : > { %v993_v34 = vmul.f32 %v3864_v32, %v3858_v22 }
 0x453   : > { %v3866_v33 = vpop.eup %3865 }
 0x454   : > { %v994_v35 = vmul.f32 %v3866_v33, %v3860_v24 }
 0x455   : > { %v3868_v36 = vpop.eup %3867 }
 0x456   : > { %v995_v37 = vmul.f32 %v3868_v36, %v3862_v26  ;;  %v996_v38 = vpack.c.bf16 %v994_v35, %v993_v34 }
 0x458   : > { %3565 = vmatprep.mubr.msk.bf16.mxu0 %vm962_vm4, %v996_v38  ;;  %v997_v39 = vpack.c.bf16 %v995_v37, %v995_v37 }
 0x45a   : > { %3566 = vmatmul.mubr.msk.bf16.vlgmr.msra.gmra.mrb[8].mxu0 %vm962_vm4, %v997_v39 }
 0x45b   : > { %3582 = vmatpush3.bf16.msra.mxu0 %v3791_v28  ;;  %3589 = vmatprep.mubr.msk.bf16.mxu0 %vm558_vm0, %v4091_v56 }
 0x45c   : > { %3583 = vmatprep.subr.bf16.mxu0 %v3792_v42 }
 0x45f   : > { %3584 = vmatpush3.bf16.msra.mxu0 %v3792_v42 }
 0x460   : > { %3585 = vmatprep.subr.bf16.mxu0 %v3793_v43 }
 0x463   : > { %3586 = vmatpush3.bf16.msra.mxu0 %v3793_v43 }
 0x464   : > { %3587 = vmatprep.subr.bf16.mxu0 %v3794_v44 }
 0x467   : > { %3588 = vmatpush3.bf16.msra.mxu0 %v3794_v44 }
 0x46a   : > { %3590 = vmatmul.mubr.msk.bf16.vlgmr.msra.gmra.mrb[12].mxu0 %vm558_vm0, %v4089_v55 }
 0x46b   : > { %3609 = vmatprep.mubr.msk.bf16.mxu0 %vm893_vm1, %v1329_v1 }
 0x52d   : > { %v3567_v47 = vpop.f32.mrb[8].mxu0 }
 0x52e   : > { %v1044_v48 = vpop.f32.mrb[9].mxu0  ;;  %v1059_v52 = vpack.c.bf16 %v3567_v47, %v3567_v47 }
 0x52f   : > { %v3568_v49 = vpop.f32.mrb[10].mxu0 }
 0x530   : > { %v1047_v50 = vpop.f32.mrb[11].mxu0 }
 0x531   : > { %v1058_v51 = vpack.c.bf16 %v1047_v50, %v1044_v48 }
 0x533   : > { %3629 = vmatprep.mubr.msk.bf16.mxu1 %vm893_vm1, %v1058_v51 }
 0x534   : > { %3630 = vmatmul.mubr.msk.bf16.vlgmr.msra.gmra.mrb[16].mxu1 %vm893_vm1, %v1059_v52 }
 0x535   : > { %3646 = vmatpush3.bf16.msra.mxu1 %v3796_v46  ;;  %3653 = vmatprep.mubr.msk.bf16.mxu1 %vm558_vm0, %v4091_v56 }
 0x536   : > { %3647 = vmatprep.subr.bf16.mxu1 %v3797_v53 }
 0x539   : > { %3648 = vmatpush3.bf16.msra.mxu1 %v3797_v53 }
 0x53a   : > { %3649 = vmatprep.subr.bf16.mxu1 %v3798_v54 }
 0x53d   : > { %v3591_v58 = vpop.f32.mrb[12].mxu0  ;;  %3650 = vmatpush3.bf16.msra.mxu1 %v3798_v54 }
 0x53e   : > { %v1226_v61 = vpop.f32.mrb[13].mxu0  ;;  %3651 = vmatprep.subr.bf16.mxu1 %v3799_v57  ;;  %v1235_v0 = vadd.f32 %v3591_v58, %v3182_v60 }
 0x53f   : > { %v3592_v62 = vpop.f32.mrb[14].mxu0  ;;  %v1227_v1 = vadd.f32 %v3182_v60, %v1226_v61 }
 0x540   : > { %v1229_v63 = vpop.f32.mrb[15].mxu0  ;;  %v1332_v9 = vpack.c.bf16 %v1235_v0, %v1235_v0  ;;  %v3800_v62 = vld [vmem:[%s4583_s9 + $0x8] sm:$0xff]  }
 0x541   : > { %v1230_v7 = vadd.f32 %v3182_v60, %v1229_v63  ;;  %3652 = vmatpush3.bf16.msra.mxu1 %v3799_v57 }
 0x542   : > { %v1343_v11 = vsel %vm893_vm1, %v1332_v9, 0 }
 0x543   : > { %v1331_v8 = vpack.c.bf16 %v1230_v7, %v1227_v1 }
 0x544   : > { %3654 = vmatmul.mubr.msk.bf16.vlgmr.msra.gmra.mrb[20].mxu1 %vm558_vm0, %v4089_v55 }
 0x545   : > { %3752 = vmatprep.subr.msk.bf16.mxu0 %vm893_vm1, %v1331_v8  ;;  %v1340_v10 = vsel %vm893_vm1, %v1331_v8, 0 }
 0x546   : > { %3606 = vmatpush3.bf16.xpose.msra.mxu0 %v1340_v10 }
 0x547   : > { %3753 = vmatprep.subr.msk.bf16.mxu0 %vm893_vm1, %v1332_v9 }
 0x54e   : > { %3608 = vmatpush3.bf16.xpose.msra.mxu0 %v1343_v11 }
 0x54f   : > { %3613 = vmatprep.subr.bf16.mxu0 %v4193_v12 }
 0x555   : > { %3610 = vmatmul.mubr.msk.bf16.vlgmr.msra.gmra.mrb[16].mxu0 %vm893_vm1, %v1330_v14 }
 0x556   : > { %3614 = vmatpush3.bf16.msra.mxu0 %v4193_v12 }
 0x557   : > { %3754 = vmatprep.subr.msk.bf16.mxu0 %vm1006_vm2, %v1435_v15 }
 0x55a   : > { %3616 = vmatpush3.bf16.msra.mxu0 %v1443_v16  ;;  %v3801_v16 = vld [vmem:[%s4577_s3 + $0x40] sm:$0xff]  }
 0x55b   : > { %3621 = vmatprep.subr.bf16.mxu0 %v3800_v62 }
 0x607   : > { %v4254_v17 = vpop.f32.mrb[16].mxu1 }
 0x608   : > { %v4256_v18 = vpop.f32.mrb[17].mxu1 }
 0x609   : > { %v3632_v19 = vpop.f32.mrb[18].mxu1 }
 0x60a   : > { %v4258_v20 = vpop.f32.mrb[19].mxu1 }
 0x617   : > { %v3655_v5 = vpop.f32.mrb[20].mxu1 }
 0x618   : > { %v1782_v6 = vpop.f32.mrb[21].mxu1  ;;  %v1791_v22 = vadd.f32 %v3655_v5, %v3242_v59 }
 0x619   : > { %v3656_v21 = vpop.f32.mrb[22].mxu1  ;;  %v1783_v23 = vadd.f32 %v3242_v59, %v1782_v6 }
 0x61a   : > { %v1785_v12 = vpop.f32.mrb[23].mxu1  ;;  %v1888_v26 = vpack.c.bf16 %v1791_v22, %v1791_v22  ;;  %v3802_v22 = vld [vmem:[%s4577_s3 + $0x48] sm:$0xff]  }
 0x61b   : > { %v1786_v24 = vadd.f32 %v3242_v59, %v1785_v12 }
 0x61c   : > { %v1899_v28 = vsel %vm893_vm1, %v1888_v26, 0 }
 0x61d   : > { %v1887_v25 = vpack.c.bf16 %v1786_v24, %v1783_v23  ;;  %v3803_v23 = vld [vmem:[%s4577_s3 + $0x50] sm:$0xff]   ;;  %v3804_v24 = vld [vmem:[%s4577_s3 + $0x58] sm:$0xff]  }
 0x61f   : > { %3755 = vmatprep.subr.msk.bf16.mxu1 %vm893_vm1, %v1887_v25  ;;  %v1896_v27 = vsel %vm893_vm1, %v1887_v25, 0  ;;  %v3805_v25 = vld [vmem:[%s4581_s7 + $0x40] sm:$0xff]  }
 0x620   : > { %3670 = vmatpush3.bf16.xpose.msra.mxu1 %v1896_v27  ;;  %v3807_v27 = vld [vmem:[%s4581_s7 + $0x50] sm:$0xff]  }
 0x621   : > { %3756 = vmatprep.subr.msk.bf16.mxu1 %vm893_vm1, %v1888_v26  ;;  %v3806_v26 = vld [vmem:[%s4581_s7 + $0x48] sm:$0xff]  }
 0x628   : > { %v3611_v29 = vpop.f32.mrb[16].mxu0  ;;  %3672 = vmatpush3.bf16.xpose.msra.mxu1 %v1899_v28  ;;  %v3808_v28 = vld [vmem:[%s4581_s7 + $0x58] sm:$0xff]  }
 0x629   : > { %v1379_v30 = vpop.f32.mrb[17].mxu0  ;;  %v1395_v31 = vmul.f32 0.25, %v3611_v29 }
 0x62a   : > { %v1393_v32 = vmul.f32 0.25, %v1379_v30  ;;  %v3612_v33 = vpop.f32.mrb[18].mxu0 }
 0x62b   : > { %v1382_v34 = vpop.f32.mrb[19].mxu0  ;;  %v1398_v39 = vsel %vm621_vm3, %v1395_v31, -1e+30 }
 0x62c   : > { %v1394_v35 = vmul.f32 0.25, %v1382_v34  ;;  %v1396_v36 = vsel %vm621_vm3, %v1393_v32, -1e+30  ;;  %v1405_v43 = vsel %vm962_vm4, %v1398_v39, -inf }
 0x62d   : > { %v1399_v37 = vsel %vm962_vm4, %v1396_v36, -inf }
 0x62e   : > { %1400 = vmax.xlane.f32.xlu0 %v1399_v37  ;;  %v1397_v38 = vsel %vm621_vm3, %v1394_v35, -1e+30  ;;  %v3226_v37 = vld [vmem:[%s4578_s4 + $0x2] ss:$0 sm:$0xff] }
 0x62f   : > { %v1402_v42 = vsel %vm962_vm4, %v1397_v38, -inf }
 0x630   : > { %1403 = vmax.xlane.f32.xlu1 %v1402_v42 }
 0x632   : > { %1406 = vmax.xlane.f32.xlu0 %v1405_v43 }
 0x6bb   : > { %v1401_v44 = vpop.xlane.xlu0 %1400 }
 0x6bc   : > { %v1408_v45 = vsub.f32 %v1396_v36, %v1401_v44 }
 0x6bd   : > { %v1404_v46 = vpop.xlane.xlu1 %1403 }
 0x6be   : > { %v1411_v47 = vmul.f32 1.442695, %v1408_v45  ;;  %v1409_v48 = vsub.f32 %v1397_v38, %v1404_v46 }
 0x6bf   : > { %v1407_v49 = vpop.xlane.xlu0 %1406 }
 0x6c0   : > { %3869 = vpow2.f32 %v1411_v47  ;;  %v1413_v50 = vmul.f32 1.442695, %v1409_v48  ;;  %v1410_v51 = vsub.f32 %v1398_v39, %v1407_v49 }
 0x6c2   : > { %3871 = vpow2.f32 %v1413_v50  ;;  %v1415_v52 = vmul.f32 1.442695, %v1410_v51 }
 0x6c4   : > { %3873 = vpow2.f32 %v1415_v52 }
 0x6ca   : > { %v3870_v53 = vpop.eup %3869 }
 0x6cb   : > { %v1417_v54 = vsel %vm962_vm4, %v3870_v53, 0.0 }
 0x6cc   : > { %v3872_v57 = vpop.eup %3871  ;;  %1418 = vadd.xlane.f32.xlu1 %v1417_v54 }
 0x6cd   : > { %v1420_v58 = vsel %vm962_vm4, %v3872_v57, 0.0 }
 0x6ce   : > { %v3874_v60 = vpop.eup %3873  ;;  %1421 = vadd.xlane.f32.xlu0 %v1420_v58 }
 0x6cf   : > { %v1423_v61 = vsel %vm962_vm4, %v3874_v60, 0.0 }
 0x6d0   : > { %1424 = vadd.xlane.f32.xlu1 %v1423_v61 }
 0x759   : > { %v1419_v63 = vpop.xlane.xlu1 %1418 }
 0x75a   : > { %3875 = vrcp.f32 %v1419_v63 }
 0x75b   : > { %v1422_v0 = vpop.xlane.xlu0 %1421 }
 0x75c   : > { %3877 = vrcp.f32 %v1422_v0 }
 0x75d   : > { %v1425_v1 = vpop.xlane.xlu1 %1424 }
 0x75e   : > { %3879 = vrcp.f32 %v1425_v1 }
 0x764   : > { %v3876_v7 = vpop.eup %3875 }
 0x765   : > { %v1429_v9 = vmul.f32 %v3876_v7, %v3870_v53 }
 0x766   : > { %v3878_v8 = vpop.eup %3877 }
 0x767   : > { %v1430_v10 = vmul.f32 %v3878_v8, %v3872_v57 }
 0x768   : > { %v3880_v11 = vpop.eup %3879 }
 0x769   : > { %v1431_v13 = vmul.f32 %v3880_v11, %v3874_v60  ;;  %v1432_v14 = vpack.c.bf16 %v1430_v10, %v1429_v9 }
 0x76b   : > { %3617 = vmatprep.mubr.msk.bf16.mxu0 %vm962_vm4, %v1432_v14  ;;  %v1433_v15 = vpack.c.bf16 %v1431_v13, %v1431_v13 }
 0x76d   : > { %3618 = vmatmul.mubr.msk.bf16.vlgmr.msra.gmra.mrb[20].mxu0 %vm962_vm4, %v1433_v15 }
 0x76e   : > { %3622 = vmatpush3.bf16.msra.mxu0 %v3800_v62 }
 0x76f   : > { %3633 = vmatprep.subr.bf16.mxu0 %v3801_v16 }
 0x840   : > { %v3619_v19 = vpop.f32.mrb[20].mxu0 }
 0x841   : > { %v1479_v5 = vpop.f32.mrb[21].mxu0  ;;  %v1494_v12 = vpack.c.bf16 %v3619_v19, %v3619_v19 }
 0x842   : > { %v3620_v59 = vpop.f32.mrb[22].mxu0 }
 0x843   : > { %v1482_v6 = vpop.f32.mrb[23].mxu0 }
 0x844   : > { %v1493_v21 = vpack.c.bf16 %v1482_v6, %v1479_v5 }
 0x846   : > { %3623 = vmatprep.mubr.msk.bf16.mxu0 %vm893_vm1, %v1493_v21 }
 0x847   : > { %3624 = vmatmul.mubr.msk.bf16.vlgmr.msra.gmra.mrb[24].mxu0 %vm893_vm1, %v1494_v12 }
 0x848   : > { %3634 = vmatpush3.bf16.msra.mxu0 %v3801_v16  ;;  %3641 = vmatprep.mubr.msk.bf16.mxu0 %vm558_vm0, %v4091_v56 }
 0x849   : > { %3635 = vmatprep.subr.bf16.mxu0 %v3802_v22 }
 0x84c   : > { %3636 = vmatpush3.bf16.msra.mxu0 %v3802_v22 }
 0x84d   : > { %3637 = vmatprep.subr.bf16.mxu0 %v3803_v23 }
 0x850   : > { %3638 = vmatpush3.bf16.msra.mxu0 %v3803_v23 }
 0x851   : > { %3639 = vmatprep.subr.bf16.mxu0 %v3804_v24 }
 0x854   : > { %3640 = vmatpush3.bf16.msra.mxu0 %v3804_v24 }
 0x855   : > { %3657 = vmatprep.subr.bf16.mxu0 %v3805_v25 }
 0x857   : > { %3642 = vmatmul.mubr.msk.bf16.vlgmr.msra.gmra.mrb[28].mxu0 %vm558_vm0, %v4089_v55 }
 0x858   : > { %3658 = vmatpush3.bf16.msra.mxu0 %v3805_v25  ;;  %3665 = vmatprep.mubr.msk.bf16.mxu0 %vm558_vm0, %v4091_v56 }
 0x859   : > { %3659 = vmatprep.subr.bf16.mxu0 %v3806_v26 }
 0x85c   : > { %3660 = vmatpush3.bf16.msra.mxu0 %v3806_v26 }
 0x85d   : > { %3661 = vmatprep.subr.bf16.mxu0 %v3807_v27 }
 0x860   : > { %3662 = vmatpush3.bf16.msra.mxu0 %v3807_v27 }
 0x861   : > { %3663 = vmatprep.subr.bf16.mxu0 %v3808_v28 }
 0x864   : > { %3664 = vmatpush3.bf16.msra.mxu0 %v3808_v28  ;;  %v3809_v28 = vld [vmem:[%s4577_s3 + $0x60] sm:$0xff]  }
 0x867   : > { %3666 = vmatmul.mubr.msk.bf16.vlgmr.msra.gmra.mrb[32].mxu0 %vm558_vm0, %v4089_v55 }
 0x91a   : > { %v3625_v29 = vpop.f32.mrb[24].mxu0 }
 0x91b   : > { %v4319_v30 = vadd.f32 %v4254_v17, %v3625_v29  ;;  %v1544_v31 = vpop.f32.mrb[25].mxu0  ;;  %v3817_v29 = vld [vmem:[%s4583_s9 + $0x10] sm:$0xff]  }
 0x91c   : > { %v4322_v32 = vadd.f32 %v4256_v18, %v1544_v31  ;;  %v3626_v33 = vpop.f32.mrb[26].mxu0  ;;  %3685 = vmatprep.subr.bf16.mxu1 %v3817_v29 }
 0x91d   : > { %v1547_v34 = vpop.f32.mrb[27].mxu0 }
 0x91e   : > { %v4325_v35 = vadd.f32 %v4258_v20, %v1547_v34  ;;  %v3258_v20 = vld [vmem:[%s4582_s8 + $0x2] ss:$0 sm:$0xff] }
 0x92a   : > { %v3643_v36 = vpop.f32.mrb[28].mxu0 }
 0x92b   : > { %v1693_v38 = vpop.f32.mrb[29].mxu0  ;;  %v1702_v42 = vadd.f32 %v3643_v36, %v3226_v37 }
 0x92c   : > { %v3644_v39 = vpop.f32.mrb[30].mxu0  ;;  %v1694_v17 = vadd.f32 %v3226_v37, %v1693_v38 }
 0x92d   : > { %v1696_v43 = vpop.f32.mrb[31].mxu0  ;;  %v1886_v46 = vpack.c.bf16 %v1702_v42, %v1702_v42 }
 0x92e   : > { %v1697_v44 = vadd.f32 %v3226_v37, %v1696_v43 }
 0x930   : > { %v1885_v45 = vpack.c.bf16 %v1697_v44, %v1694_v17 }
 0x932   : > { %3673 = vmatprep.mubr.msk.bf16.mxu1 %vm893_vm1, %v1885_v45  ;;  %v3810_v45 = vld [vmem:[%s4577_s3 + $0x68] sm:$0xff]  }
 0x933   : > { %3674 = vmatmul.mubr.msk.bf16.vlgmr.msra.gmra.mrb[24].mxu1 %vm893_vm1, %v1886_v46  ;;  %v3811_v46 = vld [vmem:[%s4577_s3 + $0x70] sm:$0xff]  }
 0x934   : > { %3686 = vmatpush3.bf16.msra.mxu1 %v3817_v29 }
 0x93a   : > { %v3667_v18 = vpop.f32.mrb[32].mxu0 }
 0x93b   : > { %v1871_v47 = vpop.f32.mrb[33].mxu0  ;;  %v1880_v50 = vadd.f32 %v3667_v18, %v3258_v20  ;;  %v3812_v18 = vld [vmem:[%s4577_s3 + $0x78] sm:$0xff]  }
 0x93c   : > { %v3668_v48 = vpop.f32.mrb[34].mxu0  ;;  %v1872_v51 = vadd.f32 %v3258_v20, %v1871_v47  ;;  %v3814_v47 = vld [vmem:[%s4581_s7 + $0x68] sm:$0xff]  }
 0x93d   : > { %v1874_v49 = vpop.f32.mrb[35].mxu0  ;;  %v1991_v54 = vpack.c.bf16 %v1880_v50, %v1880_v50  ;;  %v3815_v48 = vld [vmem:[%s4581_s7 + $0x70] sm:$0xff]   ;;  %v3818_v50 = vld [vmem:[%s4579_s5 + $0x60] sm:$0xff]  }
 0x93e   : > { %v1875_v52 = vadd.f32 %v3258_v20, %v1874_v49  ;;  %v3813_v20 = vld [vmem:[%s4581_s7 + $0x60] sm:$0xff]   ;;  %v3816_v49 = vld [vmem:[%s4581_s7 + $0x78] sm:$0xff]   ;;  %3703 = vmatprep.subr.bf16.mxu1 %v3818_v50 }
 0x93f   : > { %v1999_v57 = vsel %vm1006_vm2, %v1991_v54, 0 }
 0x940   : > { %v1990_v53 = vpack.c.bf16 %v1875_v52, %v1872_v51 }
 0x942   : > { %3677 = vmatprep.subr.bf16.mxu0 %v1990_v53 }
 0x943   : > { %3678 = vmatpush3.bf16.msra.mxu0 %v1990_v53 }
 0x944   : > { %3757 = vmatprep.subr.msk.bf16.mxu0 %vm1006_vm2, %v1991_v54 }
 0x947   : > { %3680 = vmatpush3.bf16.msra.mxu0 %v1999_v57 }
 0x948   : > { %3691 = vmatprep.subr.bf16.mxu0 %v3809_v28 }
 0xa06   : > { %v3675_v58 = vpop.f32.mrb[24].mxu1 }
 0xa07   : > { %v1935_v60 = vpop.f32.mrb[25].mxu1  ;;  %v1951_v61 = vmul.f32 0.25, %v3675_v58 }
 0xa08   : > { %v1949_v62 = vmul.f32 0.25, %v1935_v60  ;;  %v3676_v63 = vpop.f32.mrb[26].mxu1  ;;  %v3819_v60 = vld [vmem:[%s4579_s5 + $0x68] sm:$0xff]  }
 0xa09   : > { %v1938_v0 = vpop.f32.mrb[27].mxu1  ;;  %v1954_v10 = vsel %vm621_vm3, %v1951_v61, -1e+30  ;;  %v3820_v61 = vld [vmem:[%s4579_s5 + $0x70] sm:$0xff]   ;;  %v3283_v63 = vld [vmem:[%s4578_s4 + $0x3] ss:$0 sm:$0xff] }
 0xa0a   : > { %v1950_v1 = vmul.f32 0.25, %v1938_v0  ;;  %v1952_v7 = vsel %vm621_vm3, %v1949_v62, -1e+30  ;;  %v1961_v13 = vsel %vm962_vm4, %v1954_v10, -inf  ;;  %v3821_v62 = vld [vmem:[%s4579_s5 + $0x78] sm:$0xff]  }
 0xa0b   : > { %v1955_v8 = vsel %vm962_vm4, %v1952_v7, -inf }
 0xa0c   : > { %1956 = vmax.xlane.f32.xlu0 %v1955_v8  ;;  %v1953_v9 = vsel %vm621_vm3, %v1950_v1, -1e+30 }
 0xa0d   : > { %v1958_v11 = vsel %vm962_vm4, %v1953_v9, -inf }
 0xa0e   : > { %1959 = vmax.xlane.f32.xlu1 %v1958_v11 }
 0xa10   : > { %1962 = vmax.xlane.f32.xlu0 %v1961_v13 }
 0xa99   : > { %v1957_v14 = vpop.xlane.xlu0 %1956 }
 0xa9a   : > { %v1964_v15 = vsub.f32 %v1952_v7, %v1957_v14  ;;  %v3315_v14 = vld [vmem:[%s4582_s8 + $0x3] ss:$0 sm:$0xff] }
 0xa9b   : > { %v1960_v16 = vpop.xlane.xlu1 %1959 }
 0xa9c   : > { %v1967_v19 = vmul.f32 1.442695, %v1964_v15  ;;  %v1965_v5 = vsub.f32 %v1953_v9, %v1960_v16 }
 0xa9d   : > { %v1963_v59 = vpop.xlane.xlu0 %1962 }
 0xa9e   : > { %3881 = vpow2.f32 %v1967_v19  ;;  %v1969_v6 = vmul.f32 1.442695, %v1965_v5  ;;  %v1966_v21 = vsub.f32 %v1954_v10, %v1963_v59 }
 0xaa0   : > { %3883 = vpow2.f32 %v1969_v6  ;;  %v1971_v12 = vmul.f32 1.442695, %v1966_v21 }
 0xaa2   : > { %3885 = vpow2.f32 %v1971_v12 }
 0xaa8   : > { %v3882_v22 = vpop.eup %3881 }
 0xaa9   : > { %v1973_v23 = vsel %vm962_vm4, %v3882_v22, 0.0 }
 0xaaa   : > { %v3884_v24 = vpop.eup %3883  ;;  %1974 = vadd.xlane.f32.xlu1 %v1973_v23 }
 0xaab   : > { %v1976_v25 = vsel %vm962_vm4, %v3884_v24, 0.0 }
 0xaac   : > { %v3886_v26 = vpop.eup %3885  ;;  %1977 = vadd.xlane.f32.xlu0 %v1976_v25 }
 0xaad   : > { %v1979_v27 = vsel %vm962_vm4, %v3886_v26, 0.0 }
 0xaae   : > { %1980 = vadd.xlane.f32.xlu1 %v1979_v27 }
 0xb37   : > { %v1975_v31 = vpop.xlane.xlu1 %1974 }
 0xb38   : > { %3887 = vrcp.f32 %v1975_v31  ;;  %v3299_v31 = vld [vmem:[%s4580_s6 + $0x3] ss:$0 sm:$0xff] }
 0xb39   : > { %v1978_v33 = vpop.xlane.xlu0 %1977 }
 0xb3a   : > { %3889 = vrcp.f32 %v1978_v33 }
 0xb3b   : > { %v1981_v34 = vpop.xlane.xlu1 %1980 }
 0xb3c   : > { %3891 = vrcp.f32 %v1981_v34 }
 0xb42   : > { %v3888_v36 = vpop.eup %3887 }
 0xb43   : > { %v1985_v38 = vmul.f32 %v3888_v36, %v3882_v22 }
 0xb44   : > { %v3890_v37 = vpop.eup %3889 }
 0xb45   : > { %v1986_v39 = vmul.f32 %v3890_v37, %v3884_v24 }
 0xb46   : > { %v3892_v42 = vpop.eup %3891 }
 0xb47   : > { %v1987_v43 = vmul.f32 %v3892_v42, %v3886_v26  ;;  %v1988_v17 = vpack.c.bf16 %v1986_v39, %v1985_v38 }
 0xb49   : > { %3681 = vmatprep.mubr.msk.bf16.mxu0 %vm962_vm4, %v1988_v17  ;;  %v1989_v44 = vpack.c.bf16 %v1987_v43, %v1987_v43 }
 0xb4b   : > { %3682 = vmatmul.mubr.msk.bf16.vlgmr.msra.gmra.mrb[36].mxu0 %vm962_vm4, %v1989_v44 }
 0xb4c   : > { %3692 = vmatpush3.bf16.msra.mxu0 %v3809_v28  ;;  %3699 = vmatprep.mubr.msk.bf16.mxu0 %vm558_vm0, %v4091_v56 }
 0xb4d   : > { %3693 = vmatprep.subr.bf16.mxu0 %v3810_v45 }
 0xb50   : > { %3694 = vmatpush3.bf16.msra.mxu0 %v3810_v45 }
 0xb51   : > { %3695 = vmatprep.subr.bf16.mxu0 %v3811_v46 }
 0xb54   : > { %3696 = vmatpush3.bf16.msra.mxu0 %v3811_v46 }
 0xb55   : > { %3697 = vmatprep.subr.bf16.mxu0 %v3812_v18 }
 0xb58   : > { %3698 = vmatpush3.bf16.msra.mxu0 %v3812_v18 }
 0xb59   : > { %3715 = vmatprep.subr.bf16.mxu0 %v3813_v20 }
 0xb5b   : > { %3700 = vmatmul.mubr.msk.bf16.vlgmr.msra.gmra.mrb[40].mxu0 %vm558_vm0, %v4089_v55 }
 0xb5c   : > { %3716 = vmatpush3.bf16.msra.mxu0 %v3813_v20  ;;  %3723 = vmatprep.mubr.msk.bf16.mxu0 %vm558_vm0, %v4091_v56 }
 0xb5d   : > { %3717 = vmatprep.subr.bf16.mxu0 %v3814_v47 }
 0xb60   : > { %3718 = vmatpush3.bf16.msra.mxu0 %v3814_v47 }
 0xb61   : > { %3719 = vmatprep.subr.bf16.mxu0 %v3815_v48 }
 0xb64   : > { %3720 = vmatpush3.bf16.msra.mxu0 %v3815_v48 }
 0xb65   : > { %3721 = vmatprep.subr.bf16.mxu0 %v3816_v49 }
 0xb68   : > { %3722 = vmatpush3.bf16.msra.mxu0 %v3816_v49 }
 0xb6b   : > { %3724 = vmatmul.mubr.msk.bf16.vlgmr.msra.gmra.mrb[44].mxu0 %vm558_vm0, %v4089_v55 }
 0xc1e   : > { %v3683_v51 = vpop.f32.mrb[36].mxu0 }
 0xc1f   : > { %v2035_v52 = vpop.f32.mrb[37].mxu0  ;;  %v2050_v58 = vpack.c.bf16 %v3683_v51, %v3683_v51 }
 0xc20   : > { %v3684_v53 = vpop.f32.mrb[38].mxu0 }
 0xc21   : > { %v2038_v54 = vpop.f32.mrb[39].mxu0 }
 0xc22   : > { %v2049_v57 = vpack.c.bf16 %v2038_v54, %v2035_v52 }
 0xc24   : > { %3687 = vmatprep.mubr.msk.bf16.mxu1 %vm893_vm1, %v2049_v57 }
 0xc25   : > { %3688 = vmatmul.mubr.msk.bf16.vlgmr.msra.gmra.mrb[28].mxu1 %vm893_vm1, %v2050_v58 }
 0xc26   : > { %3704 = vmatpush3.bf16.msra.mxu1 %v3818_v50  ;;  %3711 = vmatprep.mubr.msk.bf16.mxu1 %vm558_vm0, %v4091_v56 }
 0xc27   : > { %3705 = vmatprep.subr.bf16.mxu1 %v3819_v60 }
 0xc2a   : > { %3706 = vmatpush3.bf16.msra.mxu1 %v3819_v60 }
 0xc2b   : > { %3707 = vmatprep.subr.bf16.mxu1 %v3820_v61 }
 0xc2e   : > { %v3701_v0 = vpop.f32.mrb[40].mxu0  ;;  %3708 = vmatpush3.bf16.msra.mxu1 %v3820_v61 }
 0xc2f   : > { %v2201_v1 = vadd.f32 %v3701_v0, %v3283_v63  ;;  %v2192_v7 = vpop.f32.mrb[41].mxu0  ;;  %3709 = vmatprep.subr.bf16.mxu1 %v3821_v62 }
 0xc30   : > { %v3702_v56 = vpop.f32.mrb[42].mxu0  ;;  %v2193_v9 = vadd.f32 %v3283_v63, %v2192_v7 }
 0xc31   : > { %v2195_v8 = vpop.f32.mrb[43].mxu0  ;;  %v2385_v43 = vpack.c.bf16 %v2201_v1, %v2201_v1 }
 0xc32   : > { %v2196_v10 = vadd.f32 %v3283_v63, %v2195_v8  ;;  %3710 = vmatpush3.bf16.msra.mxu1 %v3821_v62 }
 0xc34   : > { %v2384_v11 = vpack.c.bf16 %v2196_v10, %v2193_v9 }
 0xc35   : > { %3712 = vmatmul.mubr.msk.bf16.vlgmr.msra.gmra.mrb[32].mxu1 %vm558_vm0, %v4089_v55 }
 0xc36   : > { %3731 = vmatprep.mubr.msk.bf16.mxu1 %vm893_vm1, %v2384_v11  ;;  %v3822_v11 = vld [vmem:[%s4583_s9 + $0x18] sm:$0xff]  }
 0xc3e   : > { %v3725_v13 = vpop.f32.mrb[44].mxu0 }
 0xc3f   : > { %v2370_v15 = vpop.f32.mrb[45].mxu0  ;;  %v2379_v5 = vadd.f32 %v3725_v13, %v3315_v14 }
 0xc40   : > { %v3726_v16 = vpop.f32.mrb[46].mxu0  ;;  %v2371_v59 = vadd.f32 %v3315_v14, %v2370_v15 }
 0xc41   : > { %v2373_v19 = vpop.f32.mrb[47].mxu0  ;;  %v2490_v12 = vpack.c.bf16 %v2379_v5, %v2379_v5 }
 0xc42   : > { %v2374_v6 = vadd.f32 %v3315_v14, %v2373_v19 }
 0xc43   : > { %v2498_v55 = vsel %vm1006_vm2, %v2490_v12, 0 }
 0xc44   : > { %v2489_v21 = vpack.c.bf16 %v2374_v6, %v2371_v59 }
 0xc46   : > { %3735 = vmatprep.subr.bf16.mxu0 %v2489_v21 }
 0xc47   : > { %3736 = vmatpush3.bf16.msra.mxu0 %v2489_v21 }
 0xc48   : > { %3760 = vmatprep.subr.msk.bf16.mxu0 %vm1006_vm2, %v2490_v12 }
 0xc4b   : > { %3738 = vmatpush3.bf16.msra.mxu0 %v2498_v55 }
 0xcf8   : > { %v3689_v22 = vpop.f32.mrb[28].mxu1 }
 0xcf9   : > { %v4414_v23 = vadd.f32 %v3689_v22, %v4319_v30  ;;  %v2100_v24 = vpop.f32.mrb[29].mxu1 }
 0xcfa   : > { %v4417_v25 = vadd.f32 %v2100_v24, %v4322_v32  ;;  %v3690_v26 = vpop.f32.mrb[30].mxu1 }
 0xcfb   : > { %v2103_v27 = vpop.f32.mrb[31].mxu1 }
 0xcfc   : > { %v4420_v28 = vadd.f32 %v2103_v27, %v4325_v35 }
 0xd08   : > { %v3713_v29 = vpop.f32.mrb[32].mxu1 }
 0xd09   : > { %v2281_v33 = vpop.f32.mrb[33].mxu1  ;;  %v2290_v37 = vadd.f32 %v3713_v29, %v3299_v31 }
 0xd0a   : > { %v3714_v34 = vpop.f32.mrb[34].mxu1  ;;  %v2282_v30 = vadd.f32 %v3299_v31, %v2281_v33 }
 0xd0b   : > { %v2284_v36 = vpop.f32.mrb[35].mxu1  ;;  %v2387_v42 = vpack.c.bf16 %v2290_v37, %v2290_v37 }
 0xd0c   : > { %v2285_v38 = vadd.f32 %v3299_v31, %v2284_v36 }
 0xd0d   : > { %v2398_v35 = vsel %vm893_vm1, %v2387_v42, 0 }
 0xd0e   : > { %v2386_v39 = vpack.c.bf16 %v2285_v38, %v2282_v30  ;;  %v3331_v38 = vld [vmem:[%s4584_s10] ss:$0 sm:$0xff] }
 0xd10   : > { %3758 = vmatprep.subr.msk.bf16.mxu1 %vm893_vm1, %v2386_v39  ;;  %v2395_v32 = vsel %vm893_vm1, %v2386_v39, 0 }
 0xd11   : > { %3728 = vmatpush3.bf16.xpose.msra.mxu1 %v2395_v32 }
 0xd12   : > { %3759 = vmatprep.subr.msk.bf16.mxu1 %vm893_vm1, %v2387_v42 }
 0xd19   : > { %3730 = vmatpush3.bf16.xpose.msra.mxu1 %v2398_v35 }
 0xd1a   : > { %3743 = vmatprep.subr.bf16.mxu1 %v3822_v11 }
 0xd20   : > { %3732 = vmatmul.mubr.msk.bf16.vlgmr.msra.gmra.mrb[36].mxu1 %vm893_vm1, %v2385_v43 }
 0xd21   : > { %3744 = vmatpush3.bf16.msra.mxu1 %v3822_v11 }
 0xdf3   : > { %v3733_v17 = vpop.f32.mrb[36].mxu1 }
 0xdf4   : > { %v2434_v44 = vpop.f32.mrb[37].mxu1  ;;  %v2450_v45 = vmul.f32 0.25, %v3733_v17 }
 0xdf5   : > { %v2448_v46 = vmul.f32 0.25, %v2434_v44  ;;  %v3734_v18 = vpop.f32.mrb[38].mxu1 }
 0xdf6   : > { %v2437_v20 = vpop.f32.mrb[39].mxu1  ;;  %v2453_v51 = vsel %vm621_vm3, %v2450_v45, -1e+30 }
 0xdf7   : > { %v2449_v47 = vmul.f32 0.25, %v2437_v20  ;;  %v2451_v48 = vsel %vm621_vm3, %v2448_v46, -1e+30  ;;  %v2460_v53 = vsel %vm962_vm4, %v2453_v51, -inf }
 0xdf8   : > { %v2454_v49 = vsel %vm962_vm4, %v2451_v48, -inf }
 0xdf9   : > { %2455 = vmax.xlane.f32.xlu0 %v2454_v49  ;;  %v2452_v50 = vsel %vm621_vm3, %v2449_v47, -1e+30 }
 0xdfa   : > { %v2457_v52 = vsel %vm962_vm4, %v2452_v50, -inf }
 0xdfb   : > { %2458 = vmax.xlane.f32.xlu1 %v2457_v52 }
 0xdfd   : > { %2461 = vmax.xlane.f32.xlu0 %v2460_v53 }
 0xe86   : > { %v2456_v54 = vpop.xlane.xlu0 %2455 }
 0xe87   : > { %v2463_v57 = vsub.f32 %v2451_v48, %v2456_v54 }
 0xe88   : > { %v2459_v58 = vpop.xlane.xlu1 %2458 }
 0xe89   : > { %v2466_v60 = vmul.f32 1.442695, %v2463_v57  ;;  %v2464_v61 = vsub.f32 %v2452_v50, %v2459_v58  ;;  %v3825_v58 = vld [vmem:[%s4587_s13 + $0x4] ss:$8 sps:$4 sm:$0xff]  }
 0xe8a   : > { %v2462_v62 = vpop.xlane.xlu0 %2461  ;;  %2756 = vmatprep.subr.bf16.mxu0 %v3825_v58 }
 0xe8b   : > { %3893 = vpow2.f32 %v2466_v60  ;;  %v2468_v63 = vmul.f32 1.442695, %v2464_v61  ;;  %v2465_v0 = vsub.f32 %v2453_v51, %v2462_v62  ;;  %v3823_v60 = vld [vmem:[%s4587_s13] ss:$8 sps:$4 sm:$0xff]   ;;  %v3828_v61 = vld [vmem:[%s4587_s13 + $0x14] ss:$8 sps:$4 sm:$0xff]  }
 0xe8c   : > { %v3826_v62 = vld [vmem:[%s4587_s13 + $0x10] ss:$8 sps:$4 sm:$0xff]  }
 0xe8d   : > { %3895 = vpow2.f32 %v2468_v63  ;;  %v2470_v1 = vmul.f32 1.442695, %v2465_v0  ;;  %v3831_v63 = vld [vmem:[%s4587_s13 + $0x24] ss:$8 sps:$4 sm:$0xff]   ;;  %v3829_v0 = vld [vmem:[%s4587_s13 + $0x20] ss:$8 sps:$4 sm:$0xff]  }
 0xe8f   : > { %3897 = vpow2.f32 %v2470_v1  ;;  %v3832_v1 = vld [vmem:[%s4587_s13 + $0x30] ss:$8 sps:$4 sm:$0xff]  }
 0xe95   : > { %v3894_v41 = vpop.eup %3893 }
 0xe96   : > { %v2472_v7 = vsel %vm962_vm4, %v3894_v41, 0.0 }
 0xe97   : > { %v3896_v56 = vpop.eup %3895  ;;  %2473 = vadd.xlane.f32.xlu1 %v2472_v7  ;;  %v3931_v7 = vmov 0  }
 0xe98   : > { %v2475_v8 = vsel %vm962_vm4, %v3896_v56, 0.0 }
 0xe99   : > { %v3898_v9 = vpop.eup %3897  ;;  %2476 = vadd.xlane.f32.xlu0 %v2475_v8 }
 0xe9a   : > { %v2478_v10 = vsel %vm962_vm4, %v3898_v9, 0.0 }
 0xe9b   : > { %2479 = vadd.xlane.f32.xlu1 %v2478_v10 }
 0xf24   : > { %v2474_v13 = vpop.xlane.xlu1 %2473 }
 0xf25   : > { %3899 = vrcp.f32 %v2474_v13 }
 0xf26   : > { %v2477_v14 = vpop.xlane.xlu0 %2476 }
 0xf27   : > { %3901 = vrcp.f32 %v2477_v14 }
 0xf28   : > { %v2480_v15 = vpop.xlane.xlu1 %2479 }
 0xf29   : > { %3903 = vrcp.f32 %v2480_v15 }
 0xf2f   : > { %v3900_v16 = vpop.eup %3899 }
 0xf30   : > { %v2484_v5 = vmul.f32 %v3900_v16, %v3894_v41  ;;  %v3834_v41 = vld [vmem:[%s4587_s13 + $0x34] ss:$8 sps:$4 sm:$0xff]  }
 0xf31   : > { %v3902_v19 = vpop.eup %3901 }
 0xf32   : > { %v2485_v59 = vmul.f32 %v3902_v19, %v3896_v56 }
 0xf33   : > { %v3904_v6 = vpop.eup %3903 }
 0xf34   : > { %v2486_v21 = vmul.f32 %v3904_v6, %v3898_v9  ;;  %v2487_v12 = vpack.c.bf16 %v2485_v59, %v2484_v5  ;;  %v3332_v5 = vld [vmem:[%s4585_s11] ss:$0 sm:$0xff] }
 0xf36   : > { %3739 = vmatprep.mubr.msk.bf16.mxu0 %vm962_vm4, %v2487_v12  ;;  %v2488_v55 = vpack.c.bf16 %v2486_v21, %v2486_v21 }
 0xf38   : > { %3740 = vmatmul.mubr.msk.bf16.vlgmr.msra.gmra.mrb[48].mxu0 %vm962_vm4, %v2488_v55 }
 0xf39   : > { %2757 = vmatpush1.bf16.msra.mxu0 %v3823_v60  ;;  %2788 = vmatprep.mubr.bf16.mxu0 %v3931_v7 }
 0xf3a   : > { %2758 = vmatprep.subr.bf16.mxu0 %v3828_v61 }
 0xf3d   : > { %2759 = vmatpush1.bf16.msra.mxu0 %v3826_v62 }
 0xf3e   : > { %2760 = vmatprep.subr.bf16.mxu0 %v3831_v63 }
 0xf41   : > { %2761 = vmatpush1.bf16.msra.mxu0 %v3829_v0 }
 0xf42   : > { %2762 = vmatprep.subr.bf16.mxu0 %v3834_v41 }
 0xf45   : > { %2763 = vmatpush1.bf16.msra.mxu0 %v3832_v1 }
0x100b   : > { %v3741_v22 = vpop.f32.mrb[48].mxu0 }
0x100c   : > { %v2534_v24 = vpop.f32.mrb[49].mxu0  ;;  %v2549_v31 = vpack.c.bf16 %v3741_v22, %v3741_v22  ;;  %v3333_v22 = vld [vmem:[%s4586_s12] ss:$0 sm:$0xff] }
0x100d   : > { %v3742_v26 = vpop.f32.mrb[50].mxu0 }
0x100e   : > { %v2537_v27 = vpop.f32.mrb[51].mxu0 }
0x100f   : > { %v2548_v29 = vpack.c.bf16 %v2537_v27, %v2534_v24 }
0x1011   : > { %3745 = vmatprep.mubr.msk.bf16.mxu1 %vm893_vm1, %v2548_v29 }
0x1012   : > { %3746 = vmatmul.mubr.msk.bf16.vlgmr.msra.gmra.mrb[40].mxu1 %vm893_vm1, %v2549_v31 }
0x10e5   : > { %v3747_v33 = vpop.f32.mrb[40].mxu1 }
0x10e6   : > { %v2615_v34 = vadd.f32 %v3747_v33, %v4414_v23  ;;  %v2599_v36 = vpop.f32.mrb[41].mxu1 }
0x10e7   : > { %v2613_v37 = vadd.f32 %v2599_v36, %v4417_v25  ;;  %v3748_v30 = vpop.f32.mrb[42].mxu1 }
0x10e8   : > { %v2602_v39 = vpop.f32.mrb[43].mxu1  ;;  %v2618_v42 = vadd.f32 %v2615_v34, %v4040_v3  ;;  %v3836_v30 = vld [vmem:[%s4589_s15] sm:$0xff]  }
0x10e9   : > { %v2616_v32 = vadd.f32 %v4038_v2, %v2613_v37  ;;  %v2614_v35 = vadd.f32 %v2602_v39, %v4420_v28  ;;  %v3835_v37 = vld [vmem:[%s4589_s15 + $0x40] sm:$0xff]   ;;  %v3838_v39 = vld [vmem:[%s4589_s15 + $0x8] sm:$0xff]  }
0x10ea   : > { %v4460_v23 = vadd.f32 %v3331_v38, %v2618_v42  ;;  %3489 = vmatprep.subr.bf16.mxu1 %v3835_v37  ;;  %v3839_v42 = vld [vmem:[%s4589_s15 + $0x50] sm:$0xff]  }
0x10eb   : > { %v4457_v43 = vadd.f32 %v3331_v38, %v2616_v32  ;;  %v2617_v17 = vadd.f32 %v4042_v4, %v2614_v35  ;;  %3490 = vmatpush3.bf16.msra.mxu1 %v3836_v30  ;;  %v3840_v32 = vld [vmem:[%s4589_s15 + $0x10] sm:$0xff]   ;;  %v3841_v35 = vld [vmem:[%s4589_s15 + $0x58] sm:$0xff]  }
0x10ec   : > { %v2637_v2 = vsel %vm558_vm0, %v4460_v23, 0.0 }
0x10ed   : > { %v4462_v44 = vadd.f32 %v3331_v38, %v2617_v17  ;;  %v2631_v25 = vsel %vm558_vm0, %v4457_v43, 0.0  ;;  %v3837_v38 = vld [vmem:[%s4589_s15 + $0x48] sm:$0xff]   ;;  %v3842_v17 = vld [vmem:[%s4589_s15 + $0x18] sm:$0xff]  }
0x10ee   : > { %2632 = vadd.xlane.f32.xlu0 %v2631_v25  ;;  %3491 = vmatprep.subr.bf16.mxu1 %v3837_v38  ;;  %v3843_v25 = vld [vmem:[%s4589_s15 + $0x60] sm:$0xff]  }
0x10ef   : > { %v2634_v45 = vsel %vm558_vm0, %v4462_v44, 0.0  ;;  %3492 = vmatpush3.bf16.msra.mxu1 %v3838_v39 }
0x10f0   : > { %2635 = vadd.xlane.f32.xlu1 %v2634_v45  ;;  %3493 = vmatprep.subr.bf16.mxu1 %v3839_v42  ;;  %v3844_v45 = vld [vmem:[%s4589_s15 + $0x20] sm:$0xff]  }
0x10f2   : > { %2638 = vadd.xlane.f32.xlu0 %v2637_v2  ;;  %v3845_v2 = vld [vmem:[%s4589_s15 + $0x68] sm:$0xff]  }
0x10f3   : > { %3494 = vmatpush3.bf16.msra.mxu1 %v3840_v32 }
0x10f4   : > { %3495 = vmatprep.subr.bf16.mxu1 %v3841_v35 }
0x10f7   : > { %3496 = vmatpush3.bf16.msra.mxu1 %v3842_v17 }
0x10f8   : > { %3497 = vmatprep.subr.bf16.mxu1 %v3843_v25 }
0x10fb   : > { %3498 = vmatpush3.bf16.msra.mxu1 %v3844_v45 }
0x10fc   : > { %3499 = vmatprep.subr.bf16.mxu1 %v3845_v2 }
0x117b   : > { %v2633_v3 = vpop.xlane.xlu0 %2632 }
0x117c   : > { %v2640_v28 = vmul.f32 0.015625, %v2633_v3  ;;  %v3846_v3 = vld [vmem:[%s4589_s15 + $0x28] sm:$0xff]  }
0x117d   : > { %v2636_v46 = vpop.xlane.xlu1 %2635  ;;  %3500 = vmatpush3.bf16.msra.mxu1 %v3846_v3 }
0x117e   : > { %v2643_v4 = vsub.f32 %v4457_v43, %v2640_v28  ;;  %v2641_v18 = vmul.f32 0.015625, %v2636_v46  ;;  %v3847_v28 = vld [vmem:[%s4589_s15 + $0x70] sm:$0xff]  }
0x117f   : > { %v2639_v20 = vpop.xlane.xlu0 %2638  ;;  %v3848_v46 = vld [vmem:[%s4589_s15 + $0x30] sm:$0xff]   ;;  %3501 = vmatprep.subr.bf16.mxu1 %v3847_v28 }
0x1180   : > { %v2644_v47 = vsub.f32 %v4462_v44, %v2641_v18  ;;  %v2642_v48 = vmul.f32 0.015625, %v2639_v20  ;;  %v2646_v49 = vmul.f32 %v2643_v4, %v2643_v4  ;;  %v3850_v18 = vld [vmem:[%s4589_s15 + $0x38] sm:$0xff]   ;;  %v2701_v20 = vshrl.u32 %v619_v40, 7 }
0x1181   : > { %3502 = vmatpush3.bf16.msra.mxu1 %v3848_v46 }
0x1182   : > { %v2645_v50 = vsub.f32 %v4460_v23, %v2642_v48  ;;  %v2649_v51 = vsel %vm558_vm0, %v2646_v49, 0.0  ;;  %v2647_v52 = vmul.f32 %v2644_v47, %v2644_v47  ;;  %v2698_v48 = vld [vmem:[%s4588_s14] sm:$0x3]  ;;  %v2706_v49 = vsub.s32 1, %v2701_v20 }
0x1183   : > { %2650 = vadd.xlane.f32.xlu1 %v2649_v51 }
0x1184   : > { %v2652_v53 = vsel %vm558_vm0, %v2647_v52, 0.0  ;;  %v2648_v54 = vmul.f32 %v2645_v50, %v2645_v50  ;;  %v2707_v51 = vrot.slane %v2698_v48, %v2706_v49 }
0x1185   : > { %2653 = vadd.xlane.f32.xlu0 %v2652_v53 }
0x1186   : > { %v2655_v57 = vsel %vm558_vm0, %v2648_v54, 0.0 }
0x1187   : > { %2656 = vadd.xlane.f32.xlu1 %v2655_v57 }
0x1210   : > { %v2651_v56 = vpop.xlane.xlu1 %2650 }
0x1211   : > { %v2658_v8 = vmul.f32 0.015625, %v2651_v56 }
0x1212   : > { %v2654_v9 = vpop.xlane.xlu0 %2653 }
0x1213   : > { %v2661_v10 = vadd.f32 1e-06, %v2658_v8  ;;  %v2659_v11 = vmul.f32 0.015625, %v2654_v9 }
0x1214   : > { %v2657_v13 = vpop.xlane.xlu1 %2656 }
0x1215   : > { %3905 = vrsqrt.f32 %v2661_v10  ;;  %v2662_v14 = vadd.f32 1e-06, %v2659_v11  ;;  %v2660_v15 = vmul.f32 0.015625, %v2657_v13 }
0x1217   : > { %3907 = vrsqrt.f32 %v2662_v14  ;;  %v2663_v16 = vadd.f32 1e-06, %v2660_v15 }
0x1219   : > { %3909 = vrsqrt.f32 %v2663_v16 }
0x121f   : > { %v3906_v19 = vpop.eup %3905 }
0x1220   : > { %v2667_v59 = vmul.f32 %v3906_v19, %v2643_v4  ;;  %v3849_v4 = vld [vmem:[%s4589_s15 + $0x78] sm:$0xff]  }
0x1221   : > { %v3908_v6 = vpop.eup %3907  ;;  %3503 = vmatprep.subr.bf16.mxu1 %v3849_v4 }
0x1222   : > { %v2676_v21 = vmul.f32 %v3332_v5, %v2667_v59  ;;  %v2668_v12 = vmul.f32 %v3908_v6, %v2644_v47  ;;  %3504 = vmatpush3.bf16.msra.mxu1 %v3850_v18  ;;  %v2702_v47 = vsub.s32 0, %v2701_v20 }
0x1223   : > { %v3910_v55 = vpop.eup %3909 }
0x1224   : > { %v2677_v24 = vmul.f32 %v3332_v5, %v2668_v12  ;;  %v2669_v26 = vmul.f32 %v3910_v55, %v2645_v50  ;;  %v2685_v27 = vadd.f32 %v3333_v22, %v2676_v21  ;;  %v2703_v50 = vrot.slane %v2698_v48, %v2702_v47 }
0x1226   : > { %v2686_v29 = vadd.f32 %v3333_v22, %v2677_v24  ;;  %v2678_v33 = vmul.f32 %v3332_v5, %v2669_v26 }
0x1228   : > { %v2688_v31 = vpack.c.bf16 %v2686_v29, %v2685_v27  ;;  %v2687_v34 = vadd.f32 %v3333_v22, %v2678_v33 }
0x122a   : > { %3342 = vmatmul.mubr.msk.bf16.vlgmr.msra.gmra.mrb[52].mxu0 %vm558_vm0, %v2688_v31  ;;  %v2689_v36 = vpack.c.bf16 %v2687_v34, %v2687_v34 }
0x122b   : > { %2798 = vmatprep.mubr.bf16.mxu0 %v3931_v7 }
0x1232   : > { %3343 = vmatmul.mubr.msk.bf16.gmra.mrb[56].mxu0 %vm558_vm0, %v2689_v36 }
0x12fd   : > { %v2790_v52 = vpop.f32.mrb[52].mxu0 }
0x12fe   : > { %v2791_v53 = vadd.f32 %v2790_v52, %v2703_v50  ;;  %v2792_v54 = vpop.f32.mrb[53].mxu0 }
0x12ff   : > { %v2793_v57 = vadd.f32 %v2792_v54, %v2707_v51  ;;  %v2794_v58 = vpop.f32.mrb[54].mxu0 }
0x1300   : > { %v2807_v60 = vmul.f32 %v2791_v53, %v2791_v53  ;;  %v2795_v61 = vadd.f32 %v2794_v58, %v2703_v50  ;;  %v2796_v62 = vpop.f32.mrb[55].mxu0 }
0x1301   : > { %v2808_v63 = vmul.f32 %v2793_v57, %v2793_v57  ;;  %v2797_v0 = vadd.f32 %v2796_v62, %v2707_v51 }
0x1302   : > { %v2813_v1 = vmul.f32 %v2807_v60, %v2791_v53  ;;  %v2809_v40 = vmul.f32 %v2795_v61, %v2795_v61 }
0x1303   : > { %v2814_v41 = vmul.f32 %v2808_v63, %v2793_v57  ;;  %v2810_v7 = vmul.f32 %v2797_v0, %v2797_v0 }
0x1304   : > { %v2819_v56 = vmul.f32 0.044715, %v2813_v1  ;;  %v2815_v8 = vmul.f32 %v2809_v40, %v2795_v61 }
0x1305   : > { %v2820_v9 = vmul.f32 0.044715, %v2814_v41  ;;  %v2816_v10 = vmul.f32 %v2810_v7, %v2797_v0  ;;  %v2800_v11 = vpop.f32.mrb[56].mxu0 }
0x1306   : > { %v2825_v13 = vadd.f32 %v2819_v56, %v2791_v53  ;;  %v2821_v14 = vmul.f32 0.044715, %v2815_v8  ;;  %v2801_v15 = vadd.f32 %v2800_v11, %v2703_v50  ;;  %v2802_v16 = vpop.f32.mrb[57].mxu0 }
0x1307   : > { %v2826_v19 = vadd.f32 %v2820_v9, %v2793_v57  ;;  %v2822_v5 = vmul.f32 0.044715, %v2816_v10  ;;  %v2803_v59 = vadd.f32 %v2802_v16, %v2707_v51  ;;  %v2804_v6 = vpop.f32.mrb[58].mxu0 }
0x1308   : > { %v2831_v21 = vmul.f32 0.7978846, %v2825_v13  ;;  %v2827_v12 = vadd.f32 %v2821_v14, %v2795_v61  ;;  %v2811_v55 = vmul.f32 %v2801_v15, %v2801_v15  ;;  %v2805_v22 = vpop.f32.mrb[59].mxu0 }
0x1309   : > { %v2832_v24 = vmul.f32 0.7978846, %v2826_v19  ;;  %v2828_v26 = vadd.f32 %v2822_v5, %v2797_v0  ;;  %v2812_v27 = vmul.f32 %v2803_v59, %v2803_v59 }
0x130a   : > { %3911 = vtanh.f32 %v2831_v21  ;;  %v2833_v29 = vmul.f32 0.7978846, %v2827_v12  ;;  %v2817_v31 = vmul.f32 %v2811_v55, %v2801_v15 }
0x130b   : > { %3913 = vtanh.f32 %v2832_v24  ;;  %v2834_v33 = vmul.f32 0.7978846, %v2828_v26  ;;  %v2818_v34 = vmul.f32 %v2812_v27, %v2803_v59 }
0x130c   : > { %3915 = vtanh.f32 %v2833_v29  ;;  %v2823_v36 = vmul.f32 0.044715, %v2817_v31 }
0x130d   : > { %3917 = vtanh.f32 %v2834_v33  ;;  %v2824_v37 = vmul.f32 0.044715, %v2818_v34 }
0x130e   : > { %v2829_v30 = vadd.f32 %v2823_v36, %v2801_v15 }
0x130f   : > { %v2830_v38 = vadd.f32 %v2824_v37, %v2803_v59 }
0x1310   : > { %v2835_v39 = vmul.f32 0.7978846, %v2829_v30 }
0x1311   : > { %v2836_v42 = vmul.f32 0.7978846, %v2830_v38 }
0x1312   : > { %3919 = vtanh.f32 %v2835_v39 }
0x1313   : > { %3921 = vtanh.f32 %v2836_v42 }
0x1314   : > { %v3912_v32 = vpop.eup %3911 }
0x1315   : > { %v3914_v35 = vpop.eup %3913  ;;  %v2843_v17 = vadd.f32 1.0, %v3912_v32 }
0x1316   : > { %v3916_v25 = vpop.eup %3915  ;;  %v2844_v45 = vadd.f32 1.0, %v3914_v35 }
0x1317   : > { %v3918_v2 = vpop.eup %3917  ;;  %v2849_v3 = vmul.f32 0.5, %v2843_v17  ;;  %v2845_v28 = vadd.f32 1.0, %v3916_v25 }
0x1318   : > { %v2846_v46 = vadd.f32 1.0, %v3918_v2  ;;  %v2850_v4 = vmul.f32 0.5, %v2844_v45 }
0x1319   : > { %v2851_v18 = vmul.f32 0.5, %v2845_v28  ;;  %v2855_v47 = vmul.f32 %v2849_v3, %v2791_v53 }
0x131a   : > { %v2852_v20 = vmul.f32 0.5, %v2846_v46  ;;  %v2856_v50 = vmul.f32 %v2850_v4, %v2793_v57  ;;  %v3344_v57 = vld [vmem:[%s4590_s16] ss:$0 sm:$0xff] }
0x131b   : > { %v2857_v48 = vmul.f32 %v2851_v18, %v2795_v61 }
0x131c   : > { %v3920_v49 = vpop.eup %3919  ;;  %v2858_v51 = vmul.f32 %v2852_v20, %v2797_v0 }
0x131d   : > { %v3922_v52 = vpop.eup %3921  ;;  %v2861_v54 = vpack.c.bf16 %v2857_v48, %v2855_v47  ;;  %v2847_v58 = vadd.f32 1.0, %v3920_v49 }
0x131e   : > { %v2862_v60 = vpack.c.bf16 %v2858_v51, %v2856_v50  ;;  %v2848_v62 = vadd.f32 1.0, %v3922_v52 }
0x131f   : > { %v2853_v63 = vmul.f32 0.5, %v2847_v58 }
0x1320   : > { %3032 = vmatprep.mubr.bf16.mxu1 %v2862_v60  ;;  %v2854_v1 = vmul.f32 0.5, %v2848_v62 }
0x1321   : > { %3033 = vmatmul.mubr.bf16.vlgmr.msra.gmra.mrb[44].mxu1 %v2861_v54  ;;  %v2859_v41 = vmul.f32 %v2853_v63, %v2801_v15 }
0x1322   : > { %v2860_v40 = vmul.f32 %v2854_v1, %v2803_v59 }
0x1323   : > { %v2863_v56 = vpack.c.bf16 %v2859_v41, %v2859_v41 }
0x1324   : > { %v2864_v7 = vpack.c.bf16 %v2860_v40, %v2860_v40 }
0x1326   : > { %3040 = vmatprep.mubr.bf16.mxu1 %v2864_v7 }
0x1329   : > { %3041 = vmatmul.mubr.bf16.gmra.mrb[48].mxu1 %v2863_v56 }
0x13f4   : > { %v3505_v53 = vpop.f32.mrb[44].mxu1 }
0x13f5   : > { %v3506_v61 = vpop.f32.mrb[45].mxu1 }
0x13f6   : > { %v3507_v0 = vadd.f32 %v3506_v61, %v3505_v53  ;;  %v3508_v8 = vpop.f32.mrb[46].mxu1 }
0x13f7   : > { %v3509_v9 = vpop.f32.mrb[47].mxu1 }
0x13f8   : > { %v3035_v10 = vadd.f32 %v3507_v0, %v3344_v57  ;;  %v3510_v11 = vadd.f32 %v3509_v9, %v3508_v8 }
0x13fa   : > { %v3048_v13 = vadd.f32 %v3035_v10, %v4457_v43  ;;  %v3038_v14 = vadd.f32 %v3510_v11, %v3344_v57 }
0x13fc   : > { %v3366_v15 = vpack.c.bf16 %v3048_v13, %v3048_v13  ;;  %v3049_v16 = vadd.f32 %v3038_v14, %v4462_v44  ;;  %v3511_v19 = vpop.f32.mrb[48].mxu1 }
0x13fd   : > { %v3512_v5 = vpop.f32.mrb[49].mxu1 }
0x13fe   : > { %3065 = vst.msk [vmem:[%s548_s18] sm:$0xf] %vm3064_vm5, %v3366_v15  ;;  %v3367_v59 = vpack.c.bf16 %v3049_v16, %v3049_v16  ;;  %v3513_v6 = vadd.f32 %v3512_v5, %v3511_v19  ;;  %v3514_v21 = vpop.f32.mrb[50].mxu1 }
0x13ff   : > { %v3515_v12 = vpop.f32.mrb[51].mxu1 }
0x1400   : > { %3066 = vst.msk [vmem:[%s548_s18 + $0x4] sm:$0xf] %vm3064_vm5, %v3367_v59  ;;  %v3043_v55 = vadd.f32 %v3513_v6, %v3344_v57 }
0x1402   : > { %v3050_v43 = vadd.f32 %v3043_v55, %v4460_v23 }
0x1404   : > { %v3368_v22 = vpack.c.bf16 %v3050_v43, %v3050_v43 }
0x1406   : > { %3067 = vst.msk [vmem:[%s548_s18 + $0x8] sm:$0xf] %vm3064_vm5, %v3368_v22 }
0x1407 PF: > { %s27_s24 = sadd.s32 1, %s3929_s24  }
0x1408   : > { %p24_p4 = scmp.ge.s32.totalorder %s27_s24, 4  }
0x140a   :  { %26 = sbr.rel (!%p24_p4) target bundleno = 3 (0x3), region = 139 }

</bundles_post_ra>
